<compile_context>
chip_gen: v6e
topology: v6e:2x2x1
jax: 0.10.0
libtpu: 0.0.40
codegen_flags: <defaults>
</compile_context>

<pallas_src>
import jax
import jax.numpy as jnp
from jax import lax
from jax.experimental import pallas as pl
from jax.experimental.pallas import tpu as pltpu

INPUT_SIZE = 1
HIDDEN0 = 32
HIDDEN1 = 128
HIDDEN2 = 256
HIDDEN3 = 128
HIDDEN4 = 32
OUTPUT_SIZE = 1

assert HIDDEN0 == HIDDEN4, "hidden feedback requires hidden_size0 == hidden_size4"
assert INPUT_SIZE == 1 and OUTPUT_SIZE == 1

MATMUL_DTYPE = jnp.bfloat16   # MXU operand / hidden-carry dtype; accumulation f32
_FULL_UNROLL = 64             # max timesteps per chunk emitted as straight-line code


def _rnn_chunk_kernel(x_ref, h0_ref,
                      wh1_ref, wx1_ref, b1_ref,
                      w2_ref, b2_ref,
                      w3_ref, b3_ref,
                      w4_ref, b4_ref,
                      woh_ref, wox_ref, bo_ref,
                      out_ref, hid_ref,
                      h_carry):
    """One grid step == one chunk of T_CHUNK timesteps.

    Weights are VMEM-resident for the whole grid (constant index maps); the
    recurrent hidden state is carried across chunks in a bf16 VMEM scratch."""
    c = pl.program_id(0)

    @pl.when(c == 0)
    def _init():
        h_carry[...] = h0_ref[...].astype(h_carry.dtype)

    n = x_ref.shape[1]            # T_CHUNK (static)

    def step(i, h_prev):
        x_t = x_ref[:, pl.ds(i, 1)]                       # [B, 1] f32

        # i2o head on the *pre-update* hidden (combined = [x_t, h_prev]):
        # tiny VPU multiply + lane reduce; keeps the first matmul at N=128.
        o = (jnp.sum(h_prev.astype(jnp.float32) * woh_ref[...],
                     axis=1, keepdims=True)
             + x_t * wox_ref[...] + bo_ref[...])          # [B, 1] f32
        out_ref[:, pl.ds(i, 1)] = o                        # single-column store

        # Layer 1: hidden part on the MXU, INPUT_SIZE == 1 part is a cheap
        # VPU broadcast (no concat needed).
        z = jnp.dot(h_prev, wh1_ref[...], preferred_element_type=jnp.float32)
        z = z + x_t * wx1_ref[...] + b1_ref[...]
        h = jnp.tanh(z).astype(MATMUL_DTYPE)

        h = jnp.tanh(jnp.dot(h, w2_ref[...],
                             preferred_element_type=jnp.float32)
                     + b2_ref[...]).astype(MATMUL_DTYPE)
        h = jnp.tanh(jnp.dot(h, w3_ref[...],
                             preferred_element_type=jnp.float32)
                     + b3_ref[...]).astype(MATMUL_DTYPE)
        h = jnp.tanh(jnp.dot(h, w4_ref[...],
                             preferred_element_type=jnp.float32)
                     + b4_ref[...]).astype(MATMUL_DTYPE)
        return h

    h = h_carry[...]
    if n <= _FULL_UNROLL:
        for i in range(n):        # static indices -> static column loads/stores
            h = step(i, h)
    else:
        h = lax.fori_loop(0, n, step, h, unroll=8)
    h_carry[...] = h

    # Only the final hidden state is observable; write it once, on the last chunk.
    @pl.when(c == pl.num_programs(0) - 1)
    def _fin():
        hid_ref[...] = h_carry[...].astype(hid_ref.dtype)


def _choose_chunk(T):
    for c in (512, 256, 128):     # lane-dense writeback chunks for long sequences
        if T % c == 0:
            return c
    return T                      # small / ragged T: whole sequence in one chunk


def _resident(shape):
    # Constant block index -> block stays VMEM-resident for the whole grid.
    return pl.BlockSpec(shape, lambda c, _n=len(shape): (0,) * _n)


@jax.jit
def rnn_forward(input_signal, h0, params):
    """input_signal: [T, B, INPUT_SIZE] f32, h0: [B, HIDDEN0] f32.

    Returns (outputs [B, T] f32  -- column t is the i2o output at timestep t,
             hidden  [B, HIDDEN4] f32 -- hidden state after the last step)."""
    T, B, in_sz = input_signal.shape
    assert in_sz == INPUT_SIZE
    (wh1, wx1, b1), (w2, b2), (w3, b3), (w4, b4), (woh, wox, bo) = params

    x_bt = jnp.transpose(input_signal[:, :, 0], (1, 0))    # lane-dense [B, T]
    t_chunk = _choose_chunk(T)

    outs, h_last = pl.pallas_call(
        _rnn_chunk_kernel,
        grid=(T // t_chunk,),
        in_specs=[
            pl.BlockSpec((B, t_chunk), lambda c: (0, c)),   # x chunk
            _resident((B, HIDDEN0)),                        # h0
            _resident((HIDDEN0, HIDDEN1)),                  # Wh1 (bf16, MXU)
            _resident((INPUT_SIZE, HIDDEN1)),               # Wx1 (f32, VPU row)
            _resident((1, HIDDEN1)),                        # b1
            _resident((HIDDEN1, HIDDEN2)), _resident((1, HIDDEN2)),
            _resident((HIDDEN2, HIDDEN3)), _resident((1, HIDDEN3)),
            _resident((HIDDEN3, HIDDEN4)), _resident((1, HIDDEN4)),
            _resident((1, HIDDEN0)),                        # i2o hidden row
            _resident((1, OUTPUT_SIZE)),                    # i2o input weight
            _resident((1, OUTPUT_SIZE)),                    # i2o bias
        ],
        out_specs=(
            pl.BlockSpec((B, t_chunk), lambda c: (0, c)),   # chunked, pipelined
            pl.BlockSpec((B, HIDDEN4), lambda c: (0, 0)),   # resident final hidden
        ),
        out_shape=(
            jax.ShapeDtypeStruct((B, T), jnp.float32),
            jax.ShapeDtypeStruct((B, HIDDEN4), jnp.float32),
        ),
        scratch_shapes=[pltpu.VMEM((B, HIDDEN0), MATMUL_DTYPE)],   # hidden carry
        compiler_params=pltpu.CompilerParams(
            dimension_semantics=("arbitrary",)),            # serial recurrence
    )(x_bt, h0, wh1, wx1, b1, w2, b2, w3, b3, w4, b4, woh, wox, bo)
    return outs, h_last


def init_raw_params(key):
    """nn.Linear-style init (uniform +-1/sqrt(fan_in)); weights stored [in, out]."""
    dims = [
        (INPUT_SIZE + HIDDEN0, HIDDEN1),      # i2h1
        (HIDDEN1, HIDDEN2),                   # h12h2
        (HIDDEN2, HIDDEN3),                   # h22h3
        (HIDDEN3, HIDDEN4),                   # h32h4
        (INPUT_SIZE + HIDDEN0, OUTPUT_SIZE),  # i2o
    ]
    params = []
    for fan_in, fan_out in dims:
        key, kw, kb = jax.random.split(key, 3)
        bound = 1.0 / jnp.sqrt(jnp.float32(fan_in))
        w = jax.random.uniform(kw, (fan_in, fan_out), jnp.float32, -bound, bound)
        b = jax.random.uniform(kb, (1, fan_out), jnp.float32, -bound, bound)
        params.append((w, b))
    return tuple(params)


def prepare_params(raw_params, matmul_dtype=MATMUL_DTYPE):
    """Split layer-1 / i2o weights into MXU (hidden) and VPU (input) parts.

    Matmul operands are cast to `matmul_dtype`; everything added on the VPU
    (biases, input rows, i2o head) stays f32."""
    (w1, b1), (w2, b2), (w3, b3), (w4, b4), (wo, bo) = raw_params
    wx1 = w1[:INPUT_SIZE, :].astype(jnp.float32)      # [1, H1] VPU broadcast row
    wh1 = w1[INPUT_SIZE:, :].astype(matmul_dtype)     # [H0, H1] MXU operand
    woh = wo[INPUT_SIZE:, :].T.astype(jnp.float32)    # [1, H0]  i2o hidden row
    wox = wo[:INPUT_SIZE, :].astype(jnp.float32)      # [1, 1]   i2o input weight
    return (
        (wh1, wx1, b1.astype(jnp.float32)),
        (w2.astype(matmul_dtype), b2.astype(jnp.float32)),
        (w3.astype(matmul_dtype), b3.astype(jnp.float32)),
        (w4.astype(matmul_dtype), b4.astype(jnp.float32)),
        (woh, wox, bo.astype(jnp.float32)),
    )


def rnn_reference(input_signal, h0, params):
    """Pure-JAX reference with the same numerics (bf16 operands / hidden carry)."""
    (wh1, wx1, b1), (w2, b2), (w3, b3), (w4, b4), (woh, wox, bo) = params

    def step(h, x):
        o = (jnp.sum(h.astype(jnp.float32) * woh, axis=1, keepdims=True)
             + x * wox + bo)
        z = jnp.dot(h, wh1, preferred_element_type=jnp.float32) + x * wx1 + b1
        hh = jnp.tanh(z).astype(wh1.dtype)
        hh = jnp.tanh(jnp.dot(hh, w2, preferred_element_type=jnp.float32)
                      + b2).astype(w2.dtype)
        hh = jnp.tanh(jnp.dot(hh, w3, preferred_element_type=jnp.float32)
                      + b3).astype(w3.dtype)
        hh = jnp.tanh(jnp.dot(hh, w4, preferred_element_type=jnp.float32)
                      + b4).astype(w4.dtype)
        return hh, o

    h_last, outs = jax.lax.scan(step, h0.astype(wh1.dtype), input_signal)
    return jnp.transpose(outs[:, :, 0], (1, 0)), h_last.astype(jnp.float32)


if __name__ == "__main__":
    key = jax.random.PRNGKey(0)
    kp, kx = jax.random.split(key)

    params = prepare_params(init_raw_params(kp))

    batch = 1          # module's init_hidden() implies batch of 1
    seq_len = 8        # small input signal
    # TODO(synk): batching multiple independent sequences (B up to the MXU row
    # count) is the only way to make this compute-bound; single-sequence RNN is
    # inherently latency-bound.
    input_signal = jax.random.normal(kx, (seq_len, batch, INPUT_SIZE), jnp.float32)
    h0 = jnp.zeros((batch, HIDDEN0), jnp.float32)   # init_hidden(): zeros(1, hidden_size0)

    outputs, hidden = rnn_forward(input_signal, h0, params)
    outputs, hidden = jax.block_until_ready((outputs, hidden))

    assert outputs.shape == (batch, seq_len)
    assert hidden.shape == (batch, HIDDEN4)

    # Sanity check against a pure-JAX (lax.scan) reference with identical casts.
    ref_outputs, ref_hidden = rnn_reference(input_signal, h0, params)
    if not bool(jnp.allclose(outputs, ref_outputs, rtol=1e-2, atol=1e-2)):
        raise AssertionError("per-step outputs mismatch vs reference")
    if not bool(jnp.allclose(hidden, ref_hidden, rtol=1e-2, atol=1e-2)):
        raise AssertionError("final hidden mismatch vs reference")

    print("KERNEL_OK")
</pallas_src>

<mosaic_0001>
module attributes {stable_mosaic.version = 11 : i64} {
  func.func @_rnn_chunk_kernel(%arg0: i32, %arg1: memref<1x8xf32, #tpu.memory_space<vmem>>, %arg2: memref<1x32xf32, #tpu.memory_space<vmem>>, %arg3: memref<32x128xbf16, #tpu.memory_space<vmem>>, %arg4: memref<1x128xf32, #tpu.memory_space<vmem>>, %arg5: memref<1x128xf32, #tpu.memory_space<vmem>>, %arg6: memref<128x256xbf16, #tpu.memory_space<vmem>>, %arg7: memref<1x256xf32, #tpu.memory_space<vmem>>, %arg8: memref<256x128xbf16, #tpu.memory_space<vmem>>, %arg9: memref<1x128xf32, #tpu.memory_space<vmem>>, %arg10: memref<128x32xbf16, #tpu.memory_space<vmem>>, %arg11: memref<1x32xf32, #tpu.memory_space<vmem>>, %arg12: memref<1x32xf32, #tpu.memory_space<vmem>>, %arg13: memref<1x1xf32, #tpu.memory_space<vmem>>, %arg14: memref<1x1xf32, #tpu.memory_space<vmem>>, %arg15: memref<1x8xf32, #tpu.memory_space<vmem>>, %arg16: memref<1x32xf32, #tpu.memory_space<vmem>>, %arg17: memref<1x32xbf16, #tpu.memory_space<vmem>>) attributes {dimension_semantics = [#tpu.dimension_semantics<arbitrary>], iteration_bounds = array<i64: 1>, scalar_prefetch = 0 : i64, scratch_operands = 1 : i64, tpu.core_type = #tpu.core_type<tc>, window_params = [{transform_indices = @transform_0, window_bounds = array<i64: 1, 8>}, {pipeline_mode = #tpu.pipeline_mode<synchronous>, transform_indices = @transform_1, window_bounds = array<i64: 1, 32>}, {pipeline_mode = #tpu.pipeline_mode<synchronous>, transform_indices = @transform_2, window_bounds = array<i64: 32, 128>}, {pipeline_mode = #tpu.pipeline_mode<synchronous>, transform_indices = @transform_3, window_bounds = array<i64: 1, 128>}, {pipeline_mode = #tpu.pipeline_mode<synchronous>, transform_indices = @transform_4, window_bounds = array<i64: 1, 128>}, {pipeline_mode = #tpu.pipeline_mode<synchronous>, transform_indices = @transform_5, window_bounds = array<i64: 128, 256>}, {pipeline_mode = #tpu.pipeline_mode<synchronous>, transform_indices = @transform_6, window_bounds = array<i64: 1, 256>}, {pipeline_mode = #tpu.pipeline_mode<synchronous>, transform_indices = @transform_7, window_bounds = array<i64: 256, 128>}, {pipeline_mode = #tpu.pipeline_mode<synchronous>, transform_indices = @transform_8, window_bounds = array<i64: 1, 128>}, {pipeline_mode = #tpu.pipeline_mode<synchronous>, transform_indices = @transform_9, window_bounds = array<i64: 128, 32>}, {pipeline_mode = #tpu.pipeline_mode<synchronous>, transform_indices = @transform_10, window_bounds = array<i64: 1, 32>}, {pipeline_mode = #tpu.pipeline_mode<synchronous>, transform_indices = @transform_11, window_bounds = array<i64: 1, 32>}, {pipeline_mode = #tpu.pipeline_mode<synchronous>, transform_indices = @transform_12, window_bounds = array<i64: 1, 1>}, {pipeline_mode = #tpu.pipeline_mode<synchronous>, transform_indices = @transform_13, window_bounds = array<i64: 1, 1>}, {transform_indices = @transform_14, window_bounds = array<i64: 1, 8>}, {pipeline_mode = #tpu.pipeline_mode<synchronous>, transform_indices = @transform_15, window_bounds = array<i64: 1, 32>}]} {
    %c0_i32 = arith.constant 0 : i32
    %0 = arith.cmpi eq, %arg0, %c0_i32 : i32
    %1 = arith.extui %0 : i1 to i32
    %c0_i32_0 = arith.constant 0 : i32
    %2 = arith.cmpi ne, %1, %c0_i32_0 : i32
    scf.if %2 {
      %c0_262 = arith.constant 0 : index
      %c0_263 = arith.constant 0 : index
      %328 = vector.load %arg2[%c0_262, %c0_263] : memref<1x32xf32, #tpu.memory_space<vmem>>, vector<1x32xf32>
      %329 = arith.truncf %328 : vector<1x32xf32> to vector<1x32xbf16>
      %c0_264 = arith.constant 0 : index
      %c0_265 = arith.constant 0 : index
      %330 = vector.load %arg17[%c0_264, %c0_265] : memref<1x32xbf16, #tpu.memory_space<vmem>>, vector<1x32xbf16>
      tpu.vector_store %arg17[%c0_264, %c0_265], %329 {strides = array<i32>} : memref<1x32xbf16, #tpu.memory_space<vmem>>, vector<1x32xbf16>,
    } else {
    }
    %c0 = arith.constant 0 : index
    %c0_1 = arith.constant 0 : index
    %3 = vector.load %arg17[%c0, %c0_1] : memref<1x32xbf16, #tpu.memory_space<vmem>>, vector<1x32xbf16>
    %c0_2 = arith.constant 0 : index
    %c0_3 = arith.constant 0 : index
    %4 = vector.load %arg1[%c0_2, %c0_3] : memref<1x8xf32, #tpu.memory_space<vmem>>, vector<1x1xf32>
    %5 = arith.extf %3 : vector<1x32xbf16> to vector<1x32xf32>
    %c0_4 = arith.constant 0 : index
    %c0_5 = arith.constant 0 : index
    %6 = vector.load %arg12[%c0_4, %c0_5] : memref<1x32xf32, #tpu.memory_space<vmem>>, vector<1x32xf32>
    %7 = arith.mulf %5, %6 : vector<1x32xf32>
    %cst = arith.constant dense<0.000000e+00> : vector<1xf32>
    %8 = vector.multi_reduction <add>, %7, %cst [1] : vector<1x32xf32> to vector<1xf32>
    %9 = vector.shape_cast %8 : vector<1xf32> to vector<1x1xf32>
    %c0_6 = arith.constant 0 : index
    %c0_7 = arith.constant 0 : index
    %10 = vector.load %arg13[%c0_6, %c0_7] : memref<1x1xf32, #tpu.memory_space<vmem>>, vector<1x1xf32>
    %11 = arith.mulf %4, %10 : vector<1x1xf32>
    %12 = arith.addf %9, %11 : vector<1x1xf32>
    %c0_8 = arith.constant 0 : index
    %c0_9 = arith.constant 0 : index
    %13 = vector.load %arg14[%c0_8, %c0_9] : memref<1x1xf32, #tpu.memory_space<vmem>>, vector<1x1xf32>
    %14 = arith.addf %12, %13 : vector<1x1xf32>
    %c0_10 = arith.constant 0 : index
    %c0_11 = arith.constant 0 : index
    %15 = vector.load %arg15[%c0_10, %c0_11] : memref<1x8xf32, #tpu.memory_space<vmem>>, vector<1x1xf32>
    tpu.vector_store %arg15[%c0_10, %c0_11], %14 {strides = array<i32>} : memref<1x8xf32, #tpu.memory_space<vmem>>, vector<1x1xf32>,
    %c0_12 = arith.constant 0 : index
    %c0_13 = arith.constant 0 : index
    %16 = vector.load %arg3[%c0_12, %c0_13] : memref<32x128xbf16, #tpu.memory_space<vmem>>, vector<32x128xbf16>
    %cst_14 = arith.constant dense<0.000000e+00> : vector<1x128xf32>
    %17 = tpu.matmul %3, %16, %cst_14 {dimension_numbers = #tpu.dot_dimension_numbers<[1], [0], [0], [1], [0, 0, 1, 1], [], []>} : vector<1x32xbf16>, vector<32x128xbf16>, vector<1x128xf32> -> vector<1x128xf32>
    %c0_15 = arith.constant 0 : index
    %c0_16 = arith.constant 0 : index
    %18 = vector.load %arg4[%c0_15, %c0_16] : memref<1x128xf32, #tpu.memory_space<vmem>>, vector<1x128xf32>
    %19 = vector.broadcast %4 : vector<1x1xf32> to vector<1x128xf32>
    %20 = arith.mulf %19, %18 : vector<1x128xf32>
    %21 = arith.addf %17, %20 : vector<1x128xf32>
    %c0_17 = arith.constant 0 : index
    %c0_18 = arith.constant 0 : index
    %22 = vector.load %arg5[%c0_17, %c0_18] : memref<1x128xf32, #tpu.memory_space<vmem>>, vector<1x128xf32>
    %23 = arith.addf %21, %22 : vector<1x128xf32>
    %24 = math.tanh %23 : vector<1x128xf32>
    %25 = arith.truncf %24 : vector<1x128xf32> to vector<1x128xbf16>
    %c0_19 = arith.constant 0 : index
    %c0_20 = arith.constant 0 : index
    %26 = vector.load %arg6[%c0_19, %c0_20] : memref<128x256xbf16, #tpu.memory_space<vmem>>, vector<128x256xbf16>
    %cst_21 = arith.constant dense<0.000000e+00> : vector<1x256xf32>
    %27 = tpu.matmul %25, %26, %cst_21 {dimension_numbers = #tpu.dot_dimension_numbers<[1], [0], [0], [1], [0, 0, 1, 1], [], []>} : vector<1x128xbf16>, vector<128x256xbf16>, vector<1x256xf32> -> vector<1x256xf32>
    %c0_22 = arith.constant 0 : index
    %c0_23 = arith.constant 0 : index
    %28 = vector.load %arg7[%c0_22, %c0_23] : memref<1x256xf32, #tpu.memory_space<vmem>>, vector<1x256xf32>
    %29 = arith.addf %27, %28 : vector<1x256xf32>
    %30 = math.tanh %29 : vector<1x256xf32>
    %31 = arith.truncf %30 : vector<1x256xf32> to vector<1x256xbf16>
    %c0_24 = arith.constant 0 : index
    %c0_25 = arith.constant 0 : index
    %32 = vector.load %arg8[%c0_24, %c0_25] : memref<256x128xbf16, #tpu.memory_space<vmem>>, vector<256x128xbf16>
    %cst_26 = arith.constant dense<0.000000e+00> : vector<1x128xf32>
    %33 = tpu.matmul %31, %32, %cst_26 {dimension_numbers = #tpu.dot_dimension_numbers<[1], [0], [0], [1], [0, 0, 1, 1], [], []>} : vector<1x256xbf16>, vector<256x128xbf16>, vector<1x128xf32> -> vector<1x128xf32>
    %c0_27 = arith.constant 0 : index
    %c0_28 = arith.constant 0 : index
    %34 = vector.load %arg9[%c0_27, %c0_28] : memref<1x128xf32, #tpu.memory_space<vmem>>, vector<1x128xf32>
    %35 = arith.addf %33, %34 : vector<1x128xf32>
    %36 = math.tanh %35 : vector<1x128xf32>
    %37 = arith.truncf %36 : vector<1x128xf32> to vector<1x128xbf16>
    %c0_29 = arith.constant 0 : index
    %c0_30 = arith.constant 0 : index
    %38 = vector.load %arg10[%c0_29, %c0_30] : memref<128x32xbf16, #tpu.memory_space<vmem>>, vector<128x32xbf16>
    %cst_31 = arith.constant dense<0.000000e+00> : vector<1x32xf32>
    %39 = tpu.matmul %37, %38, %cst_31 {dimension_numbers = #tpu.dot_dimension_numbers<[1], [0], [0], [1], [0, 0, 1, 1], [], []>} : vector<1x128xbf16>, vector<128x32xbf16>, vector<1x32xf32> -> vector<1x32xf32>
    %c0_32 = arith.constant 0 : index
    %c0_33 = arith.constant 0 : index
    %40 = vector.load %arg11[%c0_32, %c0_33] : memref<1x32xf32, #tpu.memory_space<vmem>>, vector<1x32xf32>
    %41 = arith.addf %39, %40 : vector<1x32xf32>
    %42 = math.tanh %41 : vector<1x32xf32>
    %43 = arith.truncf %42 : vector<1x32xf32> to vector<1x32xbf16>
    %c0_34 = arith.constant 0 : index
    %c1 = arith.constant 1 : index
    %44 = vector.load %arg1[%c0_34, %c1] : memref<1x8xf32, #tpu.memory_space<vmem>>, vector<1x1xf32>
    %45 = arith.extf %43 : vector<1x32xbf16> to vector<1x32xf32>
    %c0_35 = arith.constant 0 : index
    %c0_36 = arith.constant 0 : index
    %46 = vector.load %arg12[%c0_35, %c0_36] : memref<1x32xf32, #tpu.memory_space<vmem>>, vector<1x32xf32>
    %47 = arith.mulf %45, %46 : vector<1x32xf32>
    %cst_37 = arith.constant dense<0.000000e+00> : vector<1xf32>
    %48 = vector.multi_reduction <add>, %47, %cst_37 [1] : vector<1x32xf32> to vector<1xf32>
    %49 = vector.shape_cast %48 : vector<1xf32> to vector<1x1xf32>
    %c0_38 = arith.constant 0 : index
    %c0_39 = arith.constant 0 : index
    %50 = vector.load %arg13[%c0_38, %c0_39] : memref<1x1xf32, #tpu.memory_space<vmem>>, vector<1x1xf32>
    %51 = arith.mulf %44, %50 : vector<1x1xf32>
    %52 = arith.addf %49, %51 : vector<1x1xf32>
    %c0_40 = arith.constant 0 : index
    %c0_41 = arith.constant 0 : index
    %53 = vector.load %arg14[%c0_40, %c0_41] : memref<1x1xf32, #tpu.memory_space<vmem>>, vector<1x1xf32>
    %54 = arith.addf %52, %53 : vector<1x1xf32>
    %c0_42 = arith.constant 0 : index
    %c1_43 = arith.constant 1 : index
    %55 = vector.load %arg15[%c0_42, %c1_43] : memref<1x8xf32, #tpu.memory_space<vmem>>, vector<1x1xf32>
    tpu.vector_store %arg15[%c0_42, %c1_43], %54 {strides = array<i32>} : memref<1x8xf32, #tpu.memory_space<vmem>>, vector<1x1xf32>,
    %c0_44 = arith.constant 0 : index
    %c0_45 = arith.constant 0 : index
    %56 = vector.load %arg3[%c0_44, %c0_45] : memref<32x128xbf16, #tpu.memory_space<vmem>>, vector<32x128xbf16>
    %cst_46 = arith.constant dense<0.000000e+00> : vector<1x128xf32>
    %57 = tpu.matmul %43, %56, %cst_46 {dimension_numbers = #tpu.dot_dimension_numbers<[1], [0], [0], [1], [0, 0, 1, 1], [], []>} : vector<1x32xbf16>, vector<32x128xbf16>, vector<1x128xf32> -> vector<1x128xf32>
    %c0_47 = arith.constant 0 : index
    %c0_48 = arith.constant 0 : index
    %58 = vector.load %arg4[%c0_47, %c0_48] : memref<1x128xf32, #tpu.memory_space<vmem>>, vector<1x128xf32>
    %59 = vector.broadcast %44 : vector<1x1xf32> to vector<1x128xf32>
    %60 = arith.mulf %59, %58 : vector<1x128xf32>
    %61 = arith.addf %57, %60 : vector<1x128xf32>
    %c0_49 = arith.constant 0 : index
    %c0_50 = arith.constant 0 : index
    %62 = vector.load %arg5[%c0_49, %c0_50] : memref<1x128xf32, #tpu.memory_space<vmem>>, vector<1x128xf32>
    %63 = arith.addf %61, %62 : vector<1x128xf32>
    %64 = math.tanh %63 : vector<1x128xf32>
    %65 = arith.truncf %64 : vector<1x128xf32> to vector<1x128xbf16>
    %c0_51 = arith.constant 0 : index
    %c0_52 = arith.constant 0 : index
    %66 = vector.load %arg6[%c0_51, %c0_52] : memref<128x256xbf16, #tpu.memory_space<vmem>>, vector<128x256xbf16>
    %cst_53 = arith.constant dense<0.000000e+00> : vector<1x256xf32>
    %67 = tpu.matmul %65, %66, %cst_53 {dimension_numbers = #tpu.dot_dimension_numbers<[1], [0], [0], [1], [0, 0, 1, 1], [], []>} : vector<1x128xbf16>, vector<128x256xbf16>, vector<1x256xf32> -> vector<1x256xf32>
    %c0_54 = arith.constant 0 : index
    %c0_55 = arith.constant 0 : index
    %68 = vector.load %arg7[%c0_54, %c0_55] : memref<1x256xf32, #tpu.memory_space<vmem>>, vector<1x256xf32>
    %69 = arith.addf %67, %68 : vector<1x256xf32>
    %70 = math.tanh %69 : vector<1x256xf32>
    %71 = arith.truncf %70 : vector<1x256xf32> to vector<1x256xbf16>
    %c0_56 = arith.constant 0 : index
    %c0_57 = arith.constant 0 : index
    %72 = vector.load %arg8[%c0_56, %c0_57] : memref<256x128xbf16, #tpu.memory_space<vmem>>, vector<256x128xbf16>
    %cst_58 = arith.constant dense<0.000000e+00> : vector<1x128xf32>
    %73 = tpu.matmul %71, %72, %cst_58 {dimension_numbers = #tpu.dot_dimension_numbers<[1], [0], [0], [1], [0, 0, 1, 1], [], []>} : vector<1x256xbf16>, vector<256x128xbf16>, vector<1x128xf32> -> vector<1x128xf32>
    %c0_59 = arith.constant 0 : index
    %c0_60 = arith.constant 0 : index
    %74 = vector.load %arg9[%c0_59, %c0_60] : memref<1x128xf32, #tpu.memory_space<vmem>>, vector<1x128xf32>
    %75 = arith.addf %73, %74 : vector<1x128xf32>
    %76 = math.tanh %75 : vector<1x128xf32>
    %77 = arith.truncf %76 : vector<1x128xf32> to vector<1x128xbf16>
    %c0_61 = arith.constant 0 : index
    %c0_62 = arith.constant 0 : index
    %78 = vector.load %arg10[%c0_61, %c0_62] : memref<128x32xbf16, #tpu.memory_space<vmem>>, vector<128x32xbf16>
    %cst_63 = arith.constant dense<0.000000e+00> : vector<1x32xf32>
    %79 = tpu.matmul %77, %78, %cst_63 {dimension_numbers = #tpu.dot_dimension_numbers<[1], [0], [0], [1], [0, 0, 1, 1], [], []>} : vector<1x128xbf16>, vector<128x32xbf16>, vector<1x32xf32> -> vector<1x32xf32>
    %c0_64 = arith.constant 0 : index
    %c0_65 = arith.constant 0 : index
    %80 = vector.load %arg11[%c0_64, %c0_65] : memref<1x32xf32, #tpu.memory_space<vmem>>, vector<1x32xf32>
    %81 = arith.addf %79, %80 : vector<1x32xf32>
    %82 = math.tanh %81 : vector<1x32xf32>
    %83 = arith.truncf %82 : vector<1x32xf32> to vector<1x32xbf16>
    %c0_66 = arith.constant 0 : index
    %c2 = arith.constant 2 : index
    %84 = vector.load %arg1[%c0_66, %c2] : memref<1x8xf32, #tpu.memory_space<vmem>>, vector<1x1xf32>
    %85 = arith.extf %83 : vector<1x32xbf16> to vector<1x32xf32>
    %c0_67 = arith.constant 0 : index
    %c0_68 = arith.constant 0 : index
    %86 = vector.load %arg12[%c0_67, %c0_68] : memref<1x32xf32, #tpu.memory_space<vmem>>, vector<1x32xf32>
    %87 = arith.mulf %85, %86 : vector<1x32xf32>
    %cst_69 = arith.constant dense<0.000000e+00> : vector<1xf32>
    %88 = vector.multi_reduction <add>, %87, %cst_69 [1] : vector<1x32xf32> to vector<1xf32>
    %89 = vector.shape_cast %88 : vector<1xf32> to vector<1x1xf32>
    %c0_70 = arith.constant 0 : index
    %c0_71 = arith.constant 0 : index
    %90 = vector.load %arg13[%c0_70, %c0_71] : memref<1x1xf32, #tpu.memory_space<vmem>>, vector<1x1xf32>
    %91 = arith.mulf %84, %90 : vector<1x1xf32>
    %92 = arith.addf %89, %91 : vector<1x1xf32>
    %c0_72 = arith.constant 0 : index
    %c0_73 = arith.constant 0 : index
    %93 = vector.load %arg14[%c0_72, %c0_73] : memref<1x1xf32, #tpu.memory_space<vmem>>, vector<1x1xf32>
    %94 = arith.addf %92, %93 : vector<1x1xf32>
    %c0_74 = arith.constant 0 : index
    %c2_75 = arith.constant 2 : index
    %95 = vector.load %arg15[%c0_74, %c2_75] : memref<1x8xf32, #tpu.memory_space<vmem>>, vector<1x1xf32>
    tpu.vector_store %arg15[%c0_74, %c2_75], %94 {strides = array<i32>} : memref<1x8xf32, #tpu.memory_space<vmem>>, vector<1x1xf32>,
    %c0_76 = arith.constant 0 : index
    %c0_77 = arith.constant 0 : index
    %96 = vector.load %arg3[%c0_76, %c0_77] : memref<32x128xbf16, #tpu.memory_space<vmem>>, vector<32x128xbf16>
    %cst_78 = arith.constant dense<0.000000e+00> : vector<1x128xf32>
    %97 = tpu.matmul %83, %96, %cst_78 {dimension_numbers = #tpu.dot_dimension_numbers<[1], [0], [0], [1], [0, 0, 1, 1], [], []>} : vector<1x32xbf16>, vector<32x128xbf16>, vector<1x128xf32> -> vector<1x128xf32>
    %c0_79 = arith.constant 0 : index
    %c0_80 = arith.constant 0 : index
    %98 = vector.load %arg4[%c0_79, %c0_80] : memref<1x128xf32, #tpu.memory_space<vmem>>, vector<1x128xf32>
    %99 = vector.broadcast %84 : vector<1x1xf32> to vector<1x128xf32>
    %100 = arith.mulf %99, %98 : vector<1x128xf32>
    %101 = arith.addf %97, %100 : vector<1x128xf32>
    %c0_81 = arith.constant 0 : index
    %c0_82 = arith.constant 0 : index
    %102 = vector.load %arg5[%c0_81, %c0_82] : memref<1x128xf32, #tpu.memory_space<vmem>>, vector<1x128xf32>
    %103 = arith.addf %101, %102 : vector<1x128xf32>
    %104 = math.tanh %103 : vector<1x128xf32>
    %105 = arith.truncf %104 : vector<1x128xf32> to vector<1x128xbf16>
    %c0_83 = arith.constant 0 : index
    %c0_84 = arith.constant 0 : index
    %106 = vector.load %arg6[%c0_83, %c0_84] : memref<128x256xbf16, #tpu.memory_space<vmem>>, vector<128x256xbf16>
    %cst_85 = arith.constant dense<0.000000e+00> : vector<1x256xf32>
    %107 = tpu.matmul %105, %106, %cst_85 {dimension_numbers = #tpu.dot_dimension_numbers<[1], [0], [0], [1], [0, 0, 1, 1], [], []>} : vector<1x128xbf16>, vector<128x256xbf16>, vector<1x256xf32> -> vector<1x256xf32>
    %c0_86 = arith.constant 0 : index
    %c0_87 = arith.constant 0 : index
    %108 = vector.load %arg7[%c0_86, %c0_87] : memref<1x256xf32, #tpu.memory_space<vmem>>, vector<1x256xf32>
    %109 = arith.addf %107, %108 : vector<1x256xf32>
    %110 = math.tanh %109 : vector<1x256xf32>
    %111 = arith.truncf %110 : vector<1x256xf32> to vector<1x256xbf16>
    %c0_88 = arith.constant 0 : index
    %c0_89 = arith.constant 0 : index
    %112 = vector.load %arg8[%c0_88, %c0_89] : memref<256x128xbf16, #tpu.memory_space<vmem>>, vector<256x128xbf16>
    %cst_90 = arith.constant dense<0.000000e+00> : vector<1x128xf32>
    %113 = tpu.matmul %111, %112, %cst_90 {dimension_numbers = #tpu.dot_dimension_numbers<[1], [0], [0], [1], [0, 0, 1, 1], [], []>} : vector<1x256xbf16>, vector<256x128xbf16>, vector<1x128xf32> -> vector<1x128xf32>
    %c0_91 = arith.constant 0 : index
    %c0_92 = arith.constant 0 : index
    %114 = vector.load %arg9[%c0_91, %c0_92] : memref<1x128xf32, #tpu.memory_space<vmem>>, vector<1x128xf32>
    %115 = arith.addf %113, %114 : vector<1x128xf32>
    %116 = math.tanh %115 : vector<1x128xf32>
    %117 = arith.truncf %116 : vector<1x128xf32> to vector<1x128xbf16>
    %c0_93 = arith.constant 0 : index
    %c0_94 = arith.constant 0 : index
    %118 = vector.load %arg10[%c0_93, %c0_94] : memref<128x32xbf16, #tpu.memory_space<vmem>>, vector<128x32xbf16>
    %cst_95 = arith.constant dense<0.000000e+00> : vector<1x32xf32>
    %119 = tpu.matmul %117, %118, %cst_95 {dimension_numbers = #tpu.dot_dimension_numbers<[1], [0], [0], [1], [0, 0, 1, 1], [], []>} : vector<1x128xbf16>, vector<128x32xbf16>, vector<1x32xf32> -> vector<1x32xf32>
    %c0_96 = arith.constant 0 : index
    %c0_97 = arith.constant 0 : index
    %120 = vector.load %arg11[%c0_96, %c0_97] : memref<1x32xf32, #tpu.memory_space<vmem>>, vector<1x32xf32>
    %121 = arith.addf %119, %120 : vector<1x32xf32>
    %122 = math.tanh %121 : vector<1x32xf32>
    %123 = arith.truncf %122 : vector<1x32xf32> to vector<1x32xbf16>
    %c0_98 = arith.constant 0 : index
    %c3 = arith.constant 3 : index
    %124 = vector.load %arg1[%c0_98, %c3] : memref<1x8xf32, #tpu.memory_space<vmem>>, vector<1x1xf32>
    %125 = arith.extf %123 : vector<1x32xbf16> to vector<1x32xf32>
    %c0_99 = arith.constant 0 : index
    %c0_100 = arith.constant 0 : index
    %126 = vector.load %arg12[%c0_99, %c0_100] : memref<1x32xf32, #tpu.memory_space<vmem>>, vector<1x32xf32>
    %127 = arith.mulf %125, %126 : vector<1x32xf32>
    %cst_101 = arith.constant dense<0.000000e+00> : vector<1xf32>
    %128 = vector.multi_reduction <add>, %127, %cst_101 [1] : vector<1x32xf32> to vector<1xf32>
    %129 = vector.shape_cast %128 : vector<1xf32> to vector<1x1xf32>
    %c0_102 = arith.constant 0 : index
    %c0_103 = arith.constant 0 : index
    %130 = vector.load %arg13[%c0_102, %c0_103] : memref<1x1xf32, #tpu.memory_space<vmem>>, vector<1x1xf32>
    %131 = arith.mulf %124, %130 : vector<1x1xf32>
    %132 = arith.addf %129, %131 : vector<1x1xf32>
    %c0_104 = arith.constant 0 : index
    %c0_105 = arith.constant 0 : index
    %133 = vector.load %arg14[%c0_104, %c0_105] : memref<1x1xf32, #tpu.memory_space<vmem>>, vector<1x1xf32>
    %134 = arith.addf %132, %133 : vector<1x1xf32>
    %c0_106 = arith.constant 0 : index
    %c3_107 = arith.constant 3 : index
    %135 = vector.load %arg15[%c0_106, %c3_107] : memref<1x8xf32, #tpu.memory_space<vmem>>, vector<1x1xf32>
    tpu.vector_store %arg15[%c0_106, %c3_107], %134 {strides = array<i32>} : memref<1x8xf32, #tpu.memory_space<vmem>>, vector<1x1xf32>,
    %c0_108 = arith.constant 0 : index
    %c0_109 = arith.constant 0 : index
    %136 = vector.load %arg3[%c0_108, %c0_109] : memref<32x128xbf16, #tpu.memory_space<vmem>>, vector<32x128xbf16>
    %cst_110 = arith.constant dense<0.000000e+00> : vector<1x128xf32>
    %137 = tpu.matmul %123, %136, %cst_110 {dimension_numbers = #tpu.dot_dimension_numbers<[1], [0], [0], [1], [0, 0, 1, 1], [], []>} : vector<1x32xbf16>, vector<32x128xbf16>, vector<1x128xf32> -> vector<1x128xf32>
    %c0_111 = arith.constant 0 : index
    %c0_112 = arith.constant 0 : index
    %138 = vector.load %arg4[%c0_111, %c0_112] : memref<1x128xf32, #tpu.memory_space<vmem>>, vector<1x128xf32>
    %139 = vector.broadcast %124 : vector<1x1xf32> to vector<1x128xf32>
    %140 = arith.mulf %139, %138 : vector<1x128xf32>
    %141 = arith.addf %137, %140 : vector<1x128xf32>
    %c0_113 = arith.constant 0 : index
    %c0_114 = arith.constant 0 : index
    %142 = vector.load %arg5[%c0_113, %c0_114] : memref<1x128xf32, #tpu.memory_space<vmem>>, vector<1x128xf32>
    %143 = arith.addf %141, %142 : vector<1x128xf32>
    %144 = math.tanh %143 : vector<1x128xf32>
    %145 = arith.truncf %144 : vector<1x128xf32> to vector<1x128xbf16>
    %c0_115 = arith.constant 0 : index
    %c0_116 = arith.constant 0 : index
    %146 = vector.load %arg6[%c0_115, %c0_116] : memref<128x256xbf16, #tpu.memory_space<vmem>>, vector<128x256xbf16>
    %cst_117 = arith.constant dense<0.000000e+00> : vector<1x256xf32>
    %147 = tpu.matmul %145, %146, %cst_117 {dimension_numbers = #tpu.dot_dimension_numbers<[1], [0], [0], [1], [0, 0, 1, 1], [], []>} : vector<1x128xbf16>, vector<128x256xbf16>, vector<1x256xf32> -> vector<1x256xf32>
    %c0_118 = arith.constant 0 : index
    %c0_119 = arith.constant 0 : index
    %148 = vector.load %arg7[%c0_118, %c0_119] : memref<1x256xf32, #tpu.memory_space<vmem>>, vector<1x256xf32>
    %149 = arith.addf %147, %148 : vector<1x256xf32>
    %150 = math.tanh %149 : vector<1x256xf32>
    %151 = arith.truncf %150 : vector<1x256xf32> to vector<1x256xbf16>
    %c0_120 = arith.constant 0 : index
    %c0_121 = arith.constant 0 : index
    %152 = vector.load %arg8[%c0_120, %c0_121] : memref<256x128xbf16, #tpu.memory_space<vmem>>, vector<256x128xbf16>
    %cst_122 = arith.constant dense<0.000000e+00> : vector<1x128xf32>
    %153 = tpu.matmul %151, %152, %cst_122 {dimension_numbers = #tpu.dot_dimension_numbers<[1], [0], [0], [1], [0, 0, 1, 1], [], []>} : vector<1x256xbf16>, vector<256x128xbf16>, vector<1x128xf32> -> vector<1x128xf32>
    %c0_123 = arith.constant 0 : index
    %c0_124 = arith.constant 0 : index
    %154 = vector.load %arg9[%c0_123, %c0_124] : memref<1x128xf32, #tpu.memory_space<vmem>>, vector<1x128xf32>
    %155 = arith.addf %153, %154 : vector<1x128xf32>
    %156 = math.tanh %155 : vector<1x128xf32>
    %157 = arith.truncf %156 : vector<1x128xf32> to vector<1x128xbf16>
    %c0_125 = arith.constant 0 : index
    %c0_126 = arith.constant 0 : index
    %158 = vector.load %arg10[%c0_125, %c0_126] : memref<128x32xbf16, #tpu.memory_space<vmem>>, vector<128x32xbf16>
    %cst_127 = arith.constant dense<0.000000e+00> : vector<1x32xf32>
    %159 = tpu.matmul %157, %158, %cst_127 {dimension_numbers = #tpu.dot_dimension_numbers<[1], [0], [0], [1], [0, 0, 1, 1], [], []>} : vector<1x128xbf16>, vector<128x32xbf16>, vector<1x32xf32> -> vector<1x32xf32>
    %c0_128 = arith.constant 0 : index
    %c0_129 = arith.constant 0 : index
    %160 = vector.load %arg11[%c0_128, %c0_129] : memref<1x32xf32, #tpu.memory_space<vmem>>, vector<1x32xf32>
    %161 = arith.addf %159, %160 : vector<1x32xf32>
    %162 = math.tanh %161 : vector<1x32xf32>
    %163 = arith.truncf %162 : vector<1x32xf32> to vector<1x32xbf16>
    %c0_130 = arith.constant 0 : index
    %c4 = arith.constant 4 : index
    %164 = vector.load %arg1[%c0_130, %c4] : memref<1x8xf32, #tpu.memory_space<vmem>>, vector<1x1xf32>
    %165 = arith.extf %163 : vector<1x32xbf16> to vector<1x32xf32>
    %c0_131 = arith.constant 0 : index
    %c0_132 = arith.constant 0 : index
    %166 = vector.load %arg12[%c0_131, %c0_132] : memref<1x32xf32, #tpu.memory_space<vmem>>, vector<1x32xf32>
    %167 = arith.mulf %165, %166 : vector<1x32xf32>
    %cst_133 = arith.constant dense<0.000000e+00> : vector<1xf32>
    %168 = vector.multi_reduction <add>, %167, %cst_133 [1] : vector<1x32xf32> to vector<1xf32>
    %169 = vector.shape_cast %168 : vector<1xf32> to vector<1x1xf32>
    %c0_134 = arith.constant 0 : index
    %c0_135 = arith.constant 0 : index
    %170 = vector.load %arg13[%c0_134, %c0_135] : memref<1x1xf32, #tpu.memory_space<vmem>>, vector<1x1xf32>
    %171 = arith.mulf %164, %170 : vector<1x1xf32>
    %172 = arith.addf %169, %171 : vector<1x1xf32>
    %c0_136 = arith.constant 0 : index
    %c0_137 = arith.constant 0 : index
    %173 = vector.load %arg14[%c0_136, %c0_137] : memref<1x1xf32, #tpu.memory_space<vmem>>, vector<1x1xf32>
    %174 = arith.addf %172, %173 : vector<1x1xf32>
    %c0_138 = arith.constant 0 : index
    %c4_139 = arith.constant 4 : index
    %175 = vector.load %arg15[%c0_138, %c4_139] : memref<1x8xf32, #tpu.memory_space<vmem>>, vector<1x1xf32>
    tpu.vector_store %arg15[%c0_138, %c4_139], %174 {strides = array<i32>} : memref<1x8xf32, #tpu.memory_space<vmem>>, vector<1x1xf32>,
    %c0_140 = arith.constant 0 : index
    %c0_141 = arith.constant 0 : index
    %176 = vector.load %arg3[%c0_140, %c0_141] : memref<32x128xbf16, #tpu.memory_space<vmem>>, vector<32x128xbf16>
    %cst_142 = arith.constant dense<0.000000e+00> : vector<1x128xf32>
    %177 = tpu.matmul %163, %176, %cst_142 {dimension_numbers = #tpu.dot_dimension_numbers<[1], [0], [0], [1], [0, 0, 1, 1], [], []>} : vector<1x32xbf16>, vector<32x128xbf16>, vector<1x128xf32> -> vector<1x128xf32>
    %c0_143 = arith.constant 0 : index
    %c0_144 = arith.constant 0 : index
    %178 = vector.load %arg4[%c0_143, %c0_144] : memref<1x128xf32, #tpu.memory_space<vmem>>, vector<1x128xf32>
    %179 = vector.broadcast %164 : vector<1x1xf32> to vector<1x128xf32>
    %180 = arith.mulf %179, %178 : vector<1x128xf32>
    %181 = arith.addf %177, %180 : vector<1x128xf32>
    %c0_145 = arith.constant 0 : index
    %c0_146 = arith.constant 0 : index
    %182 = vector.load %arg5[%c0_145, %c0_146] : memref<1x128xf32, #tpu.memory_space<vmem>>, vector<1x128xf32>
    %183 = arith.addf %181, %182 : vector<1x128xf32>
    %184 = math.tanh %183 : vector<1x128xf32>
    %185 = arith.truncf %184 : vector<1x128xf32> to vector<1x128xbf16>
    %c0_147 = arith.constant 0 : index
    %c0_148 = arith.constant 0 : index
    %186 = vector.load %arg6[%c0_147, %c0_148] : memref<128x256xbf16, #tpu.memory_space<vmem>>, vector<128x256xbf16>
    %cst_149 = arith.constant dense<0.000000e+00> : vector<1x256xf32>
    %187 = tpu.matmul %185, %186, %cst_149 {dimension_numbers = #tpu.dot_dimension_numbers<[1], [0], [0], [1], [0, 0, 1, 1], [], []>} : vector<1x128xbf16>, vector<128x256xbf16>, vector<1x256xf32> -> vector<1x256xf32>
    %c0_150 = arith.constant 0 : index
    %c0_151 = arith.constant 0 : index
    %188 = vector.load %arg7[%c0_150, %c0_151] : memref<1x256xf32, #tpu.memory_space<vmem>>, vector<1x256xf32>
    %189 = arith.addf %187, %188 : vector<1x256xf32>
    %190 = math.tanh %189 : vector<1x256xf32>
    %191 = arith.truncf %190 : vector<1x256xf32> to vector<1x256xbf16>
    %c0_152 = arith.constant 0 : index
    %c0_153 = arith.constant 0 : index
    %192 = vector.load %arg8[%c0_152, %c0_153] : memref<256x128xbf16, #tpu.memory_space<vmem>>, vector<256x128xbf16>
    %cst_154 = arith.constant dense<0.000000e+00> : vector<1x128xf32>
    %193 = tpu.matmul %191, %192, %cst_154 {dimension_numbers = #tpu.dot_dimension_numbers<[1], [0], [0], [1], [0, 0, 1, 1], [], []>} : vector<1x256xbf16>, vector<256x128xbf16>, vector<1x128xf32> -> vector<1x128xf32>
    %c0_155 = arith.constant 0 : index
    %c0_156 = arith.constant 0 : index
    %194 = vector.load %arg9[%c0_155, %c0_156] : memref<1x128xf32, #tpu.memory_space<vmem>>, vector<1x128xf32>
    %195 = arith.addf %193, %194 : vector<1x128xf32>
    %196 = math.tanh %195 : vector<1x128xf32>
    %197 = arith.truncf %196 : vector<1x128xf32> to vector<1x128xbf16>
    %c0_157 = arith.constant 0 : index
    %c0_158 = arith.constant 0 : index
    %198 = vector.load %arg10[%c0_157, %c0_158] : memref<128x32xbf16, #tpu.memory_space<vmem>>, vector<128x32xbf16>
    %cst_159 = arith.constant dense<0.000000e+00> : vector<1x32xf32>
    %199 = tpu.matmul %197, %198, %cst_159 {dimension_numbers = #tpu.dot_dimension_numbers<[1], [0], [0], [1], [0, 0, 1, 1], [], []>} : vector<1x128xbf16>, vector<128x32xbf16>, vector<1x32xf32> -> vector<1x32xf32>
    %c0_160 = arith.constant 0 : index
    %c0_161 = arith.constant 0 : index
    %200 = vector.load %arg11[%c0_160, %c0_161] : memref<1x32xf32, #tpu.memory_space<vmem>>, vector<1x32xf32>
    %201 = arith.addf %199, %200 : vector<1x32xf32>
    %202 = math.tanh %201 : vector<1x32xf32>
    %203 = arith.truncf %202 : vector<1x32xf32> to vector<1x32xbf16>
    %c0_162 = arith.constant 0 : index
    %c5 = arith.constant 5 : index
    %204 = vector.load %arg1[%c0_162, %c5] : memref<1x8xf32, #tpu.memory_space<vmem>>, vector<1x1xf32>
    %205 = arith.extf %203 : vector<1x32xbf16> to vector<1x32xf32>
    %c0_163 = arith.constant 0 : index
    %c0_164 = arith.constant 0 : index
    %206 = vector.load %arg12[%c0_163, %c0_164] : memref<1x32xf32, #tpu.memory_space<vmem>>, vector<1x32xf32>
    %207 = arith.mulf %205, %206 : vector<1x32xf32>
    %cst_165 = arith.constant dense<0.000000e+00> : vector<1xf32>
    %208 = vector.multi_reduction <add>, %207, %cst_165 [1] : vector<1x32xf32> to vector<1xf32>
    %209 = vector.shape_cast %208 : vector<1xf32> to vector<1x1xf32>
    %c0_166 = arith.constant 0 : index
    %c0_167 = arith.constant 0 : index
    %210 = vector.load %arg13[%c0_166, %c0_167] : memref<1x1xf32, #tpu.memory_space<vmem>>, vector<1x1xf32>
    %211 = arith.mulf %204, %210 : vector<1x1xf32>
    %212 = arith.addf %209, %211 : vector<1x1xf32>
    %c0_168 = arith.constant 0 : index
    %c0_169 = arith.constant 0 : index
    %213 = vector.load %arg14[%c0_168, %c0_169] : memref<1x1xf32, #tpu.memory_space<vmem>>, vector<1x1xf32>
    %214 = arith.addf %212, %213 : vector<1x1xf32>
    %c0_170 = arith.constant 0 : index
    %c5_171 = arith.constant 5 : index
    %215 = vector.load %arg15[%c0_170, %c5_171] : memref<1x8xf32, #tpu.memory_space<vmem>>, vector<1x1xf32>
    tpu.vector_store %arg15[%c0_170, %c5_171], %214 {strides = array<i32>} : memref<1x8xf32, #tpu.memory_space<vmem>>, vector<1x1xf32>,
    %c0_172 = arith.constant 0 : index
    %c0_173 = arith.constant 0 : index
    %216 = vector.load %arg3[%c0_172, %c0_173] : memref<32x128xbf16, #tpu.memory_space<vmem>>, vector<32x128xbf16>
    %cst_174 = arith.constant dense<0.000000e+00> : vector<1x128xf32>
    %217 = tpu.matmul %203, %216, %cst_174 {dimension_numbers = #tpu.dot_dimension_numbers<[1], [0], [0], [1], [0, 0, 1, 1], [], []>} : vector<1x32xbf16>, vector<32x128xbf16>, vector<1x128xf32> -> vector<1x128xf32>
    %c0_175 = arith.constant 0 : index
    %c0_176 = arith.constant 0 : index
    %218 = vector.load %arg4[%c0_175, %c0_176] : memref<1x128xf32, #tpu.memory_space<vmem>>, vector<1x128xf32>
    %219 = vector.broadcast %204 : vector<1x1xf32> to vector<1x128xf32>
    %220 = arith.mulf %219, %218 : vector<1x128xf32>
    %221 = arith.addf %217, %220 : vector<1x128xf32>
    %c0_177 = arith.constant 0 : index
    %c0_178 = arith.constant 0 : index
    %222 = vector.load %arg5[%c0_177, %c0_178] : memref<1x128xf32, #tpu.memory_space<vmem>>, vector<1x128xf32>
    %223 = arith.addf %221, %222 : vector<1x128xf32>
    %224 = math.tanh %223 : vector<1x128xf32>
    %225 = arith.truncf %224 : vector<1x128xf32> to vector<1x128xbf16>
    %c0_179 = arith.constant 0 : index
    %c0_180 = arith.constant 0 : index
    %226 = vector.load %arg6[%c0_179, %c0_180] : memref<128x256xbf16, #tpu.memory_space<vmem>>, vector<128x256xbf16>
    %cst_181 = arith.constant dense<0.000000e+00> : vector<1x256xf32>
    %227 = tpu.matmul %225, %226, %cst_181 {dimension_numbers = #tpu.dot_dimension_numbers<[1], [0], [0], [1], [0, 0, 1, 1], [], []>} : vector<1x128xbf16>, vector<128x256xbf16>, vector<1x256xf32> -> vector<1x256xf32>
    %c0_182 = arith.constant 0 : index
    %c0_183 = arith.constant 0 : index
    %228 = vector.load %arg7[%c0_182, %c0_183] : memref<1x256xf32, #tpu.memory_space<vmem>>, vector<1x256xf32>
    %229 = arith.addf %227, %228 : vector<1x256xf32>
    %230 = math.tanh %229 : vector<1x256xf32>
    %231 = arith.truncf %230 : vector<1x256xf32> to vector<1x256xbf16>
    %c0_184 = arith.constant 0 : index
    %c0_185 = arith.constant 0 : index
    %232 = vector.load %arg8[%c0_184, %c0_185] : memref<256x128xbf16, #tpu.memory_space<vmem>>, vector<256x128xbf16>
    %cst_186 = arith.constant dense<0.000000e+00> : vector<1x128xf32>
    %233 = tpu.matmul %231, %232, %cst_186 {dimension_numbers = #tpu.dot_dimension_numbers<[1], [0], [0], [1], [0, 0, 1, 1], [], []>} : vector<1x256xbf16>, vector<256x128xbf16>, vector<1x128xf32> -> vector<1x128xf32>
    %c0_187 = arith.constant 0 : index
    %c0_188 = arith.constant 0 : index
    %234 = vector.load %arg9[%c0_187, %c0_188] : memref<1x128xf32, #tpu.memory_space<vmem>>, vector<1x128xf32>
    %235 = arith.addf %233, %234 : vector<1x128xf32>
    %236 = math.tanh %235 : vector<1x128xf32>
    %237 = arith.truncf %236 : vector<1x128xf32> to vector<1x128xbf16>
    %c0_189 = arith.constant 0 : index
    %c0_190 = arith.constant 0 : index
    %238 = vector.load %arg10[%c0_189, %c0_190] : memref<128x32xbf16, #tpu.memory_space<vmem>>, vector<128x32xbf16>
    %cst_191 = arith.constant dense<0.000000e+00> : vector<1x32xf32>
    %239 = tpu.matmul %237, %238, %cst_191 {dimension_numbers = #tpu.dot_dimension_numbers<[1], [0], [0], [1], [0, 0, 1, 1], [], []>} : vector<1x128xbf16>, vector<128x32xbf16>, vector<1x32xf32> -> vector<1x32xf32>
    %c0_192 = arith.constant 0 : index
    %c0_193 = arith.constant 0 : index
    %240 = vector.load %arg11[%c0_192, %c0_193] : memref<1x32xf32, #tpu.memory_space<vmem>>, vector<1x32xf32>
    %241 = arith.addf %239, %240 : vector<1x32xf32>
    %242 = math.tanh %241 : vector<1x32xf32>
    %243 = arith.truncf %242 : vector<1x32xf32> to vector<1x32xbf16>
    %c0_194 = arith.constant 0 : index
    %c6 = arith.constant 6 : index
    %244 = vector.load %arg1[%c0_194, %c6] : memref<1x8xf32, #tpu.memory_space<vmem>>, vector<1x1xf32>
    %245 = arith.extf %243 : vector<1x32xbf16> to vector<1x32xf32>
    %c0_195 = arith.constant 0 : index
    %c0_196 = arith.constant 0 : index
    %246 = vector.load %arg12[%c0_195, %c0_196] : memref<1x32xf32, #tpu.memory_space<vmem>>, vector<1x32xf32>
    %247 = arith.mulf %245, %246 : vector<1x32xf32>
    %cst_197 = arith.constant dense<0.000000e+00> : vector<1xf32>
    %248 = vector.multi_reduction <add>, %247, %cst_197 [1] : vector<1x32xf32> to vector<1xf32>
    %249 = vector.shape_cast %248 : vector<1xf32> to vector<1x1xf32>
    %c0_198 = arith.constant 0 : index
    %c0_199 = arith.constant 0 : index
    %250 = vector.load %arg13[%c0_198, %c0_199] : memref<1x1xf32, #tpu.memory_space<vmem>>, vector<1x1xf32>
    %251 = arith.mulf %244, %250 : vector<1x1xf32>
    %252 = arith.addf %249, %251 : vector<1x1xf32>
    %c0_200 = arith.constant 0 : index
    %c0_201 = arith.constant 0 : index
    %253 = vector.load %arg14[%c0_200, %c0_201] : memref<1x1xf32, #tpu.memory_space<vmem>>, vector<1x1xf32>
    %254 = arith.addf %252, %253 : vector<1x1xf32>
    %c0_202 = arith.constant 0 : index
    %c6_203 = arith.constant 6 : index
    %255 = vector.load %arg15[%c0_202, %c6_203] : memref<1x8xf32, #tpu.memory_space<vmem>>, vector<1x1xf32>
    tpu.vector_store %arg15[%c0_202, %c6_203], %254 {strides = array<i32>} : memref<1x8xf32, #tpu.memory_space<vmem>>, vector<1x1xf32>,
    %c0_204 = arith.constant 0 : index
    %c0_205 = arith.constant 0 : index
    %256 = vector.load %arg3[%c0_204, %c0_205] : memref<32x128xbf16, #tpu.memory_space<vmem>>, vector<32x128xbf16>
    %cst_206 = arith.constant dense<0.000000e+00> : vector<1x128xf32>
    %257 = tpu.matmul %243, %256, %cst_206 {dimension_numbers = #tpu.dot_dimension_numbers<[1], [0], [0], [1], [0, 0, 1, 1], [], []>} : vector<1x32xbf16>, vector<32x128xbf16>, vector<1x128xf32> -> vector<1x128xf32>
    %c0_207 = arith.constant 0 : index
    %c0_208 = arith.constant 0 : index
    %258 = vector.load %arg4[%c0_207, %c0_208] : memref<1x128xf32, #tpu.memory_space<vmem>>, vector<1x128xf32>
    %259 = vector.broadcast %244 : vector<1x1xf32> to vector<1x128xf32>
    %260 = arith.mulf %259, %258 : vector<1x128xf32>
    %261 = arith.addf %257, %260 : vector<1x128xf32>
    %c0_209 = arith.constant 0 : index
    %c0_210 = arith.constant 0 : index
    %262 = vector.load %arg5[%c0_209, %c0_210] : memref<1x128xf32, #tpu.memory_space<vmem>>, vector<1x128xf32>
    %263 = arith.addf %261, %262 : vector<1x128xf32>
    %264 = math.tanh %263 : vector<1x128xf32>
    %265 = arith.truncf %264 : vector<1x128xf32> to vector<1x128xbf16>
    %c0_211 = arith.constant 0 : index
    %c0_212 = arith.constant 0 : index
    %266 = vector.load %arg6[%c0_211, %c0_212] : memref<128x256xbf16, #tpu.memory_space<vmem>>, vector<128x256xbf16>
    %cst_213 = arith.constant dense<0.000000e+00> : vector<1x256xf32>
    %267 = tpu.matmul %265, %266, %cst_213 {dimension_numbers = #tpu.dot_dimension_numbers<[1], [0], [0], [1], [0, 0, 1, 1], [], []>} : vector<1x128xbf16>, vector<128x256xbf16>, vector<1x256xf32> -> vector<1x256xf32>
    %c0_214 = arith.constant 0 : index
    %c0_215 = arith.constant 0 : index
    %268 = vector.load %arg7[%c0_214, %c0_215] : memref<1x256xf32, #tpu.memory_space<vmem>>, vector<1x256xf32>
    %269 = arith.addf %267, %268 : vector<1x256xf32>
    %270 = math.tanh %269 : vector<1x256xf32>
    %271 = arith.truncf %270 : vector<1x256xf32> to vector<1x256xbf16>
    %c0_216 = arith.constant 0 : index
    %c0_217 = arith.constant 0 : index
    %272 = vector.load %arg8[%c0_216, %c0_217] : memref<256x128xbf16, #tpu.memory_space<vmem>>, vector<256x128xbf16>
    %cst_218 = arith.constant dense<0.000000e+00> : vector<1x128xf32>
    %273 = tpu.matmul %271, %272, %cst_218 {dimension_numbers = #tpu.dot_dimension_numbers<[1], [0], [0], [1], [0, 0, 1, 1], [], []>} : vector<1x256xbf16>, vector<256x128xbf16>, vector<1x128xf32> -> vector<1x128xf32>
    %c0_219 = arith.constant 0 : index
    %c0_220 = arith.constant 0 : index
    %274 = vector.load %arg9[%c0_219, %c0_220] : memref<1x128xf32, #tpu.memory_space<vmem>>, vector<1x128xf32>
    %275 = arith.addf %273, %274 : vector<1x128xf32>
    %276 = math.tanh %275 : vector<1x128xf32>
    %277 = arith.truncf %276 : vector<1x128xf32> to vector<1x128xbf16>
    %c0_221 = arith.constant 0 : index
    %c0_222 = arith.constant 0 : index
    %278 = vector.load %arg10[%c0_221, %c0_222] : memref<128x32xbf16, #tpu.memory_space<vmem>>, vector<128x32xbf16>
    %cst_223 = arith.constant dense<0.000000e+00> : vector<1x32xf32>
    %279 = tpu.matmul %277, %278, %cst_223 {dimension_numbers = #tpu.dot_dimension_numbers<[1], [0], [0], [1], [0, 0, 1, 1], [], []>} : vector<1x128xbf16>, vector<128x32xbf16>, vector<1x32xf32> -> vector<1x32xf32>
    %c0_224 = arith.constant 0 : index
    %c0_225 = arith.constant 0 : index
    %280 = vector.load %arg11[%c0_224, %c0_225] : memref<1x32xf32, #tpu.memory_space<vmem>>, vector<1x32xf32>
    %281 = arith.addf %279, %280 : vector<1x32xf32>
    %282 = math.tanh %281 : vector<1x32xf32>
    %283 = arith.truncf %282 : vector<1x32xf32> to vector<1x32xbf16>
    %c0_226 = arith.constant 0 : index
    %c7 = arith.constant 7 : index
    %284 = vector.load %arg1[%c0_226, %c7] : memref<1x8xf32, #tpu.memory_space<vmem>>, vector<1x1xf32>
    %285 = arith.extf %283 : vector<1x32xbf16> to vector<1x32xf32>
    %c0_227 = arith.constant 0 : index
    %c0_228 = arith.constant 0 : index
    %286 = vector.load %arg12[%c0_227, %c0_228] : memref<1x32xf32, #tpu.memory_space<vmem>>, vector<1x32xf32>
    %287 = arith.mulf %285, %286 : vector<1x32xf32>
    %cst_229 = arith.constant dense<0.000000e+00> : vector<1xf32>
    %288 = vector.multi_reduction <add>, %287, %cst_229 [1] : vector<1x32xf32> to vector<1xf32>
    %289 = vector.shape_cast %288 : vector<1xf32> to vector<1x1xf32>
    %c0_230 = arith.constant 0 : index
    %c0_231 = arith.constant 0 : index
    %290 = vector.load %arg13[%c0_230, %c0_231] : memref<1x1xf32, #tpu.memory_space<vmem>>, vector<1x1xf32>
    %291 = arith.mulf %284, %290 : vector<1x1xf32>
    %292 = arith.addf %289, %291 : vector<1x1xf32>
    %c0_232 = arith.constant 0 : index
    %c0_233 = arith.constant 0 : index
    %293 = vector.load %arg14[%c0_232, %c0_233] : memref<1x1xf32, #tpu.memory_space<vmem>>, vector<1x1xf32>
    %294 = arith.addf %292, %293 : vector<1x1xf32>
    %c0_234 = arith.constant 0 : index
    %c7_235 = arith.constant 7 : index
    %295 = vector.load %arg15[%c0_234, %c7_235] : memref<1x8xf32, #tpu.memory_space<vmem>>, vector<1x1xf32>
    tpu.vector_store %arg15[%c0_234, %c7_235], %294 {strides = array<i32>} : memref<1x8xf32, #tpu.memory_space<vmem>>, vector<1x1xf32>,
    %c0_236 = arith.constant 0 : index
    %c0_237 = arith.constant 0 : index
    %296 = vector.load %arg3[%c0_236, %c0_237] : memref<32x128xbf16, #tpu.memory_space<vmem>>, vector<32x128xbf16>
    %cst_238 = arith.constant dense<0.000000e+00> : vector<1x128xf32>
    %297 = tpu.matmul %283, %296, %cst_238 {dimension_numbers = #tpu.dot_dimension_numbers<[1], [0], [0], [1], [0, 0, 1, 1], [], []>} : vector<1x32xbf16>, vector<32x128xbf16>, vector<1x128xf32> -> vector<1x128xf32>
    %c0_239 = arith.constant 0 : index
    %c0_240 = arith.constant 0 : index
    %298 = vector.load %arg4[%c0_239, %c0_240] : memref<1x128xf32, #tpu.memory_space<vmem>>, vector<1x128xf32>
    %299 = vector.broadcast %284 : vector<1x1xf32> to vector<1x128xf32>
    %300 = arith.mulf %299, %298 : vector<1x128xf32>
    %301 = arith.addf %297, %300 : vector<1x128xf32>
    %c0_241 = arith.constant 0 : index
    %c0_242 = arith.constant 0 : index
    %302 = vector.load %arg5[%c0_241, %c0_242] : memref<1x128xf32, #tpu.memory_space<vmem>>, vector<1x128xf32>
    %303 = arith.addf %301, %302 : vector<1x128xf32>
    %304 = math.tanh %303 : vector<1x128xf32>
    %305 = arith.truncf %304 : vector<1x128xf32> to vector<1x128xbf16>
    %c0_243 = arith.constant 0 : index
    %c0_244 = arith.constant 0 : index
    %306 = vector.load %arg6[%c0_243, %c0_244] : memref<128x256xbf16, #tpu.memory_space<vmem>>, vector<128x256xbf16>
    %cst_245 = arith.constant dense<0.000000e+00> : vector<1x256xf32>
    %307 = tpu.matmul %305, %306, %cst_245 {dimension_numbers = #tpu.dot_dimension_numbers<[1], [0], [0], [1], [0, 0, 1, 1], [], []>} : vector<1x128xbf16>, vector<128x256xbf16>, vector<1x256xf32> -> vector<1x256xf32>
    %c0_246 = arith.constant 0 : index
    %c0_247 = arith.constant 0 : index
    %308 = vector.load %arg7[%c0_246, %c0_247] : memref<1x256xf32, #tpu.memory_space<vmem>>, vector<1x256xf32>
    %309 = arith.addf %307, %308 : vector<1x256xf32>
    %310 = math.tanh %309 : vector<1x256xf32>
    %311 = arith.truncf %310 : vector<1x256xf32> to vector<1x256xbf16>
    %c0_248 = arith.constant 0 : index
    %c0_249 = arith.constant 0 : index
    %312 = vector.load %arg8[%c0_248, %c0_249] : memref<256x128xbf16, #tpu.memory_space<vmem>>, vector<256x128xbf16>
    %cst_250 = arith.constant dense<0.000000e+00> : vector<1x128xf32>
    %313 = tpu.matmul %311, %312, %cst_250 {dimension_numbers = #tpu.dot_dimension_numbers<[1], [0], [0], [1], [0, 0, 1, 1], [], []>} : vector<1x256xbf16>, vector<256x128xbf16>, vector<1x128xf32> -> vector<1x128xf32>
    %c0_251 = arith.constant 0 : index
    %c0_252 = arith.constant 0 : index
    %314 = vector.load %arg9[%c0_251, %c0_252] : memref<1x128xf32, #tpu.memory_space<vmem>>, vector<1x128xf32>
    %315 = arith.addf %313, %314 : vector<1x128xf32>
    %316 = math.tanh %315 : vector<1x128xf32>
    %317 = arith.truncf %316 : vector<1x128xf32> to vector<1x128xbf16>
    %c0_253 = arith.constant 0 : index
    %c0_254 = arith.constant 0 : index
    %318 = vector.load %arg10[%c0_253, %c0_254] : memref<128x32xbf16, #tpu.memory_space<vmem>>, vector<128x32xbf16>
    %cst_255 = arith.constant dense<0.000000e+00> : vector<1x32xf32>
    %319 = tpu.matmul %317, %318, %cst_255 {dimension_numbers = #tpu.dot_dimension_numbers<[1], [0], [0], [1], [0, 0, 1, 1], [], []>} : vector<1x128xbf16>, vector<128x32xbf16>, vector<1x32xf32> -> vector<1x32xf32>
    %c0_256 = arith.constant 0 : index
    %c0_257 = arith.constant 0 : index
    %320 = vector.load %arg11[%c0_256, %c0_257] : memref<1x32xf32, #tpu.memory_space<vmem>>, vector<1x32xf32>
    %321 = arith.addf %319, %320 : vector<1x32xf32>
    %322 = math.tanh %321 : vector<1x32xf32>
    %323 = arith.truncf %322 : vector<1x32xf32> to vector<1x32xbf16>
    %c0_258 = arith.constant 0 : index
    %c0_259 = arith.constant 0 : index
    %324 = vector.load %arg17[%c0_258, %c0_259] : memref<1x32xbf16, #tpu.memory_space<vmem>>, vector<1x32xbf16>
    tpu.vector_store %arg17[%c0_258, %c0_259], %323 {strides = array<i32>} : memref<1x32xbf16, #tpu.memory_space<vmem>>, vector<1x32xbf16>,
    %c0_i32_260 = arith.constant 0 : i32
    %325 = arith.cmpi eq, %arg0, %c0_i32_260 : i32
    %326 = arith.extui %325 : i1 to i32
    %c0_i32_261 = arith.constant 0 : i32
    %327 = arith.cmpi ne, %326, %c0_i32_261 : i32
    scf.if %327 {
      %c0_262 = arith.constant 0 : index
      %c0_263 = arith.constant 0 : index
      %328 = vector.load %arg17[%c0_262, %c0_263] : memref<1x32xbf16, #tpu.memory_space<vmem>>, vector<1x32xbf16>
      %329 = arith.extf %328 : vector<1x32xbf16> to vector<1x32xf32>
      %c0_264 = arith.constant 0 : index
      %c0_265 = arith.constant 0 : index
      %330 = vector.load %arg16[%c0_264, %c0_265] : memref<1x32xf32, #tpu.memory_space<vmem>>, vector<1x32xf32>
      tpu.vector_store %arg16[%c0_264, %c0_265], %329 {strides = array<i32>} : memref<1x32xf32, #tpu.memory_space<vmem>>, vector<1x32xf32>,
    } else {
    }
    return
  }
  func.func @transform_0(%arg0: i32) -> (i32, i32) {
    %c0_i32 = arith.constant 0 : i32
    %c0_i32_0 = arith.constant 0 : i32
    return %c0_i32, %arg0 : i32, i32
  }
  func.func @transform_1(%arg0: i32) -> (i32, i32) {
    %c0_i32 = arith.constant 0 : i32
    %c0_i32_0 = arith.constant 0 : i32
    %c0_i32_1 = arith.constant 0 : i32
    return %c0_i32, %c0_i32_0 : i32, i32
  }
  func.func @transform_2(%arg0: i32) -> (i32, i32) {
    %c0_i32 = arith.constant 0 : i32
    %c0_i32_0 = arith.constant 0 : i32
    %c0_i32_1 = arith.constant 0 : i32
    return %c0_i32, %c0_i32_0 : i32, i32
  }
  func.func @transform_3(%arg0: i32) -> (i32, i32) {
    %c0_i32 = arith.constant 0 : i32
    %c0_i32_0 = arith.constant 0 : i32
    %c0_i32_1 = arith.constant 0 : i32
    return %c0_i32, %c0_i32_0 : i32, i32
  }
  func.func @transform_4(%arg0: i32) -> (i32, i32) {
    %c0_i32 = arith.constant 0 : i32
    %c0_i32_0 = arith.constant 0 : i32
    %c0_i32_1 = arith.constant 0 : i32
    return %c0_i32, %c0_i32_0 : i32, i32
  }
  func.func @transform_5(%arg0: i32) -> (i32, i32) {
    %c0_i32 = arith.constant 0 : i32
    %c0_i32_0 = arith.constant 0 : i32
    %c0_i32_1 = arith.constant 0 : i32
    return %c0_i32, %c0_i32_0 : i32, i32
  }
  func.func @transform_6(%arg0: i32) -> (i32, i32) {
    %c0_i32 = arith.constant 0 : i32
    %c0_i32_0 = arith.constant 0 : i32
    %c0_i32_1 = arith.constant 0 : i32
    return %c0_i32, %c0_i32_0 : i32, i32
  }
  func.func @transform_7(%arg0: i32) -> (i32, i32) {
    %c0_i32 = arith.constant 0 : i32
    %c0_i32_0 = arith.constant 0 : i32
    %c0_i32_1 = arith.constant 0 : i32
    return %c0_i32, %c0_i32_0 : i32, i32
  }
  func.func @transform_8(%arg0: i32) -> (i32, i32) {
    %c0_i32 = arith.constant 0 : i32
    %c0_i32_0 = arith.constant 0 : i32
    %c0_i32_1 = arith.constant 0 : i32
    return %c0_i32, %c0_i32_0 : i32, i32
  }
  func.func @transform_9(%arg0: i32) -> (i32, i32) {
    %c0_i32 = arith.constant 0 : i32
    %c0_i32_0 = arith.constant 0 : i32
    %c0_i32_1 = arith.constant 0 : i32
    return %c0_i32, %c0_i32_0 : i32, i32
  }
  func.func @transform_10(%arg0: i32) -> (i32, i32) {
    %c0_i32 = arith.constant 0 : i32
    %c0_i32_0 = arith.constant 0 : i32
    %c0_i32_1 = arith.constant 0 : i32
    return %c0_i32, %c0_i32_0 : i32, i32
  }
  func.func @transform_11(%arg0: i32) -> (i32, i32) {
    %c0_i32 = arith.constant 0 : i32
    %c0_i32_0 = arith.constant 0 : i32
    %c0_i32_1 = arith.constant 0 : i32
    return %c0_i32, %c0_i32_0 : i32, i32
  }
  func.func @transform_12(%arg0: i32) -> (i32, i32) {
    %c0_i32 = arith.constant 0 : i32
    %c0_i32_0 = arith.constant 0 : i32
    %c0_i32_1 = arith.constant 0 : i32
    return %c0_i32, %c0_i32_0 : i32, i32
  }
  func.func @transform_13(%arg0: i32) -> (i32, i32) {
    %c0_i32 = arith.constant 0 : i32
    %c0_i32_0 = arith.constant 0 : i32
    %c0_i32_1 = arith.constant 0 : i32
    return %c0_i32, %c0_i32_0 : i32, i32
  }
  func.func @transform_14(%arg0: i32) -> (i32, i32) {
    %c0_i32 = arith.constant 0 : i32
    %c0_i32_0 = arith.constant 0 : i32
    return %c0_i32, %arg0 : i32, i32
  }
  func.func @transform_15(%arg0: i32) -> (i32, i32) {
    %c0_i32 = arith.constant 0 : i32
    %c0_i32_0 = arith.constant 0 : i32
    %c0_i32_1 = arith.constant 0 : i32
    return %c0_i32, %c0_i32_0 : i32, i32
  }
}

</mosaic_0001>

<bundles_post_ra>
// kernel: rnn_forward.1
= control target key start
LH: loop header
LB: loop body
LE: loop exit
PB: predicated region body
PF: predicated region fallthrough
CT: control target
= control target key end

     0   :  { %s6750_s0 = inlined_call_operand.vmem [shape: f32[1,8], index: 0, kind: input, shape index: {}]   ;;  %s6751_s1 = inlined_call_operand.vmem [shape: f32[1,32], index: 1, kind: input, shape index: {}]   ;;  %s6752_s2 = inlined_call_operand.vmem [shape: bf16[32,128], index: 2, kind: input, shape index: {}]   ;;  %s6753_s3 = inlined_call_operand.vmem [shape: f32[1,128], index: 3, kind: input, shape index: {}]   ;;  %s6754_s4 = inlined_call_operand.vmem [shape: f32[1,128], index: 4, kind: input, shape index: {}]   ;;  %s6755_s5 = inlined_call_operand.hbm [shape: bf16[128,256], index: 5, kind: input, shape index: {}]   ;;  %s6756_s6 = inlined_call_operand.vmem [shape: f32[1,256], index: 6, kind: input, shape index: {}]   ;;  %s6757_s7 = inlined_call_operand.hbm [shape: bf16[256,128], index: 7, kind: input, shape index: {}]   ;;  %s6758_s8 = inlined_call_operand.vmem [shape: f32[1,128], index: 8, kind: input, shape index: {}]   ;;  %s6759_s9 = inlined_call_operand.vmem [shape: bf16[128,32], index: 9, kind: input, shape index: {}]   ;;  %s6760_s10 = inlined_call_operand.vmem [shape: f32[1,32], index: 10, kind: input, shape index: {}]   ;;  %s6761_s11 = inlined_call_operand.vmem [shape: f32[1,32], index: 11, kind: input, shape index: {}]   ;;  %s6762_s12 = inlined_call_operand.<no memory space> [shape: f32[1,1], index: 12, kind: input, shape index: {}]   ;;  %s6763_s14 = inlined_call_operand.hbm [shape: f32[1,8], index: 14, kind: output, shape index: {0}]   ;;  %s6764_s15 = inlined_call_operand.hbm [shape: f32[1,32], index: 15, kind: output, shape index: {1}]   ;;  %s6765_s13 = inlined_call_operand.<no memory space> [shape: f32[1,1], index: 13, kind: input, shape index: {}]  }
   0x1   :  { %v21_v0 = vstv %s6762_s12  ;;  %v23_v1 = vstv %s6765_s13 }
   0x2   :  { %22 = vst [vmem:[#allocation3] sm:$0x1] %v21_v0  ;;  %24 = vst [vmem:[#allocation4] sm:$0x1] %v23_v1 }
   0x3   :  { %25 = vsyncpa [#allocation6], 0 }
   0x4   :  { %26 = vsyncpa [#allocation9], 0 }
   0x5   :  { %27 = vsyncpa [#allocation7], 0 }
   0x6   :  { %28 = vsyncpa [#allocation12], 0  ;;  %s5744_s22 = smov [#allocation5]  }
   0x7   :  { %s44_s23 = sshll.u32 %s5744_s22, 4  ;;  %s45_s23 = int_to_ptr.vmem [resolvable:$true] %s44_s23 }
   0x8   :  { %s5664_s24 = scalar_lea.vmem %s45_s23, 2048  ;;  %p5669_p1 = scmp.lt.s32.totalorder %s45_s23, %s45_s23 }
   0x9   :  { %p5665_p0 = scmp.ne.s32.totalorder %s45_s23, %s5664_s24  ;;  %p5670_p2 = scmp.lt.s32.totalorder %s5664_s24, %s5664_s24 }
   0xb   :  { %p5671_p3 = por %p5670_p2, %p5669_p1 }
   0xd   :  { %p5672_p4 = pnand %p5671_p3, %p5665_p0 }
   0xf   :  { %5675 = shalt.err (!%p5672_p4)
}
  0x10   :  { %s5745_s12 = smov 128   ;;  %s5746_s25 = smov 8  }
  0x11   :  { %50 = dma.hbm_to_vmem [thread:$0]  %s6755_s5, 2048, %s45_s23, [#allocation6], %s5745_s12, %s5745_s12, %s5746_s25  }
  0x12   :  { %s5747_s27 = smov [#allocation8]  }
  0x13   :  { %s58_s28 = sshll.u32 %s5747_s27, 4  ;;  %s59_s28 = int_to_ptr.vmem [resolvable:$true] %s58_s28 }
  0x14   :  { %s5684_s29 = scalar_lea.vmem %s59_s28, 2048  ;;  %p5689_p6 = scmp.lt.s32.totalorder %s59_s28, %s59_s28 }
  0x15   :  { %p5685_p5 = scmp.ne.s32.totalorder %s59_s28, %s5684_s29  ;;  %p5690_p7 = scmp.lt.s32.totalorder %s5684_s29, %s5684_s29 }
  0x17   :  { %p5691_p8 = por %p5690_p7, %p5689_p6 }
  0x19   :  { %p5692_p9 = pnand %p5691_p8, %p5685_p5 }
  0x1b   :  { %5695 = shalt.err (!%p5692_p9)
}
  0x1c   :  { %s5748_s30 = smov 64   ;;  %s5749_s16 = smov 4  }
  0x1d   :  { %64 = dma.hbm_to_vmem [thread:$0]  %s6757_s7, 2048, %s59_s28, [#allocation9], %s5748_s30, %s5748_s30, %s5749_s16  }
  0x1e   :  { %5736 = dma.done.wait [#allocation6], 2048  }
  0x1f   :  { %5737 = vsyncadd [#allocation6], 4294965248 }
  0x20   :  { %5738 = dma.done.wait [#allocation9], 2048  }
  0x21   :  { %5739 = vsyncadd [#allocation9], 4294965248  ;;  %v5750_v2 = vmov 0.0   ;;  %vm5751_vm0 = vmmov 0   ;;  %v5752_v3 = vmov 0   ;;  %vm90_vm1 = vcmask 253952  }
  0x22   :  { %5021 = vmatprep.subr.bf16.mxu1 %v5750_v2  ;;  %5025 = vmatprep.mubr.msk.bf16.mxu1 %vm5751_vm0, %v5750_v2  ;;  %vm91_vm2 = vsmask.f32 256  ;;  %v5285_v5 = vld [vmem:[%s6752_s2 + $0x8] sm:$0xff]   ;;  %v5286_v6 = vld [vmem:[%s6752_s2] sm:$0xff]   ;;  %v5287_v13 = vld [vmem:[#allocation5 + $0x70] ss:$8 sps:$4 sm:$0xff]   ;;  %v122_v35 = vlaneseq }
  0x23   :  { %5276 = vset.pattern.permute.xlu0 %v5752_v3  ;;  %vm5873_vm3 = vmand %vm90_vm1, %vm91_vm2  ;;  %5022 = vmatpush3.bf16.msra.mxu1 %v5285_v5  ;;  %v88_v7 = vld [vmem:[%s6751_s1] sm:$0x1]  ;;  %vm139_vm4 = vcmask 261120   ;;  %v5292_v14 = vld [vmem:[#allocation5 + $0x64] ss:$8 sps:$4 sm:$0xff]   ;;  %s5760_s1 = smov 1  }
  0x24   :  { %v93_v8 = vld [vmem:[#allocation2] sm:$0x1]  ;;  %5023 = vmatprep.subr.bf16.mxu1 %v5750_v2  ;;  %v89_v10 = vpack.c.bf16 %v88_v7, %v88_v7  ;;  %v5290_v16 = vld [vmem:[#allocation5 + $0x60] ss:$8 sps:$4 sm:$0xff]   ;;  %v5293_v18 = vld [vmem:[#allocation5 + $0x50] ss:$8 sps:$4 sm:$0xff]  }
  0x25   :  { %v97_v9 = vld [vmem:[%s6750_s0] sm:$0x1]  ;;  %v5894_v19 = vld [vmem:[#allocation5 + $0x44] ss:$8 sps:$4 sm:$0xff]   ;;  %v5896_v20 = vld [vmem:[#allocation5 + $0x40] ss:$8 sps:$4 sm:$0xff]  }
  0x26   :  { %119 = vperm.xlu0 %5276, %v97_v9   ;;  %v5289_v11 = vld [vmem:[#allocation5 + $0x74] ss:$8 sps:$4 sm:$0xff]   ;;  %v94_v12 = vsel %vm5873_vm3, %v89_v10, %v93_v8  ;;  %v5902_v22 = vld [vmem:[#allocation5 + $0x30] ss:$8 sps:$4 sm:$0xff]   ;;  %v5906_v23 = vld [vmem:[#allocation5 + $0x24] ss:$8 sps:$4 sm:$0xff]  }
  0x27   :  { %5024 = vmatpush3.bf16.msra.mxu1 %v5286_v6  ;;  %95 = vst [vmem:[#allocation2] sm:$0x1] %v94_v12  ;;  %v5295_v17 = vld [vmem:[#allocation5 + $0x54] ss:$8 sps:$4 sm:$0xff]   ;;  %v5908_v24 = vld [vmem:[#allocation5 + $0x20] ss:$8 sps:$4 sm:$0xff]  }
  0x28   :  { %295 = vmatprep.subr.bf16.mxu1 %v5289_v11  ;;  %v5900_v21 = vld [vmem:[#allocation5 + $0x34] ss:$8 sps:$4 sm:$0xff]   ;;  %v5914_v26 = vld [vmem:[#allocation5 + $0x10] ss:$8 sps:$4 sm:$0xff]   ;;  %v5918_v27 = vld [vmem:[#allocation5 + $0x4] ss:$8 sps:$4 sm:$0xff]  }
  0x29   :  { %v5912_v25 = vld [vmem:[#allocation5 + $0x14] ss:$8 sps:$4 sm:$0xff]   ;;  %v5920_v28 = vld [vmem:[#allocation5] ss:$8 sps:$4 sm:$0xff]   ;;  %v123_v36 = vshrl.u32 %v122_v35, 7  ;;  %s5761_s12 = smov 2  }
  0x2a   :  { %v5311_v29 = vld [vmem:[#allocation8 + $0x78] sm:$0xff]   ;;  %v5313_v31 = vld [vmem:[#allocation8 + $0x70] sm:$0xff]   ;;  %v5315_v33 = vld [vmem:[#allocation8 + $0x68] sm:$0xff]   ;;  %s5762_s25 = smov 3   ;;  %vm110_vm5 = vcmask 0   ;;  %s5763_s29 = smov 127  }
  0x2b   :  { %v5312_v30 = vld [vmem:[#allocation8 + $0x38] sm:$0xff]   ;;  %v5314_v32 = vld [vmem:[#allocation8 + $0x30] sm:$0xff]   ;;  %4752 = vmatprep.subr.bf16.mxu0 %v5311_v29  ;;  %v5316_v34 = vld [vmem:[#allocation8 + $0x28] sm:$0xff]   ;;  %v5925_v37 = vsub.s32 0, %v123_v36  ;;  %v5948_v0 = vsub.s32 1, %v123_v36  ;;  %v5755_v36 = vmov 2  }
  0x2c   :  { %4753 = vmatpush3.bf16.msra.mxu0 %v5312_v30  ;;  %v116_v40 = vld [vmem:[%s6753_s3] sm:$0x1]  ;;  %v5317_v51 = vld [vmem:[#allocation8 + $0x60] sm:$0xff]   ;;  %v5321_v55 = vld [vmem:[#allocation8 + $0x50] sm:$0xff]   ;;  %v5753_v30 = vmov 1   ;;  %5278 = vset.pattern.permute.xlu1 %v5755_v36  ;;  %s5764_s30 = smov 125  }
  0x2d   :  { %4754 = vmatprep.subr.bf16.mxu0 %v5313_v31  ;;  %v183_v43 = vld [vmem:[%s6754_s4] sm:$0x1]  ;;  %v5318_v52 = vld [vmem:[#allocation8 + $0x20] sm:$0xff]   ;;  %v5322_v56 = vld [vmem:[#allocation8 + $0x10] sm:$0xff]   ;;  %5277 = vset.pattern.permute.xlu0 %v5753_v30  ;;  %s5765_s19 = smov 5   ;;  %s5766_s20 = smov 6  }
  0x2e   :  { %v96_v15 = vld [vmem:[#allocation2] sm:$0x1]  ;;  %v5323_v57 = vld [vmem:[#allocation8 + $0x48] sm:$0xff]   ;;  %v5325_v59 = vld [vmem:[#allocation8 + $0x40] sm:$0xff]   ;;  %s5767_s21 = smov 7   ;;  %s5768_s22 = smov 126  }
  0x2f   :  { %5026 = vmatmul.mubr.msk.bf16.vlgmr.msra.gmra.mxu1 %vm139_vm4, %v96_v15  ;;  %v5319_v53 = vld [vmem:[#allocation8 + $0x58] sm:$0xff]   ;;  %v5324_v58 = vld [vmem:[#allocation8 + $0x8] sm:$0xff]   ;;  %v5326_v60 = vld [vmem:[#allocation8] sm:$0xff]   ;;  %s5769_s27 = smov 124   ;;  %vm646_vm6 = vcmask 8200   ;;  %vm1181_vm7 = vcmask 16400  }
  0x30   :  { %296 = vmatpush1.bf16.msra.mxu1 %v5287_v13  ;;  %327 = vmatprep.mubr.bf16.mxu1 %v5752_v3  ;;  %v5320_v54 = vld [vmem:[#allocation8 + $0x18] sm:$0xff]   ;;  %v5328_v62 = vld [vmem:[%s6759_s9 + $0x30] sm:$0xff]   ;;  %v5335_v30 = vld [vmem:[%s6752_s2 + $0x8] sm:$0xff]   ;;  %vm1716_vm8 = vcmask 24600   ;;  %s5770_s13 = smov 122   ;;  %s5771_s7 = smov 123  }
  0x31   :  { %297 = vmatprep.subr.bf16.mxu1 %v5292_v14  ;;  %4755 = vmatpush3.bf16.msra.mxu0 %v5314_v32  ;;  %v5327_v61 = vld [vmem:[%s6759_s9 + $0x38] sm:$0xff]   ;;  %v203_v63 = vld [vmem:[%s6756_s6] sm:$0x3]  ;;  %v5332_v29 = vld [vmem:[%s6759_s9 + $0x10] sm:$0xff]   ;;  %vm2251_vm9 = vcmask 32800   ;;  %vm2786_vm10 = vcmask 41000  }
  0x32   :  { %4756 = vmatprep.subr.bf16.mxu0 %v5315_v33  ;;  %v288_v1 = vrot.slane %v203_v63, %v5925_v37  ;;  %v292_v5 = vrot.slane %v203_v63, %v5948_v0  ;;  %v5972_v31 = vld [vmem:[%s6750_s0] sm:$0x1]  ;;  %v5333_v32 = vld [vmem:[%s6759_s9 + $0x8] sm:$0xff]   ;;  %v5754_v33 = vmov 5   ;;  %vm3321_vm11 = vcmask 49200  }
  0x33   :  { %655 = vperm.xlu0 %5277, %v5972_v31   ;;  %v5334_v35 = vld [vmem:[%s6759_s9] sm:$0xff]   ;;  %vm3856_vm12 = vcmask 57400  }
  0x34   :  { %298 = vmatpush1.bf16.msra.mxu1 %v5290_v16  ;;  %v5329_v16 = vld [vmem:[%s6759_s9 + $0x28] sm:$0xff]  }
  0x35   :  { %299 = vmatprep.subr.bf16.mxu1 %v5295_v17  ;;  %4757 = vmatpush3.bf16.msra.mxu0 %v5316_v34  ;;  %v5330_v17 = vld [vmem:[%s6759_s9 + $0x20] sm:$0xff]  }
  0x36   :  { %4758 = vmatprep.subr.bf16.mxu0 %v5317_v51  ;;  %v2758_v34 = vld [vmem:[%s6750_s0] sm:$0x1]  ;;  %v625_v51 = vld [vmem:[#allocation3] sm:$0x1] }
  0x37   :  { %5281 = vset.pattern.permute.xlu0 %v5754_v33  ;;  %v2230_v33 = vld [vmem:[#allocation3] sm:$0x1] }
  0x38   :  { %300 = vmatpush1.bf16.msra.mxu1 %v5293_v18  ;;  %v5331_v18 = vld [vmem:[%s6759_s9 + $0x18] sm:$0xff]   ;;  %2795 = vperm.xlu0 %5281, %v2758_v34   ;;  %v2765_v34 = vld [vmem:[#allocation3] sm:$0x1] }
  0x39   :  { %301 = vmatprep.subr.bf16.mxu1 %v5894_v19  ;;  %4759 = vmatpush3.bf16.msra.mxu0 %v5318_v52  ;;  %v3828_v52 = vld [vmem:[%s6750_s0] sm:$0x1] }
  0x3a   :  { %4760 = vmatprep.subr.bf16.mxu0 %v5319_v53  ;;  %v1160_v53 = vld [vmem:[#allocation3] sm:$0x1] }
  0x3c   :  { %302 = vmatpush1.bf16.msra.mxu1 %v5896_v20 }
  0x3d   :  { %303 = vmatprep.subr.bf16.mxu1 %v5900_v21  ;;  %4761 = vmatpush3.bf16.msra.mxu0 %v5320_v54  ;;  %v1695_v54 = vld [vmem:[#allocation3] sm:$0x1] }
  0x3e   :  { %4762 = vmatprep.subr.bf16.mxu0 %v5321_v55 }
  0x40   :  { %304 = vmatpush1.bf16.msra.mxu1 %v5902_v22 }
  0x41   :  { %305 = vmatprep.subr.bf16.mxu1 %v5906_v23  ;;  %4763 = vmatpush3.bf16.msra.mxu0 %v5322_v56  ;;  %v372_v56 = vld [vmem:[%s6758_s8] sm:$0x1] }
  0x42   :  { %4764 = vmatprep.subr.bf16.mxu0 %v5323_v57 }
  0x44   :  { %306 = vmatpush1.bf16.msra.mxu1 %v5908_v24 }
  0x45   :  { %307 = vmatprep.subr.bf16.mxu1 %v5912_v25  ;;  %4765 = vmatpush3.bf16.msra.mxu0 %v5324_v58 }
  0x46   :  { %4766 = vmatprep.subr.bf16.mxu0 %v5325_v59 }
  0x48   :  { %308 = vmatpush1.bf16.msra.mxu1 %v5914_v26 }
  0x49   :  { %309 = vmatprep.subr.bf16.mxu1 %v5918_v27  ;;  %4767 = vmatpush3.bf16.msra.mxu0 %v5326_v60 }
  0x4a   :  { %5049 = vmatprep.subr.bf16.mxu0 %v5750_v2 }
  0x4c   :  { %310 = vmatpush1.bf16.msra.mxu1 %v5920_v28 }
  0x4d   :  { %5029 = vmatprep.subr.bf16.mxu1 %v5750_v2 }
  0xa1   :  { %v120_v38 = vpop.permute.xlu0 %119 }
  0xa2   :  { %v125_v39 = vrot.slane %v120_v38, %v5925_v37  ;;  %v5989_v38 = vld [vmem:[%s6750_s0] sm:$0x1] }
  0xa3   :  { %1190 = vperm.xlu1 %5278, %v5989_v38  }
  0xa4   :  { %v126_v41 = vmul.f32 %v125_v39, %v116_v40  ;;  %v1688_v39 = vld [vmem:[%s6750_s0] sm:$0x1]  ;;  %v5756_v40 = vmov 3  }
  0xa7   :  { %5279 = vset.pattern.permute.xlu1 %v5756_v40 }
  0xa8   :  { %1725 = vperm.xlu1 %5279, %v1688_v39  }
  0xef   :  { %v177_v42 = vpop.f32.mrf.mxu1 }
  0xf0   :  { %v178_v44 = vadd.f32 %v177_v42, %v126_v41  ;;  %v5998_v41 = vld [vmem:[%s6750_s0] sm:$0x1]  ;;  %v5757_v42 = vmov 4  }
  0xf1   :  { %v5027_v45 = vpop.f32.mrf.mxu1  ;;  %5280 = vset.pattern.permute.xlu1 %v5757_v42  ;;  %v527_v42 = vld [vmem:[%s6760_s10] sm:$0x1] }
  0xf2   :  { %v184_v46 = vadd.f32 %v183_v43, %v178_v44  ;;  %2260 = vperm.xlu1 %5280, %v5998_v41   ;;  %v5645_v43 = vld [vmem:[#allocation2] sm:$0x1] }
  0xf3   :  { %v180_v47 = vpop.f32.mrf.mxu1  ;;  %v98_v44 = vunpack.c.l.bf16 %v5645_v43  ;;  %v99_v45 = vld [vmem:[%s6761_s11] sm:$0x1] }
  0xf4   :  { %5565 = vtanh.f32 %v184_v46 }
  0xf5   :  { %v5028_v48 = vpop.f32.mrf.mxu1  ;;  %v100_v46 = vmul.f32 %v99_v45, %v98_v44 }
  0xf6   :  { %v3293_v48 = vld [vmem:[%s6750_s0] sm:$0x1] }
  0xf7   :  { %v102_v47 = vsel %vm90_vm1, %v100_v46, 0.0 }
  0xf8   :  { %103 = vadd.xlane.f32.xlu0 %v102_v47 }
 0x101   :  { %v5566_v49 = vpop.eup %5565 }
 0x102   :  { %v186_v50 = vpack.c.bf16 %v5566_v49, %v5566_v49  ;;  %v5758_v49 = vmov 6  }
 0x103   :  { %5282 = vset.pattern.permute.xlu1 %v5758_v49  ;;  %v620_v49 = vld [vmem:[%s6761_s11] sm:$0x1] }
 0x104   :  { %328 = vmatmul.mubr.bf16.vlgmr.msra.gmra.mxu1 %v186_v50  ;;  %3330 = vperm.xlu1 %5282, %v3293_v48   ;;  %v5759_v50 = vmov 7  }
 0x105   :  { %5045 = vmatprep.mubr.msk.bf16.mxu1 %vm5751_vm0, %v5750_v2  ;;  %5030 = vmatpush3.bf16.msra.mxu1 %v5327_v61 }
 0x106   :  { %5031 = vmatprep.subr.bf16.mxu1 %v5750_v2  ;;  %5284 = vset.pattern.permute.xlu0 %v5759_v50 }
 0x108   :  { %5283 = vset.pattern.permute.xlu1 %v5759_v50 }
 0x109   :  { %5032 = vmatpush3.bf16.msra.mxu1 %v5328_v62  ;;  %3865 = vperm.xlu1 %5283, %v3828_v52  }
 0x10a   :  { %5033 = vmatprep.subr.bf16.mxu1 %v5750_v2 }
 0x10d   :  { %5034 = vmatpush3.bf16.msra.mxu1 %v5329_v16 }
 0x10e   :  { %5035 = vmatprep.subr.bf16.mxu1 %v5750_v2  ;;  %627 = vrot.lane.b32.xlu0 %v625_v51, %s5760_s1  ;;  %v5648_v51 = vld [vmem:[#allocation5 + $0x70] ss:$8 sps:$4 sm:$0xff]  }
 0x111   :  { %5036 = vmatpush3.bf16.msra.mxu1 %v5330_v17 }
 0x112   :  { %5037 = vmatprep.subr.bf16.mxu1 %v5750_v2  ;;  %1162 = vrot.lane.b32.xlu0 %v1160_v53, %s5761_s12  ;;  %v5649_v53 = vld [vmem:[#allocation5 + $0x64] ss:$8 sps:$4 sm:$0xff]  }
 0x115   :  { %5038 = vmatpush3.bf16.msra.mxu1 %v5331_v18 }
 0x116   :  { %5039 = vmatprep.subr.bf16.mxu1 %v5750_v2  ;;  %1697 = vrot.lane.b32.xlu0 %v1695_v54, %s5762_s25 }
 0x119   :  { %5040 = vmatpush3.bf16.msra.mxu1 %v5332_v29 }
 0x11a   :  { %5041 = vmatprep.subr.bf16.mxu1 %v5750_v2  ;;  %2232 = vrot.lane.b32.xlu0 %v2230_v33, %s5749_s16 }
 0x11d   :  { %5042 = vmatpush3.bf16.msra.mxu1 %v5333_v32  ;;  %v5647_v32 = vld [vmem:[#allocation5 + $0x74] ss:$8 sps:$4 sm:$0xff]  }
 0x11e   :  { %5043 = vmatprep.subr.bf16.mxu1 %v5750_v2  ;;  %2767 = vrot.lane.b32.xlu0 %v2765_v34, %s5765_s19 }
 0x121   :  { %5044 = vmatpush3.bf16.msra.mxu1 %v5334_v35  ;;  %v3300_v35 = vld [vmem:[#allocation3] sm:$0x1] }
 0x122   :  { %3302 = vrot.lane.b32.xlu0 %v3300_v35, %s5766_s20 }
 0x1c4   :  { %v329_v6 = vpop.f32.mrf.mxu1 }
 0x1c5   :  { %v330_v7 = vadd.f32 %v329_v6, %v288_v1  ;;  %v6017_v1 = vpop.permute.xlu0 %655 }
 0x1c6   :  { %v331_v8 = vpop.f32.mrf.mxu1 }
 0x1c7   :  { %v332_v9 = vadd.f32 %v331_v8, %v292_v5  ;;  %5567 = vtanh.f32 %v330_v7  ;;  %v105_v5 = vld [vmem:[#allocation3] sm:$0x1]  ;;  %v5646_v7 = vld [vmem:[%s6750_s0] sm:$0x1] }
 0x1c8   :  { %v333_v10 = vpop.f32.mrf.mxu1  ;;  %v106_v8 = vmul.f32 %v5646_v7, %v105_v5 }
 0x1c9   :  { %5569 = vtanh.f32 %v332_v9  ;;  %v6019_v6 = vpop.permute.xlu0 %2795  ;;  %v108_v9 = vld [vmem:[#allocation4] sm:$0x1] }
 0x1ca   :  { %v334_v11 = vpop.f32.mrf.mxu1 }
 0x1cd   :  { %v104_v10 = vpop.xlane.xlu0 %103 }
 0x1ce   :  { %v107_v11 = vadd.f32 %v106_v8, %v104_v10  ;;  %v652_v10 = vld [vmem:[%s6753_s3] sm:$0x1] }
 0x1d4   :  { %v5568_v12 = vpop.eup %5567 }
 0x1d5   :  { %v338_v15 = vpack.c.bf16 %v5568_v12, %v5568_v12  ;;  %v109_v12 = vadd.f32 %v108_v9, %v107_v11  ;;  %v661_v9 = vrot.slane %v6017_v1, %v5925_v37 }
 0x1d6   :  { %v5570_v13 = vpop.eup %5569 }
 0x1d7   :  { %v339_v14 = vpack.c.bf16 %v5570_v13, %v5570_v13  ;;  %v628_v13 = vpop.permute.xlu0 %627  ;;  %111 = vst.msk [vmem:[#allocation10] sm:$0x1] %vm110_vm5, %v109_v12  ;;  %v662_v11 = vmul.f32 %v661_v9, %v652_v10 }
 0x1d9   :  { %501 = vmatprep.mubr.bf16.mxu0 %v339_v14  ;;  %v630_v14 = vmul.f32 %v628_v13, %v5972_v31  ;;  %v5336_v31 = vld [vmem:[%s6752_s2] sm:$0xff]  }
 0x1da   :  { %502 = vmatmul.mubr.bf16.vlgmr.msra.gmra.mxu0 %v338_v15  ;;  %v718_v13 = vld [vmem:[%s6754_s4] sm:$0x1] }
 0x1db   :  { %5053 = vmatprep.mubr.msk.bf16.mxu0 %vm5751_vm0, %v5750_v2  ;;  %v635_v15 = vrot.slane %v630_v14, %v5925_v37  ;;  %v1163_v16 = vpop.permute.xlu0 %1162  ;;  %5050 = vmatpush3.bf16.msra.mxu0 %v5335_v30 }
 0x1dc   :  { %5051 = vmatprep.subr.bf16.mxu0 %v5750_v2  ;;  %v1165_v36 = vmul.f32 %v1163_v16, %v5989_v38 }
 0x1dd   :  { %636 = vrot.lane.b32.xlu1 %v635_v15, %s5763_s29 }
 0x1de   :  { %v1170_v40 = vrot.slane %v1165_v36, %v5925_v37  ;;  %v5343_v36 = vld [vmem:[#allocation8 + $0x60] sm:$0xff]  }
 0x1df   :  { %v1698_v17 = vpop.permute.xlu0 %1697  ;;  %5052 = vmatpush3.bf16.msra.mxu0 %v5336_v31 }
 0x1e0   :  { %v1700_v18 = vmul.f32 %v1698_v17, %v1688_v39  ;;  %830 = vmatprep.subr.bf16.mxu0 %v5647_v32  ;;  %v3835_v39 = vld [vmem:[#allocation3] sm:$0x1] }
 0x1e1   :  { %3837 = vrot.lane.b32.xlu0 %v3835_v39, %s5767_s21  ;;  %v5344_v39 = vld [vmem:[#allocation8 + $0x20] sm:$0xff]  }
 0x1e2   :  { %v1705_v29 = vrot.slane %v1700_v18, %v5925_v37 }
 0x1e4   :  { %1706 = vrot.lane.b32.xlu1 %v1705_v29, %s5764_s30 }
 0x1e5   :  { %1171 = vrot.lane.b32.xlu0 %v1170_v40, %s5768_s22  ;;  %v5345_v40 = vld [vmem:[#allocation8 + $0x58] sm:$0xff]  }
 0x29a   :  { %v4768_v55 = vpop.f32.mrf.mxu0 }
 0x29c   :  { %v4769_v57 = vpop.f32.mrf.mxu0 }
 0x29d   :  { %v4770_v58 = vadd.f32 %v4769_v57, %v4768_v55  ;;  %v2233_v55 = vpop.permute.xlu0 %2232  ;;  %v5651_v57 = vld [vmem:[#allocation5 + $0x54] ss:$8 sps:$4 sm:$0xff]  }
 0x29e   :  { %v4771_v59 = vpop.f32.mrf.mxu0 }
 0x29f   :  { %v504_v60 = vadd.f32 %v4770_v58, %v372_v56  ;;  %v5650_v56 = vld [vmem:[#allocation5 + $0x60] ss:$8 sps:$4 sm:$0xff]   ;;  %v2235_v58 = vmul.f32 %v2233_v55, %v5998_v41  ;;  %v5652_v59 = vld [vmem:[#allocation5 + $0x50] ss:$8 sps:$4 sm:$0xff]  }
 0x2a0   :  { %v4772_v61 = vpop.f32.mrf.mxu0  ;;  %v5338_v41 = vld [vmem:[#allocation8 + $0x38] sm:$0xff]  }
 0x2a1   :  { %5571 = vtanh.f32 %v504_v60  ;;  %v2240_v60 = vrot.slane %v2235_v58, %v5925_v37  ;;  %v6085_v1 = vpop.permute.xlu0 %2767 }
 0x2a3   :  { %2241 = vrot.lane.b32.xlu0 %v2240_v60, %s5769_s27 }
 0x2a5   :  { %v6087_v31 = vpop.permute.xlu0 %3302 }
 0x2a9   :  { %v6089_v32 = vpop.permute.xlu0 %3837 }
 0x2ad   :  { %v6091_v33 = vpop.permute.xlu0 %1171 }
 0x2ae   :  { %v5572_v62 = vpop.eup %5571 }
 0x2af   :  { %v510_v63 = vpack.c.bf16 %v5572_v62, %v5572_v62  ;;  %v5342_v62 = vld [vmem:[#allocation8 + $0x28] sm:$0xff]  }
 0x2b1   :  { %5046 = vmatmul.mubr.bf16.vlgmr.msra.gmra.mxu1 %v510_v63  ;;  %v640_v63 = vld [vmem:[#allocation4] sm:$0x1] }
 0x315   :  { %v6093_v34 = vpop.permute.xlu0 %2241 }
 0x371   :  { %v610_v43 = vpop.f32.mrf.mxu1 }
 0x372   :  { %v611_v44 = vadd.f32 %v610_v43, %v527_v42  ;;  %v5346_v42 = vld [vmem:[#allocation8 + $0x18] sm:$0xff]   ;;  %v5347_v43 = vld [vmem:[#allocation8 + $0x50] sm:$0xff]  }
 0x373   :  { %v5047_v45 = vpop.f32.mrf.mxu1 }
 0x374   :  { %5573 = vtanh.f32 %v611_v44  ;;  %v5348_v44 = vld [vmem:[#allocation8 + $0x10] sm:$0xff]   ;;  %v5349_v45 = vld [vmem:[#allocation8 + $0x48] sm:$0xff]  }
 0x375   :  { %v613_v38 = vpop.f32.mrf.mxu1 }
 0x376   :  { %v5350_v38 = vld [vmem:[#allocation8 + $0x8] sm:$0xff]  }
 0x377   :  { %v5048_v46 = vpop.f32.mrf.mxu1 }
 0x378   :  { %v5351_v46 = vld [vmem:[#allocation8 + $0x40] sm:$0xff]  }
 0x381   :  { %v5574_v47 = vpop.eup %5573 }
 0x382   :  { %v617_v48 = vpack.c.bf16 %v5574_v47, %v5574_v47  ;;  %v5352_v47 = vld [vmem:[#allocation8] sm:$0xff]  }
 0x384   :  { %5054 = vmatmul.mubr.msk.bf16.vlgmr.msra.gmra.mxu0 %vm139_vm4, %v617_v48  ;;  %v619_v50 = vunpack.c.l.bf16 %v617_v48  ;;  %v5353_v48 = vld [vmem:[%s6759_s9 + $0x38] sm:$0xff]  }
 0x385   :  { %831 = vmatpush1.bf16.msra.mxu0 %v5648_v51  ;;  %862 = vmatprep.mubr.bf16.mxu0 %v5752_v3 }
 0x386   :  { %v621_v52 = vmul.f32 %v620_v49, %v619_v50  ;;  %832 = vmatprep.subr.bf16.mxu0 %v5649_v53  ;;  %v5354_v49 = vld [vmem:[%s6759_s9 + $0x30] sm:$0xff]   ;;  %v738_v50 = vld [vmem:[%s6756_s6] sm:$0x3] }
 0x387   :  { %v823_v51 = vrot.slane %v738_v50, %v5925_v37 }
 0x388   :  { %v622_v54 = vsel %vm90_vm1, %v621_v52, 0.0  ;;  %v827_v52 = vrot.slane %v738_v50, %v5948_v0  ;;  %v6167_v50 = vld [vmem:[#allocation5 + $0x50] ss:$8 sps:$4 sm:$0xff]  }
 0x389   :  { %623 = vadd.xlane.f32.xlu1 %v622_v54  ;;  %833 = vmatpush1.bf16.msra.mxu0 %v5650_v56 }
 0x38a   :  { %834 = vmatprep.subr.bf16.mxu0 %v5651_v57 }
 0x38d   :  { %835 = vmatpush1.bf16.msra.mxu0 %v5652_v59 }
 0x38e   :  { %836 = vmatprep.subr.bf16.mxu0 %v5894_v19  ;;  %v6062_v19 = vpop.permute.xlu1 %1190 }
 0x391   :  { %837 = vmatpush1.bf16.msra.mxu0 %v5896_v20 }
 0x392   :  { %838 = vmatprep.subr.bf16.mxu0 %v5900_v21  ;;  %v6064_v20 = vpop.permute.xlu1 %1725 }
 0x395   :  { %839 = vmatpush1.bf16.msra.mxu0 %v5902_v22 }
 0x396   :  { %840 = vmatprep.subr.bf16.mxu0 %v5906_v23  ;;  %v6066_v21 = vpop.permute.xlu1 %2260 }
 0x399   :  { %841 = vmatpush1.bf16.msra.mxu0 %v5908_v24 }
 0x39a   :  { %842 = vmatprep.subr.bf16.mxu0 %v5912_v25  ;;  %v6068_v22 = vpop.permute.xlu1 %3330  ;;  %v5337_v25 = vld [vmem:[#allocation8 + $0x78] sm:$0xff]  }
 0x39b   :  { %4786 = vmatprep.subr.bf16.mxu1 %v5337_v25 }
 0x39c   :  { %4787 = vmatpush3.bf16.msra.mxu1 %v5338_v41  ;;  %v5355_v41 = vld [vmem:[%s6759_s9 + $0x28] sm:$0xff]  }
 0x39d   :  { %843 = vmatpush1.bf16.msra.mxu0 %v5914_v26  ;;  %v5339_v26 = vld [vmem:[#allocation8 + $0x70] sm:$0xff]  }
 0x39e   :  { %844 = vmatprep.subr.bf16.mxu0 %v5918_v27  ;;  %v6070_v23 = vpop.permute.xlu1 %3865  ;;  %v5340_v27 = vld [vmem:[#allocation8 + $0x30] sm:$0xff]   ;;  %4788 = vmatprep.subr.bf16.mxu1 %v5339_v26  ;;  %v5356_v26 = vld [vmem:[%s6759_s9 + $0x20] sm:$0xff]  }
 0x3a0   :  { %4789 = vmatpush3.bf16.msra.mxu1 %v5340_v27  ;;  %v5357_v27 = vld [vmem:[%s6759_s9 + $0x18] sm:$0xff]  }
 0x3a1   :  { %845 = vmatpush1.bf16.msra.mxu0 %v5920_v28  ;;  %v5341_v28 = vld [vmem:[#allocation8 + $0x68] sm:$0xff]  }
 0x3a2   :  { %5057 = vmatprep.subr.bf16.mxu0 %v5750_v2  ;;  %v637_v24 = vpop.permute.xlu1 %636  ;;  %4790 = vmatprep.subr.bf16.mxu1 %v5341_v28  ;;  %v5358_v28 = vld [vmem:[%s6759_s9 + $0x10] sm:$0xff]  }
 0x3a4   :  { %4791 = vmatpush3.bf16.msra.mxu1 %v5342_v62  ;;  %v5359_v62 = vld [vmem:[%s6759_s9 + $0x8] sm:$0xff]  }
 0x3a5   :  { %4792 = vmatprep.subr.bf16.mxu1 %v5343_v36 }
 0x3a6   :  { %v6072_v61 = vpop.permute.xlu1 %1706 }
 0x3a8   :  { %4793 = vmatpush3.bf16.msra.mxu1 %v5344_v39 }
 0x3a9   :  { %4794 = vmatprep.subr.bf16.mxu1 %v5345_v40 }
 0x3ac   :  { %4795 = vmatpush3.bf16.msra.mxu1 %v5346_v42  ;;  %v1155_v42 = vld [vmem:[%s6761_s11] sm:$0x1] }
 0x3ad   :  { %4796 = vmatprep.subr.bf16.mxu1 %v5347_v43 }
 0x3b0   :  { %4797 = vmatpush3.bf16.msra.mxu1 %v5348_v44 }
 0x3b1   :  { %4798 = vmatprep.subr.bf16.mxu1 %v5349_v45 }
 0x3b4   :  { %4799 = vmatpush3.bf16.msra.mxu1 %v5350_v38  ;;  %v6153_v38 = vld [vmem:[#allocation5 + $0x70] ss:$8 sps:$4 sm:$0xff]  }
 0x3b5   :  { %4800 = vmatprep.subr.bf16.mxu1 %v5351_v46  ;;  %v6155_v46 = vld [vmem:[#allocation5 + $0x74] ss:$8 sps:$4 sm:$0xff]  }
 0x3b8   :  { %4801 = vmatpush3.bf16.msra.mxu1 %v5352_v47  ;;  %v6157_v47 = vld [vmem:[#allocation5 + $0x64] ss:$8 sps:$4 sm:$0xff]  }
 0x3b9   :  { %5077 = vmatprep.subr.bf16.mxu1 %v5750_v2 }
 0x412   :  { %v624_v5 = vpop.xlane.xlu1 %623 }
 0x413   :  { %v639_v7 = vadd.f32 %v637_v24, %v624_v5 }
 0x415   :  { %v641_v8 = vadd.f32 %v640_v63, %v639_v7  ;;  %v5360_v63 = vld [vmem:[%s6759_s9] sm:$0xff]  }
 0x416   :  { %v907_v7 = vld [vmem:[%s6758_s8] sm:$0x1] }
 0x417   :  { %643 = vrot.lane.b32.xlu0 %v641_v8, %s5760_s1 }
 0x444   :  { %v712_v12 = vpop.f32.mrf.mxu0 }
 0x445   :  { %v713_v14 = vadd.f32 %v712_v12, %v662_v11 }
 0x446   :  { %v5055_v15 = vpop.f32.mrf.mxu0 }
 0x447   :  { %v719_v16 = vadd.f32 %v718_v13, %v713_v14  ;;  %v5361_v15 = vld [vmem:[%s6752_s2 + $0x8] sm:$0xff]  }
 0x448   :  { %v715_v17 = vpop.f32.mrf.mxu0 }
 0x449   :  { %5575 = vtanh.f32 %v719_v16  ;;  %v5362_v16 = vld [vmem:[%s6752_s2] sm:$0xff]  }
 0x44a   :  { %v5056_v18 = vpop.f32.mrf.mxu0  ;;  %v1062_v17 = vld [vmem:[%s6760_s10] sm:$0x1] }
 0x456   :  { %v5576_v29 = vpop.eup %5575 }
 0x457   :  { %v721_v30 = vpack.c.bf16 %v5576_v29, %v5576_v29 }
 0x459   :  { %863 = vmatmul.mubr.bf16.vlgmr.msra.gmra.mxu0 %v721_v30 }
 0x45a   :  { %5073 = vmatprep.mubr.msk.bf16.mxu0 %vm5751_vm0, %v5750_v2  ;;  %5058 = vmatpush3.bf16.msra.mxu0 %v5353_v48  ;;  %v6161_v48 = vld [vmem:[#allocation5 + $0x60] ss:$8 sps:$4 sm:$0xff]  }
 0x45b   :  { %5059 = vmatprep.subr.bf16.mxu0 %v5750_v2 }
 0x45e   :  { %5060 = vmatpush3.bf16.msra.mxu0 %v5354_v49  ;;  %v6164_v49 = vld [vmem:[#allocation5 + $0x54] ss:$8 sps:$4 sm:$0xff]  }
 0x45f   :  { %5061 = vmatprep.subr.bf16.mxu0 %v5750_v2 }
 0x462   :  { %5062 = vmatpush3.bf16.msra.mxu0 %v5355_v41  ;;  %v5389_v41 = vld [vmem:[#allocation8 + $0x70] sm:$0xff]  }
 0x463   :  { %5063 = vmatprep.subr.bf16.mxu0 %v5750_v2 }
 0x466   :  { %5064 = vmatpush3.bf16.msra.mxu0 %v5356_v26  ;;  %v5390_v26 = vld [vmem:[#allocation8 + $0x30] sm:$0xff]  }
 0x467   :  { %5065 = vmatprep.subr.bf16.mxu0 %v5750_v2 }
 0x46a   :  { %5066 = vmatpush3.bf16.msra.mxu0 %v5357_v27  ;;  %v5391_v27 = vld [vmem:[#allocation8 + $0x68] sm:$0xff]  }
 0x46b   :  { %5067 = vmatprep.subr.bf16.mxu0 %v5750_v2 }
 0x46e   :  { %5068 = vmatpush3.bf16.msra.mxu0 %v5358_v28  ;;  %v5392_v28 = vld [vmem:[#allocation8 + $0x28] sm:$0xff]  }
 0x46f   :  { %5069 = vmatprep.subr.bf16.mxu0 %v5750_v2 }
 0x472   :  { %5070 = vmatpush3.bf16.msra.mxu0 %v5359_v62  ;;  %v1175_v62 = vld [vmem:[#allocation4] sm:$0x1] }
 0x473   :  { %5071 = vmatprep.subr.bf16.mxu0 %v5750_v2 }
 0x476   :  { %5072 = vmatpush3.bf16.msra.mxu0 %v5360_v63 }
 0x489   :  { %v644_v35 = vpop.permute.xlu0 %643 }
 0x48a   :  { %647 = vst.msk [vmem:[#allocation10] sm:$0x1] %vm646_vm6, %v644_v35 }
 0x519   :  { %v864_v53 = vpop.f32.mrf.mxu0 }
 0x51a   :  { %v865_v54 = vadd.f32 %v864_v53, %v823_v51  ;;  %v6171_v51 = vld [vmem:[#allocation5 + $0x44] ss:$8 sps:$4 sm:$0xff]   ;;  %v6177_v53 = vld [vmem:[#allocation5 + $0x34] ss:$8 sps:$4 sm:$0xff]  }
 0x51b   :  { %v866_v55 = vpop.f32.mrf.mxu0 }
 0x51c   :  { %v867_v56 = vadd.f32 %v866_v55, %v827_v52  ;;  %5577 = vtanh.f32 %v865_v54  ;;  %v6173_v52 = vld [vmem:[#allocation5 + $0x40] ss:$8 sps:$4 sm:$0xff]   ;;  %v6179_v54 = vld [vmem:[#allocation5 + $0x30] ss:$8 sps:$4 sm:$0xff]   ;;  %v6183_v55 = vld [vmem:[#allocation5 + $0x24] ss:$8 sps:$4 sm:$0xff]  }
 0x51d   :  { %v868_v57 = vpop.f32.mrf.mxu0 }
 0x51e   :  { %5579 = vtanh.f32 %v867_v56  ;;  %v6185_v56 = vld [vmem:[#allocation5 + $0x20] ss:$8 sps:$4 sm:$0xff]   ;;  %v6189_v57 = vld [vmem:[#allocation5 + $0x14] ss:$8 sps:$4 sm:$0xff]  }
 0x51f   :  { %v869_v58 = vpop.f32.mrf.mxu0 }
 0x520   :  { %v6191_v58 = vld [vmem:[#allocation5 + $0x10] ss:$8 sps:$4 sm:$0xff]  }
 0x529   :  { %v5578_v59 = vpop.eup %5577 }
 0x52a   :  { %v873_v25 = vpack.c.bf16 %v5578_v59, %v5578_v59  ;;  %v6195_v59 = vld [vmem:[#allocation5 + $0x4] ss:$8 sps:$4 sm:$0xff]  }
 0x52b   :  { %v5580_v60 = vpop.eup %5579 }
 0x52c   :  { %v874_v24 = vpack.c.bf16 %v5580_v60, %v5580_v60  ;;  %v6197_v60 = vld [vmem:[#allocation5] ss:$8 sps:$4 sm:$0xff]  }
 0x52e   :  { %1036 = vmatprep.mubr.bf16.mxu1 %v874_v24  ;;  %v5387_v24 = vld [vmem:[#allocation8 + $0x78] sm:$0xff]  }
 0x52f   :  { %1037 = vmatmul.mubr.bf16.vlgmr.msra.gmra.mxu1 %v873_v25  ;;  %v5388_v25 = vld [vmem:[#allocation8 + $0x38] sm:$0xff]   ;;  %4820 = vmatprep.subr.bf16.mxu0 %v5387_v24 }
 0x530   :  { %5081 = vmatprep.mubr.msk.bf16.mxu1 %vm5751_vm0, %v5750_v2  ;;  %5078 = vmatpush3.bf16.msra.mxu1 %v5361_v15  ;;  %v5403_v24 = vld [vmem:[%s6759_s9 + $0x38] sm:$0xff]  }
 0x531   :  { %5079 = vmatprep.subr.bf16.mxu1 %v5750_v2 }
 0x534   :  { %5080 = vmatpush3.bf16.msra.mxu1 %v5362_v16 }
 0x535   :  { %1365 = vmatprep.subr.bf16.mxu1 %v6155_v46 }
 0x5ef   :  { %v4802_v5 = vpop.f32.mrf.mxu1 }
 0x5f1   :  { %v4803_v8 = vpop.f32.mrf.mxu1 }
 0x5f2   :  { %v4804_v9 = vadd.f32 %v4803_v8, %v4802_v5  ;;  %v1196_v8 = vrot.slane %v6062_v19, %v5925_v37 }
 0x5f3   :  { %v4805_v10 = vpop.f32.mrf.mxu1 }
 0x5f4   :  { %v1039_v11 = vadd.f32 %v4804_v9, %v907_v7  ;;  %v1187_v9 = vld [vmem:[%s6753_s3] sm:$0x1] }
 0x5f5   :  { %v4806_v12 = vpop.f32.mrf.mxu1  ;;  %v1197_v10 = vmul.f32 %v1196_v8, %v1187_v9 }
 0x5f6   :  { %5581 = vtanh.f32 %v1039_v11  ;;  %v1253_v12 = vld [vmem:[%s6754_s4] sm:$0x1] }
 0x603   :  { %v5582_v13 = vpop.eup %5581 }
 0x604   :  { %v1045_v14 = vpack.c.bf16 %v5582_v13, %v5582_v13 }
 0x606   :  { %5074 = vmatmul.mubr.bf16.vlgmr.msra.gmra.mxu0 %v1045_v14 }
 0x607   :  { %4821 = vmatpush3.bf16.msra.mxu0 %v5388_v25  ;;  %v5404_v25 = vld [vmem:[%s6759_s9 + $0x30] sm:$0xff]  }
 0x608   :  { %4822 = vmatprep.subr.bf16.mxu0 %v5389_v41  ;;  %v1273_v41 = vld [vmem:[%s6756_s6] sm:$0x3] }
 0x60b   :  { %4823 = vmatpush3.bf16.msra.mxu0 %v5390_v26  ;;  %v1358_v26 = vrot.slane %v1273_v41, %v5925_v37 }
 0x60c   :  { %4824 = vmatprep.subr.bf16.mxu0 %v5391_v27  ;;  %v1362_v27 = vrot.slane %v1273_v41, %v5948_v0 }
 0x60f   :  { %4825 = vmatpush3.bf16.msra.mxu0 %v5392_v28 }
 0x6c6   :  { %v1145_v18 = vpop.f32.mrf.mxu0 }
 0x6c7   :  { %v1146_v29 = vadd.f32 %v1145_v18, %v1062_v17 }
 0x6c8   :  { %v5075_v30 = vpop.f32.mrf.mxu0 }
 0x6c9   :  { %5583 = vtanh.f32 %v1146_v29  ;;  %v5393_v29 = vld [vmem:[#allocation8 + $0x60] sm:$0xff]  }
 0x6ca   :  { %v1148_v35 = vpop.f32.mrf.mxu0  ;;  %v5394_v30 = vld [vmem:[#allocation8 + $0x20] sm:$0xff]   ;;  %4826 = vmatprep.subr.bf16.mxu0 %v5393_v29 }
 0x6cb   :  { %4827 = vmatpush3.bf16.msra.mxu0 %v5394_v30  ;;  %v5395_v35 = vld [vmem:[#allocation8 + $0x58] sm:$0xff]  }
 0x6cc   :  { %v5076_v36 = vpop.f32.mrf.mxu0  ;;  %4828 = vmatprep.subr.bf16.mxu0 %v5395_v35 }
 0x6cd   :  { %v5396_v36 = vld [vmem:[#allocation8 + $0x18] sm:$0xff]  }
 0x6cf   :  { %4829 = vmatpush3.bf16.msra.mxu0 %v5396_v36 }
 0x6d6   :  { %v5584_v39 = vpop.eup %5583 }
 0x6d7   :  { %v1152_v40 = vpack.c.bf16 %v5584_v39, %v5584_v39  ;;  %v5397_v39 = vld [vmem:[#allocation8 + $0x50] sm:$0xff]  }
 0x6d8   :  { %4830 = vmatprep.subr.bf16.mxu0 %v5397_v39 }
 0x6d9   :  { %5082 = vmatmul.mubr.msk.bf16.vlgmr.msra.gmra.mxu1 %vm139_vm4, %v1152_v40  ;;  %v1154_v43 = vunpack.c.l.bf16 %v1152_v40  ;;  %v5398_v40 = vld [vmem:[#allocation8 + $0x10] sm:$0xff]  }
 0x6da   :  { %1397 = vmatprep.mubr.bf16.mxu1 %v5752_v3  ;;  %1366 = vmatpush1.bf16.msra.mxu1 %v6153_v38 }
 0x6db   :  { %v1156_v44 = vmul.f32 %v1155_v42, %v1154_v43  ;;  %1367 = vmatprep.subr.bf16.mxu1 %v6157_v47  ;;  %4831 = vmatpush3.bf16.msra.mxu0 %v5398_v40  ;;  %v5399_v42 = vld [vmem:[#allocation8 + $0x48] sm:$0xff]  }
 0x6dc   :  { %v5400_v43 = vld [vmem:[#allocation8 + $0x8] sm:$0xff]   ;;  %4832 = vmatprep.subr.bf16.mxu0 %v5399_v42 }
 0x6dd   :  { %v1157_v45 = vsel %vm90_vm1, %v1156_v44, 0.0  ;;  %v5401_v44 = vld [vmem:[#allocation8 + $0x40] sm:$0xff]  }
 0x6de   :  { %1158 = vadd.xlane.f32.xlu1 %v1157_v45  ;;  %1368 = vmatpush1.bf16.msra.mxu1 %v6161_v48  ;;  %v5402_v45 = vld [vmem:[#allocation8] sm:$0xff]  }
 0x6df   :  { %1369 = vmatprep.subr.bf16.mxu1 %v6164_v49  ;;  %4833 = vmatpush3.bf16.msra.mxu0 %v5400_v43  ;;  %v5411_v43 = vld [vmem:[%s6752_s2 + $0x8] sm:$0xff]  }
 0x6e0   :  { %4834 = vmatprep.subr.bf16.mxu0 %v5401_v44  ;;  %v5412_v44 = vld [vmem:[%s6752_s2] sm:$0xff]  }
 0x6e2   :  { %1370 = vmatpush1.bf16.msra.mxu1 %v6167_v50 }
 0x6e3   :  { %1371 = vmatprep.subr.bf16.mxu1 %v6171_v51  ;;  %4835 = vmatpush3.bf16.msra.mxu0 %v5402_v45  ;;  %v1597_v45 = vld [vmem:[%s6760_s10] sm:$0x1] }
 0x6e4   :  { %5105 = vmatprep.subr.bf16.mxu0 %v5750_v2 }
 0x6e6   :  { %1372 = vmatpush1.bf16.msra.mxu1 %v6173_v52 }
 0x6e7   :  { %1373 = vmatprep.subr.bf16.mxu1 %v6177_v53 }
 0x6ea   :  { %1374 = vmatpush1.bf16.msra.mxu1 %v6179_v54 }
 0x6eb   :  { %1375 = vmatprep.subr.bf16.mxu1 %v6183_v55 }
 0x6ee   :  { %1376 = vmatpush1.bf16.msra.mxu1 %v6185_v56 }
 0x6ef   :  { %1377 = vmatprep.subr.bf16.mxu1 %v6189_v57 }
 0x6f2   :  { %1378 = vmatpush1.bf16.msra.mxu1 %v6191_v58 }
 0x6f3   :  { %1379 = vmatprep.subr.bf16.mxu1 %v6195_v59 }
 0x6f6   :  { %1380 = vmatpush1.bf16.msra.mxu1 %v6197_v60 }
 0x6f7   :  { %5085 = vmatprep.subr.bf16.mxu1 %v5750_v2 }
 0x767   :  { %v1159_v63 = vpop.xlane.xlu1 %1158 }
 0x768   :  { %v1174_v5 = vadd.f32 %v6091_v33, %v1159_v63 }
 0x76a   :  { %v1176_v7 = vadd.f32 %v1175_v62, %v1174_v5 }
 0x76c   :  { %1178 = vrot.lane.b32.xlu0 %v1176_v7, %s5761_s12  ;;  %s5772_s12 = smov 121  }
 0x799   :  { %v1247_v11 = vpop.f32.mrf.mxu1 }
 0x79a   :  { %v1248_v13 = vadd.f32 %v1247_v11, %v1197_v10 }
 0x79b   :  { %v5083_v14 = vpop.f32.mrf.mxu1 }
 0x79c   :  { %v1254_v33 = vadd.f32 %v1253_v12, %v1248_v13  ;;  %v5405_v13 = vld [vmem:[%s6759_s9 + $0x28] sm:$0xff]   ;;  %v5406_v14 = vld [vmem:[%s6759_s9 + $0x20] sm:$0xff]  }
 0x79d   :  { %v1250_v15 = vpop.f32.mrf.mxu1 }
 0x79e   :  { %5585 = vtanh.f32 %v1254_v33  ;;  %v5407_v33 = vld [vmem:[%s6759_s9 + $0x18] sm:$0xff]   ;;  %v5408_v15 = vld [vmem:[%s6759_s9 + $0x10] sm:$0xff]  }
 0x79f   :  { %v5084_v16 = vpop.f32.mrf.mxu1 }
 0x7a0   :  { %v5409_v16 = vld [vmem:[%s6759_s9 + $0x8] sm:$0xff]  }
 0x7ab   :  { %v5586_v17 = vpop.eup %5585 }
 0x7ac   :  { %v1256_v18 = vpack.c.bf16 %v5586_v17, %v5586_v17  ;;  %v5410_v17 = vld [vmem:[%s6759_s9] sm:$0xff]  }
 0x7ae   :  { %1398 = vmatmul.mubr.bf16.vlgmr.msra.gmra.mxu1 %v1256_v18 }
 0x7af   :  { %5101 = vmatprep.mubr.msk.bf16.mxu1 %vm5751_vm0, %v5750_v2  ;;  %5086 = vmatpush3.bf16.msra.mxu1 %v5403_v24 }
 0x7b0   :  { %5087 = vmatprep.subr.bf16.mxu1 %v5750_v2 }
 0x7b3   :  { %5088 = vmatpush3.bf16.msra.mxu1 %v5404_v25 }
 0x7b4   :  { %5089 = vmatprep.subr.bf16.mxu1 %v5750_v2 }
 0x7b7   :  { %5090 = vmatpush3.bf16.msra.mxu1 %v5405_v13  ;;  %v5417_v13 = vld [vmem:[#allocation8 + $0x68] sm:$0xff]  }
 0x7b8   :  { %5091 = vmatprep.subr.bf16.mxu1 %v5750_v2 }
 0x7bb   :  { %5092 = vmatpush3.bf16.msra.mxu1 %v5406_v14  ;;  %v5418_v14 = vld [vmem:[#allocation8 + $0x28] sm:$0xff]  }
 0x7bc   :  { %5093 = vmatprep.subr.bf16.mxu1 %v5750_v2 }
 0x7bf   :  { %5094 = vmatpush3.bf16.msra.mxu1 %v5407_v33  ;;  %v1710_v33 = vld [vmem:[#allocation4] sm:$0x1] }
 0x7c0   :  { %5095 = vmatprep.subr.bf16.mxu1 %v5750_v2 }
 0x7c3   :  { %5096 = vmatpush3.bf16.msra.mxu1 %v5408_v15 }
 0x7c4   :  { %5097 = vmatprep.subr.bf16.mxu1 %v5750_v2 }
 0x7c7   :  { %5098 = vmatpush3.bf16.msra.mxu1 %v5409_v16 }
 0x7c8   :  { %5099 = vmatprep.subr.bf16.mxu1 %v5750_v2 }
 0x7cb   :  { %5100 = vmatpush3.bf16.msra.mxu1 %v5410_v17 }
 0x7de   :  { %v1179_v19 = vpop.permute.xlu0 %1178 }
 0x7df   :  { %1182 = vst.msk [vmem:[#allocation10] sm:$0x1] %vm1181_vm7, %v1179_v19  ;;  %v1442_v19 = vld [vmem:[%s6758_s8] sm:$0x1] }
 0x86e   :  { %v1399_v28 = vpop.f32.mrf.mxu1 }
 0x86f   :  { %v1400_v62 = vadd.f32 %v1399_v28, %v1358_v26 }
 0x870   :  { %v1401_v63 = vpop.f32.mrf.mxu1 }
 0x871   :  { %v1402_v5 = vadd.f32 %v1401_v63, %v1362_v27  ;;  %5587 = vtanh.f32 %v1400_v62  ;;  %v1690_v63 = vld [vmem:[%s6761_s11] sm:$0x1] }
 0x872   :  { %v1403_v7 = vpop.f32.mrf.mxu1 }
 0x873   :  { %5589 = vtanh.f32 %v1402_v5 }
 0x874   :  { %v1404_v8 = vpop.f32.mrf.mxu1 }
 0x87e   :  { %v5588_v9 = vpop.eup %5587 }
 0x87f   :  { %v1408_v12 = vpack.c.bf16 %v5588_v9, %v5588_v9  ;;  %v5413_v9 = vld [vmem:[#allocation8 + $0x78] sm:$0xff]  }
 0x880   :  { %v5590_v10 = vpop.eup %5589  ;;  %4854 = vmatprep.subr.bf16.mxu1 %v5413_v9  ;;  %v1808_v9 = vld [vmem:[%s6756_s6] sm:$0x3] }
 0x881   :  { %v1409_v11 = vpack.c.bf16 %v5590_v10, %v5590_v10  ;;  %v5414_v10 = vld [vmem:[#allocation8 + $0x38] sm:$0xff]  }
 0x883   :  { %1571 = vmatprep.mubr.bf16.mxu0 %v1409_v11  ;;  %v5415_v11 = vld [vmem:[#allocation8 + $0x70] sm:$0xff]  }
 0x884   :  { %1572 = vmatmul.mubr.bf16.vlgmr.msra.gmra.mxu0 %v1408_v12  ;;  %v5416_v12 = vld [vmem:[#allocation8 + $0x30] sm:$0xff]  }
 0x885   :  { %5109 = vmatprep.mubr.msk.bf16.mxu0 %vm5751_vm0, %v5750_v2  ;;  %5106 = vmatpush3.bf16.msra.mxu0 %v5411_v43 }
 0x886   :  { %5107 = vmatprep.subr.bf16.mxu0 %v5750_v2 }
 0x889   :  { %5108 = vmatpush3.bf16.msra.mxu0 %v5412_v44 }
 0x88a   :  { %1900 = vmatprep.subr.bf16.mxu0 %v6155_v46 }
 0x944   :  { %v4836_v18 = vpop.f32.mrf.mxu0 }
 0x946   :  { %v4837_v29 = vpop.f32.mrf.mxu0 }
 0x947   :  { %v4838_v30 = vadd.f32 %v4837_v29, %v4836_v18  ;;  %v1731_v18 = vrot.slane %v6064_v20, %v5925_v37 }
 0x948   :  { %v4839_v35 = vpop.f32.mrf.mxu0 }
 0x949   :  { %v1574_v36 = vadd.f32 %v4838_v30, %v1442_v19  ;;  %v1722_v19 = vld [vmem:[%s6753_s3] sm:$0x1] }
 0x94a   :  { %v4840_v39 = vpop.f32.mrf.mxu0  ;;  %v1732_v29 = vmul.f32 %v1731_v18, %v1722_v19  ;;  %v1788_v35 = vld [vmem:[%s6754_s4] sm:$0x1] }
 0x94b   :  { %5591 = vtanh.f32 %v1574_v36 }
 0x958   :  { %v5592_v40 = vpop.eup %5591 }
 0x959   :  { %v1580_v42 = vpack.c.bf16 %v5592_v40, %v5592_v40 }
 0x95b   :  { %5102 = vmatmul.mubr.bf16.vlgmr.msra.gmra.mxu1 %v1580_v42 }
 0x95c   :  { %4855 = vmatpush3.bf16.msra.mxu1 %v5414_v10  ;;  %v1893_v10 = vrot.slane %v1808_v9, %v5925_v37 }
 0x95d   :  { %4856 = vmatprep.subr.bf16.mxu1 %v5415_v11  ;;  %v1897_v11 = vrot.slane %v1808_v9, %v5948_v0 }
 0x960   :  { %4857 = vmatpush3.bf16.msra.mxu1 %v5416_v12 }
 0x961   :  { %4858 = vmatprep.subr.bf16.mxu1 %v5417_v13 }
 0x964   :  { %4859 = vmatpush3.bf16.msra.mxu1 %v5418_v14 }
 0xa1b   :  { %v1680_v24 = vpop.f32.mrf.mxu1 }
 0xa1c   :  { %v1681_v25 = vadd.f32 %v1680_v24, %v1597_v45  ;;  %v5419_v45 = vld [vmem:[#allocation8 + $0x60] sm:$0xff]  }
 0xa1d   :  { %v5103_v41 = vpop.f32.mrf.mxu1  ;;  %v5420_v24 = vld [vmem:[#allocation8 + $0x20] sm:$0xff]   ;;  %4860 = vmatprep.subr.bf16.mxu1 %v5419_v45 }
 0xa1e   :  { %5593 = vtanh.f32 %v1681_v25  ;;  %4861 = vmatpush3.bf16.msra.mxu1 %v5420_v24  ;;  %v5421_v25 = vld [vmem:[#allocation8 + $0x58] sm:$0xff]  }
 0xa1f   :  { %v1683_v26 = vpop.f32.mrf.mxu1  ;;  %v5422_v41 = vld [vmem:[#allocation8 + $0x18] sm:$0xff]   ;;  %4862 = vmatprep.subr.bf16.mxu1 %v5421_v25 }
 0xa20   :  { %v5423_v26 = vld [vmem:[#allocation8 + $0x50] sm:$0xff]  }
 0xa21   :  { %v5104_v27 = vpop.f32.mrf.mxu1 }
 0xa22   :  { %4863 = vmatpush3.bf16.msra.mxu1 %v5422_v41  ;;  %v5424_v27 = vld [vmem:[#allocation8 + $0x10] sm:$0xff]  }
 0xa23   :  { %4864 = vmatprep.subr.bf16.mxu1 %v5423_v26 }
 0xa26   :  { %4865 = vmatpush3.bf16.msra.mxu1 %v5424_v27  ;;  %v5437_v27 = vld [vmem:[%s6752_s2 + $0x8] sm:$0xff]  }
 0xa2b   :  { %v5594_v28 = vpop.eup %5593 }
 0xa2c   :  { %v1687_v62 = vpack.c.bf16 %v5594_v28, %v5594_v28  ;;  %v5425_v28 = vld [vmem:[#allocation8 + $0x48] sm:$0xff]  }
 0xa2d   :  { %4866 = vmatprep.subr.bf16.mxu1 %v5425_v28  ;;  %v5438_v28 = vld [vmem:[%s6752_s2] sm:$0xff]  }
 0xa2e   :  { %5110 = vmatmul.mubr.msk.bf16.vlgmr.msra.gmra.mxu0 %vm139_vm4, %v1687_v62  ;;  %v1689_v5 = vunpack.c.l.bf16 %v1687_v62  ;;  %v5426_v62 = vld [vmem:[#allocation8 + $0x8] sm:$0xff]  }
 0xa2f   :  { %1901 = vmatpush1.bf16.msra.mxu0 %v6153_v38  ;;  %1932 = vmatprep.mubr.bf16.mxu0 %v5752_v3 }
 0xa30   :  { %v1691_v7 = vmul.f32 %v1690_v63, %v1689_v5  ;;  %1902 = vmatprep.subr.bf16.mxu0 %v6157_v47  ;;  %4867 = vmatpush3.bf16.msra.mxu1 %v5426_v62  ;;  %v5427_v63 = vld [vmem:[#allocation8 + $0x40] sm:$0xff]   ;;  %v2132_v62 = vld [vmem:[%s6760_s10] sm:$0x1] }
 0xa31   :  { %v5428_v5 = vld [vmem:[#allocation8] sm:$0xff]   ;;  %4868 = vmatprep.subr.bf16.mxu1 %v5427_v63 }
 0xa32   :  { %v1692_v8 = vsel %vm90_vm1, %v1691_v7, 0.0  ;;  %v5429_v7 = vld [vmem:[%s6759_s9 + $0x38] sm:$0xff]  }
 0xa33   :  { %1693 = vadd.xlane.f32.xlu0 %v1692_v8  ;;  %1903 = vmatpush1.bf16.msra.mxu0 %v6161_v48  ;;  %v5430_v8 = vld [vmem:[%s6759_s9 + $0x30] sm:$0xff]  }
 0xa34   :  { %1904 = vmatprep.subr.bf16.mxu0 %v6164_v49  ;;  %4869 = vmatpush3.bf16.msra.mxu1 %v5428_v5 }
 0xa35   :  { %5133 = vmatprep.subr.bf16.mxu1 %v5750_v2 }
 0xa37   :  { %1905 = vmatpush1.bf16.msra.mxu0 %v6167_v50 }
 0xa38   :  { %1906 = vmatprep.subr.bf16.mxu0 %v6171_v51 }
 0xa3b   :  { %1907 = vmatpush1.bf16.msra.mxu0 %v6173_v52 }
 0xa3c   :  { %1908 = vmatprep.subr.bf16.mxu0 %v6177_v53 }
 0xa3f   :  { %1909 = vmatpush1.bf16.msra.mxu0 %v6179_v54 }
 0xa40   :  { %1910 = vmatprep.subr.bf16.mxu0 %v6183_v55 }
 0xa43   :  { %1911 = vmatpush1.bf16.msra.mxu0 %v6185_v56 }
 0xa44   :  { %1912 = vmatprep.subr.bf16.mxu0 %v6189_v57 }
 0xa47   :  { %1913 = vmatpush1.bf16.msra.mxu0 %v6191_v58 }
 0xa48   :  { %1914 = vmatprep.subr.bf16.mxu0 %v6195_v59 }
 0xa4b   :  { %1915 = vmatpush1.bf16.msra.mxu0 %v6197_v60 }
 0xa4c   :  { %5113 = vmatprep.subr.bf16.mxu0 %v5750_v2 }
 0xabc   :  { %v1694_v15 = vpop.xlane.xlu0 %1693 }
 0xabd   :  { %v1709_v16 = vadd.f32 %v6072_v61, %v1694_v15 }
 0xabf   :  { %v1711_v17 = vadd.f32 %v1710_v33, %v1709_v16 }
 0xac1   :  { %1713 = vrot.lane.b32.xlu1 %v1711_v17, %s5762_s25 }
 0xaee   :  { %v1782_v30 = vpop.f32.mrf.mxu0 }
 0xaef   :  { %v1783_v36 = vadd.f32 %v1782_v30, %v1732_v29  ;;  %v5431_v30 = vld [vmem:[%s6759_s9 + $0x28] sm:$0xff]  }
 0xaf0   :  { %v5111_v39 = vpop.f32.mrf.mxu0 }
 0xaf1   :  { %v1789_v61 = vadd.f32 %v1788_v35, %v1783_v36  ;;  %v5432_v35 = vld [vmem:[%s6759_s9 + $0x20] sm:$0xff]   ;;  %v5433_v36 = vld [vmem:[%s6759_s9 + $0x18] sm:$0xff]   ;;  %v5434_v39 = vld [vmem:[%s6759_s9 + $0x10] sm:$0xff]  }
 0xaf2   :  { %v1785_v40 = vpop.f32.mrf.mxu0 }
 0xaf3   :  { %5595 = vtanh.f32 %v1789_v61  ;;  %v5435_v61 = vld [vmem:[%s6759_s9 + $0x8] sm:$0xff]   ;;  %v5436_v40 = vld [vmem:[%s6759_s9] sm:$0xff]  }
 0xaf4   :  { %v5112_v42 = vpop.f32.mrf.mxu0 }
 0xb00   :  { %v5596_v43 = vpop.eup %5595 }
 0xb01   :  { %v1791_v44 = vpack.c.bf16 %v5596_v43, %v5596_v43  ;;  %v1977_v43 = vld [vmem:[%s6758_s8] sm:$0x1] }
 0xb03   :  { %1933 = vmatmul.mubr.bf16.vlgmr.msra.gmra.mxu0 %v1791_v44 }
 0xb04   :  { %5129 = vmatprep.mubr.msk.bf16.mxu0 %vm5751_vm0, %v5750_v2  ;;  %5114 = vmatpush3.bf16.msra.mxu0 %v5429_v7 }
 0xb05   :  { %5115 = vmatprep.subr.bf16.mxu0 %v5750_v2 }
 0xb08   :  { %5116 = vmatpush3.bf16.msra.mxu0 %v5430_v8 }
 0xb09   :  { %5117 = vmatprep.subr.bf16.mxu0 %v5750_v2 }
 0xb0c   :  { %5118 = vmatpush3.bf16.msra.mxu0 %v5431_v30  ;;  %v5450_v30 = vld [vmem:[#allocation8 + $0x10] sm:$0xff]  }
 0xb0d   :  { %5119 = vmatprep.subr.bf16.mxu0 %v5750_v2 }
 0xb10   :  { %5120 = vmatpush3.bf16.msra.mxu0 %v5432_v35  ;;  %v5451_v35 = vld [vmem:[#allocation8 + $0x48] sm:$0xff]  }
 0xb11   :  { %5121 = vmatprep.subr.bf16.mxu0 %v5750_v2 }
 0xb14   :  { %5122 = vmatpush3.bf16.msra.mxu0 %v5433_v36  ;;  %v5452_v36 = vld [vmem:[#allocation8 + $0x8] sm:$0xff]  }
 0xb15   :  { %5123 = vmatprep.subr.bf16.mxu0 %v5750_v2 }
 0xb18   :  { %5124 = vmatpush3.bf16.msra.mxu0 %v5434_v39  ;;  %v5453_v39 = vld [vmem:[#allocation8 + $0x40] sm:$0xff]  }
 0xb19   :  { %5125 = vmatprep.subr.bf16.mxu0 %v5750_v2 }
 0xb1c   :  { %5126 = vmatpush3.bf16.msra.mxu0 %v5435_v61  ;;  %v5454_v61 = vld [vmem:[#allocation8] sm:$0xff]  }
 0xb1d   :  { %5127 = vmatprep.subr.bf16.mxu0 %v5750_v2 }
 0xb20   :  { %5128 = vmatpush3.bf16.msra.mxu0 %v5436_v40  ;;  %v5455_v40 = vld [vmem:[%s6759_s9 + $0x38] sm:$0xff]  }
 0xb33   :  { %v1714_v20 = vpop.permute.xlu1 %1713 }
 0xb34   :  { %1717 = vst.msk [vmem:[#allocation10] sm:$0x1] %vm1716_vm8, %v1714_v20 }
 0xbc3   :  { %v1934_v12 = vpop.f32.mrf.mxu0 }
 0xbc4   :  { %v1935_v13 = vadd.f32 %v1934_v12, %v1893_v10  ;;  %v2225_v12 = vld [vmem:[%s6761_s11] sm:$0x1] }
 0xbc5   :  { %v1936_v14 = vpop.f32.mrf.mxu0 }
 0xbc6   :  { %v1937_v33 = vadd.f32 %v1936_v14, %v1897_v11  ;;  %5597 = vtanh.f32 %v1935_v13 }
 0xbc7   :  { %v1938_v15 = vpop.f32.mrf.mxu0 }
 0xbc8   :  { %5599 = vtanh.f32 %v1937_v33 }
 0xbc9   :  { %v1939_v16 = vpop.f32.mrf.mxu0 }
 0xbd3   :  { %v5598_v17 = vpop.eup %5597 }
 0xbd4   :  { %v1943_v29 = vpack.c.bf16 %v5598_v17, %v5598_v17  ;;  %v5446_v17 = vld [vmem:[#allocation8 + $0x20] sm:$0xff]  }
 0xbd5   :  { %v5600_v18 = vpop.eup %5599 }
 0xbd6   :  { %v1944_v19 = vpack.c.bf16 %v5600_v18, %v5600_v18  ;;  %v5447_v18 = vld [vmem:[#allocation8 + $0x58] sm:$0xff]  }
 0xbd8   :  { %2106 = vmatprep.mubr.bf16.mxu1 %v1944_v19  ;;  %v5448_v19 = vld [vmem:[#allocation8 + $0x18] sm:$0xff]  }
 0xbd9   :  { %2107 = vmatmul.mubr.bf16.vlgmr.msra.gmra.mxu1 %v1943_v29  ;;  %v5449_v29 = vld [vmem:[#allocation8 + $0x50] sm:$0xff]  }
 0xbda   :  { %5137 = vmatprep.mubr.msk.bf16.mxu1 %vm5751_vm0, %v5750_v2  ;;  %5134 = vmatpush3.bf16.msra.mxu1 %v5437_v27 }
 0xbdb   :  { %5135 = vmatprep.subr.bf16.mxu1 %v5750_v2 }
 0xbde   :  { %5136 = vmatpush3.bf16.msra.mxu1 %v5438_v28 }
 0xbdf   :  { %2435 = vmatprep.subr.bf16.mxu1 %v6155_v46 }
 0xc99   :  { %v4870_v42 = vpop.f32.mrf.mxu1 }
 0xc9b   :  { %v4871_v44 = vpop.f32.mrf.mxu1 }
 0xc9c   :  { %v4872_v20 = vadd.f32 %v4871_v44, %v4870_v42  ;;  %v5456_v42 = vld [vmem:[%s6759_s9 + $0x30] sm:$0xff]  }
 0xc9d   :  { %v4873_v45 = vpop.f32.mrf.mxu1 }
 0xc9e   :  { %v2109_v24 = vadd.f32 %v4872_v20, %v1977_v43  ;;  %v2343_v43 = vld [vmem:[%s6756_s6] sm:$0x3] }
 0xc9f   :  { %v4874_v25 = vpop.f32.mrf.mxu1  ;;  %v2428_v44 = vrot.slane %v2343_v43, %v5925_v37  ;;  %v2432_v20 = vrot.slane %v2343_v43, %v5948_v0  ;;  %v6472_v43 = vld [vmem:[#allocation5 + $0x44] ss:$8 sps:$4 sm:$0xff]  }
 0xca0   :  { %5601 = vtanh.f32 %v2109_v24 }
 0xcad   :  { %v5602_v41 = vpop.eup %5601 }
 0xcae   :  { %v2115_v26 = vpack.c.bf16 %v5602_v41, %v5602_v41 }
 0xcb0   :  { %5130 = vmatmul.mubr.bf16.vlgmr.msra.gmra.mxu0 %v2115_v26 }
 0xd70   :  { %v2215_v63 = vpop.f32.mrf.mxu0 }
 0xd71   :  { %v2216_v5 = vadd.f32 %v2215_v63, %v2132_v62 }
 0xd72   :  { %v5131_v7 = vpop.f32.mrf.mxu0 }
 0xd73   :  { %5603 = vtanh.f32 %v2216_v5  ;;  %v5457_v7 = vld [vmem:[%s6759_s9 + $0x28] sm:$0xff]  }
 0xd74   :  { %v2218_v8 = vpop.f32.mrf.mxu0 }
 0xd75   :  { %v5458_v8 = vld [vmem:[%s6759_s9 + $0x20] sm:$0xff]  }
 0xd76   :  { %v5132_v9 = vpop.f32.mrf.mxu0 }
 0xd77   :  { %v5459_v9 = vld [vmem:[%s6759_s9 + $0x18] sm:$0xff]  }
 0xd80   :  { %v5604_v10 = vpop.eup %5603 }
 0xd81   :  { %v2222_v11 = vpack.c.bf16 %v5604_v10, %v5604_v10  ;;  %v5460_v10 = vld [vmem:[%s6759_s9 + $0x10] sm:$0xff]  }
 0xd83   :  { %5138 = vmatmul.mubr.msk.bf16.vlgmr.msra.gmra.mxu1 %vm139_vm4, %v2222_v11  ;;  %v2224_v13 = vunpack.c.l.bf16 %v2222_v11  ;;  %v5461_v11 = vld [vmem:[%s6759_s9 + $0x8] sm:$0xff]  }
 0xd84   :  { %2436 = vmatpush1.bf16.msra.mxu1 %v6153_v38  ;;  %2467 = vmatprep.mubr.bf16.mxu1 %v5752_v3  ;;  %v5439_v38 = vld [vmem:[#allocation8 + $0x78] sm:$0xff]  }
 0xd85   :  { %v2226_v46 = vmul.f32 %v2225_v12, %v2224_v13  ;;  %2437 = vmatprep.subr.bf16.mxu1 %v6157_v47  ;;  %v5440_v47 = vld [vmem:[#allocation8 + $0x38] sm:$0xff]   ;;  %4888 = vmatprep.subr.bf16.mxu0 %v5439_v38 }
 0xd86   :  { %4889 = vmatpush3.bf16.msra.mxu0 %v5440_v47  ;;  %v5653_v12 = vld [vmem:[%s6750_s0] sm:$0x1] }
 0xd87   :  { %v2227_v14 = vsel %vm90_vm1, %v2226_v46, 0.0  ;;  %v3305_v13 = vmul.f32 %v5653_v12, %v6087_v31  ;;  %v5462_v46 = vld [vmem:[%s6759_s9] sm:$0xff]   ;;  %v5494_v12 = vld [vmem:[#allocation8 + $0x28] sm:$0xff]  }
 0xd88   :  { %2228 = vadd.xlane.f32.xlu1 %v2227_v14  ;;  %2438 = vmatpush1.bf16.msra.mxu1 %v6161_v48  ;;  %v5441_v48 = vld [vmem:[#allocation8 + $0x70] sm:$0xff]   ;;  %v2512_v47 = vld [vmem:[%s6758_s8] sm:$0x1] }
 0xd89   :  { %2439 = vmatprep.subr.bf16.mxu1 %v6164_v49  ;;  %v5442_v49 = vld [vmem:[#allocation8 + $0x30] sm:$0xff]   ;;  %4890 = vmatprep.subr.bf16.mxu0 %v5441_v48  ;;  %v3310_v14 = vrot.slane %v3305_v13, %v5925_v37  ;;  %v2780_v13 = vld [vmem:[#allocation4] sm:$0x1] }
 0xd8a   :  { %4891 = vmatpush3.bf16.msra.mxu0 %v5442_v49 }
 0xd8b   :  { %3311 = vrot.lane.b32.xlu0 %v3310_v14, %s5770_s13 }
 0xd8c   :  { %2440 = vmatpush1.bf16.msra.mxu1 %v6167_v50  ;;  %v5443_v50 = vld [vmem:[#allocation8 + $0x68] sm:$0xff]  }
 0xd8d   :  { %2441 = vmatprep.subr.bf16.mxu1 %v6171_v51  ;;  %v5444_v51 = vld [vmem:[#allocation8 + $0x28] sm:$0xff]   ;;  %4892 = vmatprep.subr.bf16.mxu0 %v5443_v50 }
 0xd8e   :  { %4893 = vmatpush3.bf16.msra.mxu0 %v5444_v51 }
 0xd90   :  { %2442 = vmatpush1.bf16.msra.mxu1 %v6173_v52  ;;  %v2266_v52 = vrot.slane %v6066_v21, %v5925_v37  ;;  %v5445_v21 = vld [vmem:[#allocation8 + $0x60] sm:$0xff]  }
 0xd91   :  { %2443 = vmatprep.subr.bf16.mxu1 %v6177_v53  ;;  %v2257_v53 = vld [vmem:[%s6753_s3] sm:$0x1]  ;;  %4894 = vmatprep.subr.bf16.mxu0 %v5445_v21 }
 0xd92   :  { %4895 = vmatpush3.bf16.msra.mxu0 %v5446_v17 }
 0xd93   :  { %4896 = vmatprep.subr.bf16.mxu0 %v5447_v18 }
 0xd94   :  { %2444 = vmatpush1.bf16.msra.mxu1 %v6179_v54  ;;  %v2267_v54 = vmul.f32 %v2266_v52, %v2257_v53 }
 0xd95   :  { %2445 = vmatprep.subr.bf16.mxu1 %v6183_v55 }
 0xd96   :  { %4897 = vmatpush3.bf16.msra.mxu0 %v5448_v19 }
 0xd97   :  { %4898 = vmatprep.subr.bf16.mxu0 %v5449_v29 }
 0xd98   :  { %2446 = vmatpush1.bf16.msra.mxu1 %v6185_v56  ;;  %v2323_v56 = vld [vmem:[%s6754_s4] sm:$0x1] }
 0xd99   :  { %2447 = vmatprep.subr.bf16.mxu1 %v6189_v57 }
 0xd9a   :  { %4899 = vmatpush3.bf16.msra.mxu0 %v5450_v30 }
 0xd9b   :  { %4900 = vmatprep.subr.bf16.mxu0 %v5451_v35  ;;  %v6454_v35 = vld [vmem:[#allocation5 + $0x70] ss:$8 sps:$4 sm:$0xff]  }
 0xd9c   :  { %2448 = vmatpush1.bf16.msra.mxu1 %v6191_v58 }
 0xd9d   :  { %2449 = vmatprep.subr.bf16.mxu1 %v6195_v59 }
 0xd9e   :  { %4901 = vmatpush3.bf16.msra.mxu0 %v5452_v36  ;;  %v6456_v36 = vld [vmem:[#allocation5 + $0x74] ss:$8 sps:$4 sm:$0xff]  }
 0xd9f   :  { %4902 = vmatprep.subr.bf16.mxu0 %v5453_v39  ;;  %v6458_v39 = vld [vmem:[#allocation5 + $0x64] ss:$8 sps:$4 sm:$0xff]  }
 0xda0   :  { %2450 = vmatpush1.bf16.msra.mxu1 %v6197_v60 }
 0xda1   :  { %5141 = vmatprep.subr.bf16.mxu1 %v5750_v2 }
 0xda2   :  { %4903 = vmatpush3.bf16.msra.mxu0 %v5454_v61  ;;  %v6462_v61 = vld [vmem:[#allocation5 + $0x60] ss:$8 sps:$4 sm:$0xff]  }
 0xda3   :  { %5161 = vmatprep.subr.bf16.mxu0 %v5750_v2 }
 0xe43   :  { %v2317_v55 = vpop.f32.mrf.mxu1 }
 0xe44   :  { %v2318_v57 = vadd.f32 %v2317_v55, %v2267_v54  ;;  %v5463_v54 = vld [vmem:[%s6752_s2 + $0x8] sm:$0xff]   ;;  %v5464_v55 = vld [vmem:[%s6752_s2] sm:$0xff]  }
 0xe45   :  { %v5139_v58 = vpop.f32.mrf.mxu1 }
 0xe46   :  { %v2324_v59 = vadd.f32 %v2323_v56, %v2318_v57  ;;  %v5654_v56 = vld [vmem:[%s6750_s0] sm:$0x1] }
 0xe47   :  { %v2320_v60 = vpop.f32.mrf.mxu1  ;;  %v2770_v57 = vmul.f32 %v5654_v56, %v6085_v1  ;;  %v2760_v1 = vld [vmem:[%s6761_s11] sm:$0x1] }
 0xe48   :  { %5605 = vtanh.f32 %v2324_v59  ;;  %v2667_v59 = vld [vmem:[%s6760_s10] sm:$0x1] }
 0xe49   :  { %v5140_v33 = vpop.f32.mrf.mxu1  ;;  %v2775_v58 = vrot.slane %v2770_v57, %v5925_v37 }
 0xe4b   :  { %2776 = vrot.lane.b32.xlu1 %v2775_v58, %s5771_s7  ;;  %v5496_v58 = vld [vmem:[#allocation8 + $0x20] sm:$0xff]  }
 0xe55   :  { %v5606_v15 = vpop.eup %5605 }
 0xe56   :  { %v2326_v16 = vpack.c.bf16 %v5606_v15, %v5606_v15 }
 0xe58   :  { %2468 = vmatmul.mubr.bf16.vlgmr.msra.gmra.mxu1 %v2326_v16 }
 0xe59   :  { %5157 = vmatprep.mubr.msk.bf16.mxu1 %vm5751_vm0, %v5750_v2  ;;  %5142 = vmatpush3.bf16.msra.mxu1 %v5455_v40  ;;  %v6465_v40 = vld [vmem:[#allocation5 + $0x54] ss:$8 sps:$4 sm:$0xff]  }
 0xe5a   :  { %5143 = vmatprep.subr.bf16.mxu1 %v5750_v2 }
 0xe5d   :  { %5144 = vmatpush3.bf16.msra.mxu1 %v5456_v42  ;;  %v6468_v42 = vld [vmem:[#allocation5 + $0x50] ss:$8 sps:$4 sm:$0xff]  }
 0xe5e   :  { %5145 = vmatprep.subr.bf16.mxu1 %v5750_v2 }
 0xe61   :  { %5146 = vmatpush3.bf16.msra.mxu1 %v5457_v7  ;;  %v6503_v7 = vpop.xlane.xlu1 %2228 }
 0xe62   :  { %5147 = vmatprep.subr.bf16.mxu1 %v5750_v2 }
 0xe65   :  { %5148 = vmatpush3.bf16.msra.mxu1 %v5458_v8  ;;  %v6505_v8 = vpop.permute.xlu0 %3311 }
 0xe66   :  { %5149 = vmatprep.subr.bf16.mxu1 %v5750_v2 }
 0xe69   :  { %5150 = vmatpush3.bf16.msra.mxu1 %v5459_v9  ;;  %v5492_v9 = vld [vmem:[#allocation8 + $0x30] sm:$0xff]  }
 0xe6a   :  { %5151 = vmatprep.subr.bf16.mxu1 %v5750_v2 }
 0xe6d   :  { %5152 = vmatpush3.bf16.msra.mxu1 %v5460_v10  ;;  %v5493_v10 = vld [vmem:[#allocation8 + $0x68] sm:$0xff]  }
 0xe6e   :  { %5153 = vmatprep.subr.bf16.mxu1 %v5750_v2 }
 0xe71   :  { %5154 = vmatpush3.bf16.msra.mxu1 %v5461_v11 }
 0xe72   :  { %5155 = vmatprep.subr.bf16.mxu1 %v5750_v2 }
 0xe75   :  { %5156 = vmatpush3.bf16.msra.mxu1 %v5462_v46 }
 0xebd   :  { %v2777_v11 = vpop.permute.xlu1 %2776 }
 0xf18   :  { %v2469_v45 = vpop.f32.mrf.mxu1 }
 0xf19   :  { %v2470_v24 = vadd.f32 %v2469_v45, %v2428_v44  ;;  %v6474_v44 = vld [vmem:[#allocation5 + $0x40] ss:$8 sps:$4 sm:$0xff]   ;;  %v6480_v45 = vld [vmem:[#allocation5 + $0x30] ss:$8 sps:$4 sm:$0xff]  }
 0xf1a   :  { %v2471_v25 = vpop.f32.mrf.mxu1 }
 0xf1b   :  { %v2472_v41 = vadd.f32 %v2471_v25, %v2432_v20  ;;  %5607 = vtanh.f32 %v2470_v24  ;;  %v6478_v20 = vld [vmem:[#allocation5 + $0x34] ss:$8 sps:$4 sm:$0xff]   ;;  %v6484_v24 = vld [vmem:[#allocation5 + $0x24] ss:$8 sps:$4 sm:$0xff]   ;;  %v6486_v25 = vld [vmem:[#allocation5 + $0x20] ss:$8 sps:$4 sm:$0xff]  }
 0xf1c   :  { %v2473_v26 = vpop.f32.mrf.mxu1 }
 0xf1d   :  { %5609 = vtanh.f32 %v2472_v41  ;;  %v6490_v41 = vld [vmem:[#allocation5 + $0x14] ss:$8 sps:$4 sm:$0xff]   ;;  %v6492_v26 = vld [vmem:[#allocation5 + $0x10] ss:$8 sps:$4 sm:$0xff]  }
 0xf1e   :  { %v2474_v27 = vpop.f32.mrf.mxu1 }
 0xf1f   :  { %v6496_v27 = vld [vmem:[#allocation5 + $0x4] ss:$8 sps:$4 sm:$0xff]  }
 0xf28   :  { %v5608_v28 = vpop.eup %5607 }
 0xf29   :  { %v2478_v5 = vpack.c.bf16 %v5608_v28, %v5608_v28  ;;  %v6498_v28 = vld [vmem:[#allocation5] ss:$8 sps:$4 sm:$0xff]  }
 0xf2a   :  { %v5610_v62 = vpop.eup %5609 }
 0xf2b   :  { %v2479_v63 = vpack.c.bf16 %v5610_v62, %v5610_v62  ;;  %v5489_v62 = vld [vmem:[#allocation8 + $0x78] sm:$0xff]  }
 0xf2c   :  { %4922 = vmatprep.subr.bf16.mxu1 %v5489_v62 }
 0xf2d   :  { %2641 = vmatprep.mubr.bf16.mxu0 %v2479_v63  ;;  %v5490_v63 = vld [vmem:[#allocation8 + $0x38] sm:$0xff]  }
 0xf2e   :  { %2642 = vmatmul.mubr.bf16.vlgmr.msra.gmra.mxu0 %v2478_v5  ;;  %v5491_v5 = vld [vmem:[#allocation8 + $0x70] sm:$0xff]  }
 0xf2f   :  { %5165 = vmatprep.mubr.msk.bf16.mxu0 %vm5751_vm0, %v5750_v2  ;;  %5162 = vmatpush3.bf16.msra.mxu0 %v5463_v54 }
 0xf30   :  { %5163 = vmatprep.subr.bf16.mxu0 %v5750_v2 }
 0xf33   :  { %5164 = vmatpush3.bf16.msra.mxu0 %v5464_v55 }
 0xf34   :  { %2970 = vmatprep.subr.bf16.mxu0 %v6456_v36 }
 0xfee   :  { %v4904_v38 = vpop.f32.mrf.mxu0 }
 0xff0   :  { %v4905_v48 = vpop.f32.mrf.mxu0 }
 0xff1   :  { %v4906_v49 = vadd.f32 %v4905_v48, %v4904_v38  ;;  %v2792_v48 = vld [vmem:[%s6753_s3] sm:$0x1] }
 0xff2   :  { %v4907_v31 = vpop.f32.mrf.mxu0 }
 0xff3   :  { %v2644_v50 = vadd.f32 %v4906_v49, %v2512_v47  ;;  %v2801_v47 = vrot.slane %v6019_v6, %v5925_v37  ;;  %v5495_v6 = vld [vmem:[#allocation8 + $0x60] sm:$0xff]  }
 0xff4   :  { %v4908_v51 = vpop.f32.mrf.mxu0 }
 0xff5   :  { %5611 = vtanh.f32 %v2644_v50  ;;  %v2802_v49 = vmul.f32 %v2801_v47, %v2792_v48  ;;  %v2858_v50 = vld [vmem:[%s6754_s4] sm:$0x1]  ;;  %v5507_v47 = vld [vmem:[%s6759_s9 + $0x28] sm:$0xff]  }
 0xff6   :  { %v5508_v48 = vld [vmem:[%s6759_s9 + $0x20] sm:$0xff]  }
0x1002   :  { %v5612_v52 = vpop.eup %5611 }
0x1003   :  { %v2650_v53 = vpack.c.bf16 %v5612_v52, %v5612_v52 }
0x1005   :  { %5158 = vmatmul.mubr.bf16.vlgmr.msra.gmra.mxu1 %v2650_v53 }
0x1006   :  { %4923 = vmatpush3.bf16.msra.mxu1 %v5490_v63 }
0x1007   :  { %4924 = vmatprep.subr.bf16.mxu1 %v5491_v5 }
0x100a   :  { %4925 = vmatpush3.bf16.msra.mxu1 %v5492_v9 }
0x100b   :  { %4926 = vmatprep.subr.bf16.mxu1 %v5493_v10 }
0x100e   :  { %4927 = vmatpush3.bf16.msra.mxu1 %v5494_v12 }
0x100f   :  { %4928 = vmatprep.subr.bf16.mxu1 %v5495_v6 }
0x1012   :  { %4929 = vmatpush3.bf16.msra.mxu1 %v5496_v58 }
0x10c5   :  { %v2750_v60 = vpop.f32.mrf.mxu1 }
0x10c6   :  { %v2751_v33 = vadd.f32 %v2750_v60, %v2667_v59  ;;  %v5497_v59 = vld [vmem:[#allocation8 + $0x58] sm:$0xff]  }
0x10c7   :  { %v5159_v15 = vpop.f32.mrf.mxu1  ;;  %v5498_v60 = vld [vmem:[#allocation8 + $0x18] sm:$0xff]   ;;  %4930 = vmatprep.subr.bf16.mxu1 %v5497_v59 }
0x10c8   :  { %5613 = vtanh.f32 %v2751_v33  ;;  %4931 = vmatpush3.bf16.msra.mxu1 %v5498_v60  ;;  %v5499_v33 = vld [vmem:[#allocation8 + $0x50] sm:$0xff]   ;;  %v5513_v60 = vld [vmem:[%s6752_s2 + $0x8] sm:$0xff]  }
0x10c9   :  { %v2753_v16 = vpop.f32.mrf.mxu1  ;;  %v5500_v15 = vld [vmem:[#allocation8 + $0x10] sm:$0xff]   ;;  %4932 = vmatprep.subr.bf16.mxu1 %v5499_v33  ;;  %v5514_v33 = vld [vmem:[%s6752_s2] sm:$0xff]  }
0x10ca   :  { %v5501_v16 = vld [vmem:[#allocation8 + $0x48] sm:$0xff]  }
0x10cb   :  { %v5160_v21 = vpop.f32.mrf.mxu1 }
0x10cc   :  { %4933 = vmatpush3.bf16.msra.mxu1 %v5500_v15  ;;  %v5502_v21 = vld [vmem:[#allocation8 + $0x8] sm:$0xff]   ;;  %v3202_v15 = vld [vmem:[%s6760_s10] sm:$0x1] }
0x10cd   :  { %4934 = vmatprep.subr.bf16.mxu1 %v5501_v16 }
0x10d0   :  { %4935 = vmatpush3.bf16.msra.mxu1 %v5502_v21 }
0x10d5   :  { %v5614_v17 = vpop.eup %5613 }
0x10d6   :  { %v2757_v18 = vpack.c.bf16 %v5614_v17, %v5614_v17  ;;  %v5503_v17 = vld [vmem:[#allocation8 + $0x40] sm:$0xff]  }
0x10d7   :  { %4936 = vmatprep.subr.bf16.mxu1 %v5503_v17 }
0x10d8   :  { %5166 = vmatmul.mubr.msk.bf16.vlgmr.msra.gmra.mxu0 %vm139_vm4, %v2757_v18  ;;  %v2759_v19 = vunpack.c.l.bf16 %v2757_v18  ;;  %v5504_v18 = vld [vmem:[#allocation8] sm:$0xff]  }
0x10d9   :  { %3002 = vmatprep.mubr.bf16.mxu0 %v5752_v3  ;;  %2971 = vmatpush1.bf16.msra.mxu0 %v6454_v35 }
0x10da   :  { %v2761_v29 = vmul.f32 %v2760_v1, %v2759_v19  ;;  %2972 = vmatprep.subr.bf16.mxu0 %v6458_v39  ;;  %4937 = vmatpush3.bf16.msra.mxu1 %v5504_v18  ;;  %v5505_v1 = vld [vmem:[%s6759_s9 + $0x38] sm:$0xff]   ;;  %v5506_v19 = vld [vmem:[%s6759_s9 + $0x30] sm:$0xff]  }
0x10db   :  { %5189 = vmatprep.subr.bf16.mxu1 %v5750_v2 }
0x10dc   :  { %v2762_v30 = vsel %vm90_vm1, %v2761_v29, 0.0  ;;  %v2878_v29 = vld [vmem:[%s6756_s6] sm:$0x3] }
0x10dd   :  { %2763 = vadd.xlane.f32.xlu0 %v2762_v30  ;;  %2973 = vmatpush1.bf16.msra.mxu0 %v6462_v61  ;;  %v2963_v30 = vrot.slane %v2878_v29, %v5925_v37  ;;  %v2967_v62 = vrot.slane %v2878_v29, %v5948_v0 }
0x10de   :  { %2974 = vmatprep.subr.bf16.mxu0 %v6465_v40 }
0x10e1   :  { %2975 = vmatpush1.bf16.msra.mxu0 %v6468_v42 }
0x10e2   :  { %2976 = vmatprep.subr.bf16.mxu0 %v6472_v43 }
0x10e5   :  { %2977 = vmatpush1.bf16.msra.mxu0 %v6474_v44 }
0x10e6   :  { %2978 = vmatprep.subr.bf16.mxu0 %v6478_v20 }
0x10e9   :  { %2979 = vmatpush1.bf16.msra.mxu0 %v6480_v45 }
0x10ea   :  { %2980 = vmatprep.subr.bf16.mxu0 %v6484_v24 }
0x10ed   :  { %2981 = vmatpush1.bf16.msra.mxu0 %v6486_v25 }
0x10ee   :  { %2982 = vmatprep.subr.bf16.mxu0 %v6490_v41 }
0x10f1   :  { %2983 = vmatpush1.bf16.msra.mxu0 %v6492_v26 }
0x10f2   :  { %2984 = vmatprep.subr.bf16.mxu0 %v6496_v27 }
0x10f5   :  { %2985 = vmatpush1.bf16.msra.mxu0 %v6498_v28 }
0x10f6   :  { %5169 = vmatprep.subr.bf16.mxu0 %v5750_v2 }
0x1166   :  { %v2764_v46 = vpop.xlane.xlu0 %2763 }
0x1167   :  { %v2779_v14 = vadd.f32 %v2777_v11, %v2764_v46 }
0x1169   :  { %v2781_v38 = vadd.f32 %v2780_v13, %v2779_v14 }
0x116b   :  { %2783 = vrot.lane.b32.xlu1 %v2781_v38, %s5765_s19 }
0x1198   :  { %v2852_v31 = vpop.f32.mrf.mxu0 }
0x1199   :  { %v2853_v51 = vadd.f32 %v2852_v31, %v2802_v49  ;;  %v5509_v49 = vld [vmem:[%s6759_s9 + $0x18] sm:$0xff]   ;;  %v5510_v31 = vld [vmem:[%s6759_s9 + $0x10] sm:$0xff]  }
0x119a   :  { %v5167_v52 = vpop.f32.mrf.mxu0 }
0x119b   :  { %v2859_v53 = vadd.f32 %v2858_v50, %v2853_v51  ;;  %v5511_v50 = vld [vmem:[%s6759_s9 + $0x8] sm:$0xff]   ;;  %v5512_v51 = vld [vmem:[%s6759_s9] sm:$0xff]  }
0x119c   :  { %v2855_v54 = vpop.f32.mrf.mxu0 }
0x119d   :  { %5615 = vtanh.f32 %v2859_v53  ;;  %v3047_v53 = vld [vmem:[%s6758_s8] sm:$0x1] }
0x119e   :  { %v5168_v55 = vpop.f32.mrf.mxu0 }
0x11aa   :  { %v5616_v56 = vpop.eup %5615 }
0x11ab   :  { %v2861_v57 = vpack.c.bf16 %v5616_v56, %v5616_v56 }
0x11ad   :  { %3003 = vmatmul.mubr.bf16.vlgmr.msra.gmra.mxu0 %v2861_v57 }
0x11ae   :  { %5185 = vmatprep.mubr.msk.bf16.mxu0 %vm5751_vm0, %v5750_v2  ;;  %5170 = vmatpush3.bf16.msra.mxu0 %v5505_v1 }
0x11af   :  { %5171 = vmatprep.subr.bf16.mxu0 %v5750_v2 }
0x11b2   :  { %5172 = vmatpush3.bf16.msra.mxu0 %v5506_v19 }
0x11b3   :  { %5173 = vmatprep.subr.bf16.mxu0 %v5750_v2 }
0x11b6   :  { %5174 = vmatpush3.bf16.msra.mxu0 %v5507_v47 }
0x11b7   :  { %5175 = vmatprep.subr.bf16.mxu0 %v5750_v2 }
0x11ba   :  { %5176 = vmatpush3.bf16.msra.mxu0 %v5508_v48 }
0x11bb   :  { %5177 = vmatprep.subr.bf16.mxu0 %v5750_v2 }
0x11be   :  { %5178 = vmatpush3.bf16.msra.mxu0 %v5509_v49  ;;  %v3393_v49 = vld [vmem:[%s6754_s4] sm:$0x1] }
0x11bf   :  { %5179 = vmatprep.subr.bf16.mxu0 %v5750_v2 }
0x11c2   :  { %5180 = vmatpush3.bf16.msra.mxu0 %v5510_v31 }
0x11c3   :  { %5181 = vmatprep.subr.bf16.mxu0 %v5750_v2 }
0x11c6   :  { %5182 = vmatpush3.bf16.msra.mxu0 %v5511_v50 }
0x11c7   :  { %5183 = vmatprep.subr.bf16.mxu0 %v5750_v2 }
0x11ca   :  { %5184 = vmatpush3.bf16.msra.mxu0 %v5512_v51 }
0x126d   :  { %v3004_v63 = vpop.f32.mrf.mxu0 }
0x126e   :  { %v3005_v5 = vadd.f32 %v3004_v63, %v2963_v30  ;;  %v3295_v30 = vld [vmem:[%s6761_s11] sm:$0x1] }
0x126f   :  { %v3006_v9 = vpop.f32.mrf.mxu0 }
0x1270   :  { %v3007_v10 = vadd.f32 %v3006_v9, %v2967_v62  ;;  %5617 = vtanh.f32 %v3005_v5  ;;  %v5515_v9 = vld [vmem:[#allocation8 + $0x78] sm:$0xff]  }
0x1271   :  { %v3008_v11 = vpop.f32.mrf.mxu0  ;;  %4956 = vmatprep.subr.bf16.mxu0 %v5515_v9 }
0x1272   :  { %5619 = vtanh.f32 %v3007_v10  ;;  %v5516_v10 = vld [vmem:[#allocation8 + $0x38] sm:$0xff]   ;;  %v5517_v11 = vld [vmem:[#allocation8 + $0x70] sm:$0xff]  }
0x1273   :  { %v3009_v12 = vpop.f32.mrf.mxu0 }
0x1274   :  { %v5518_v12 = vld [vmem:[#allocation8 + $0x30] sm:$0xff]  }
0x127d   :  { %v5618_v13 = vpop.eup %5617 }
0x127e   :  { %v3013_v38 = vpack.c.bf16 %v5618_v13, %v5618_v13  ;;  %v5519_v13 = vld [vmem:[#allocation8 + $0x68] sm:$0xff]  }
0x127f   :  { %v5620_v46 = vpop.eup %5619 }
0x1280   :  { %v3014_v14 = vpack.c.bf16 %v5620_v46, %v5620_v46  ;;  %v5520_v46 = vld [vmem:[#allocation8 + $0x28] sm:$0xff]  }
0x1282   :  { %3176 = vmatprep.mubr.bf16.mxu1 %v3014_v14  ;;  %v3336_v14 = vrot.slane %v6068_v22, %v5925_v37  ;;  %v5521_v22 = vld [vmem:[#allocation8 + $0x60] sm:$0xff]  }
0x1283   :  { %3177 = vmatmul.mubr.bf16.vlgmr.msra.gmra.mxu1 %v3013_v38  ;;  %v3327_v38 = vld [vmem:[%s6753_s3] sm:$0x1] }
0x1284   :  { %5193 = vmatprep.mubr.msk.bf16.mxu1 %vm5751_vm0, %v5750_v2  ;;  %5190 = vmatpush3.bf16.msra.mxu1 %v5513_v60  ;;  %v3337_v47 = vmul.f32 %v3336_v14, %v3327_v38  ;;  %v5527_v60 = vld [vmem:[#allocation8 + $0x48] sm:$0xff]   ;;  %v5534_v14 = vld [vmem:[%s6759_s9 + $0x20] sm:$0xff]   ;;  %v5535_v38 = vld [vmem:[%s6759_s9 + $0x18] sm:$0xff]  }
0x1285   :  { %5191 = vmatprep.subr.bf16.mxu1 %v5750_v2 }
0x1288   :  { %5192 = vmatpush3.bf16.msra.mxu1 %v5514_v33  ;;  %v5528_v33 = vld [vmem:[#allocation8 + $0x8] sm:$0xff]  }
0x1289   :  { %3505 = vmatprep.subr.bf16.mxu1 %v6456_v36 }
0x1343   :  { %v4938_v52 = vpop.f32.mrf.mxu1 }
0x1345   :  { %v4939_v54 = vpop.f32.mrf.mxu1 }
0x1346   :  { %v4940_v55 = vadd.f32 %v4939_v54, %v4938_v52 }
0x1347   :  { %v4941_v56 = vpop.f32.mrf.mxu1 }
0x1348   :  { %v3179_v57 = vadd.f32 %v4940_v55, %v3047_v53  ;;  %v5522_v56 = vld [vmem:[#allocation8 + $0x20] sm:$0xff]  }
0x1349   :  { %v4942_v6 = vpop.f32.mrf.mxu1 }
0x134a   :  { %5621 = vtanh.f32 %v3179_v57  ;;  %v5523_v57 = vld [vmem:[#allocation8 + $0x58] sm:$0xff]  }
0x134b   :  { %v5524_v6 = vld [vmem:[#allocation8 + $0x18] sm:$0xff]  }
0x1357   :  { %v5622_v58 = vpop.eup %5621 }
0x1358   :  { %v3185_v59 = vpack.c.bf16 %v5622_v58, %v5622_v58  ;;  %v5525_v58 = vld [vmem:[#allocation8 + $0x50] sm:$0xff]  }
0x135a   :  { %5186 = vmatmul.mubr.bf16.vlgmr.msra.gmra.mxu0 %v3185_v59  ;;  %v5526_v59 = vld [vmem:[#allocation8 + $0x10] sm:$0xff]  }
0x135b   :  { %4957 = vmatpush3.bf16.msra.mxu0 %v5516_v10 }
0x135c   :  { %4958 = vmatprep.subr.bf16.mxu0 %v5517_v11 }
0x135f   :  { %4959 = vmatpush3.bf16.msra.mxu0 %v5518_v12 }
0x1360   :  { %4960 = vmatprep.subr.bf16.mxu0 %v5519_v13 }
0x1363   :  { %4961 = vmatpush3.bf16.msra.mxu0 %v5520_v46  ;;  %v5533_v46 = vld [vmem:[%s6759_s9 + $0x28] sm:$0xff]  }
0x1364   :  { %4962 = vmatprep.subr.bf16.mxu0 %v5521_v22 }
0x1367   :  { %4963 = vmatpush3.bf16.msra.mxu0 %v5522_v56 }
0x1368   :  { %4964 = vmatprep.subr.bf16.mxu0 %v5523_v57  ;;  %v5539_v57 = vld [vmem:[%s6752_s2 + $0x8] sm:$0xff]  }
0x136b   :  { %4965 = vmatpush3.bf16.msra.mxu0 %v5524_v6  ;;  %v5540_v6 = vld [vmem:[%s6752_s2] sm:$0xff]  }
0x136c   :  { %4966 = vmatprep.subr.bf16.mxu0 %v5525_v58  ;;  %v3737_v58 = vld [vmem:[%s6760_s10] sm:$0x1] }
0x136f   :  { %4967 = vmatpush3.bf16.msra.mxu0 %v5526_v59 }
0x1370   :  { %4968 = vmatprep.subr.bf16.mxu0 %v5527_v60 }
0x1373   :  { %4969 = vmatpush3.bf16.msra.mxu0 %v5528_v33 }
0x141a   :  { %v3285_v16 = vpop.f32.mrf.mxu0 }
0x141b   :  { %v3286_v21 = vadd.f32 %v3285_v16, %v3202_v15  ;;  %v5529_v15 = vld [vmem:[#allocation8 + $0x40] sm:$0xff]  }
0x141c   :  { %v5187_v17 = vpop.f32.mrf.mxu0  ;;  %v5530_v16 = vld [vmem:[#allocation8] sm:$0xff]   ;;  %4970 = vmatprep.subr.bf16.mxu0 %v5529_v15 }
0x141d   :  { %5623 = vtanh.f32 %v3286_v21  ;;  %4971 = vmatpush3.bf16.msra.mxu0 %v5530_v16  ;;  %v5531_v21 = vld [vmem:[%s6759_s9 + $0x38] sm:$0xff]   ;;  %v5532_v17 = vld [vmem:[%s6759_s9 + $0x30] sm:$0xff]  }
0x141e   :  { %v3288_v18 = vpop.f32.mrf.mxu0  ;;  %5217 = vmatprep.subr.bf16.mxu0 %v5750_v2 }
0x141f   :  { %v3413_v18 = vld [vmem:[%s6756_s6] sm:$0x3] }
0x1420   :  { %v5188_v1 = vpop.f32.mrf.mxu0 }
0x1421   :  { %v3498_v1 = vrot.slane %v3413_v18, %v5925_v37 }
0x142a   :  { %v5624_v19 = vpop.eup %5623 }
0x142b   :  { %v3292_v29 = vpack.c.bf16 %v5624_v19, %v5624_v19  ;;  %v3502_v19 = vrot.slane %v3413_v18, %v5948_v0  ;;  %v3830_v18 = vld [vmem:[%s6761_s11] sm:$0x1]  ;;  %s5773_s11 = smov [#allocation10]  }
0x142d   :  { %5194 = vmatmul.mubr.msk.bf16.vlgmr.msra.gmra.mxu1 %vm139_vm4, %v3292_v29  ;;  %v3294_v62 = vunpack.c.l.bf16 %v3292_v29 }
0x142e   :  { %3506 = vmatpush1.bf16.msra.mxu1 %v6454_v35  ;;  %3537 = vmatprep.mubr.bf16.mxu1 %v5752_v3 }
0x142f   :  { %v3296_v63 = vmul.f32 %v3295_v30, %v3294_v62  ;;  %3507 = vmatprep.subr.bf16.mxu1 %v6458_v39 }
0x1431   :  { %v3297_v5 = vsel %vm90_vm1, %v3296_v63, 0.0 }
0x1432   :  { %3298 = vadd.xlane.f32.xlu0 %v3297_v5  ;;  %3508 = vmatpush1.bf16.msra.mxu1 %v6462_v61 }
0x1433   :  { %3509 = vmatprep.subr.bf16.mxu1 %v6465_v40 }
0x1436   :  { %3510 = vmatpush1.bf16.msra.mxu1 %v6468_v42 }
0x1437   :  { %3511 = vmatprep.subr.bf16.mxu1 %v6472_v43 }
0x143a   :  { %3512 = vmatpush1.bf16.msra.mxu1 %v6474_v44 }
0x143b   :  { %3513 = vmatprep.subr.bf16.mxu1 %v6478_v20 }
0x143e   :  { %3514 = vmatpush1.bf16.msra.mxu1 %v6480_v45 }
0x143f   :  { %3515 = vmatprep.subr.bf16.mxu1 %v6484_v24 }
0x1442   :  { %3516 = vmatpush1.bf16.msra.mxu1 %v6486_v25 }
0x1443   :  { %3517 = vmatprep.subr.bf16.mxu1 %v6490_v41 }
0x1446   :  { %3518 = vmatpush1.bf16.msra.mxu1 %v6492_v26 }
0x1447   :  { %3519 = vmatprep.subr.bf16.mxu1 %v6496_v27 }
0x144a   :  { %3520 = vmatpush1.bf16.msra.mxu1 %v6498_v28 }
0x144b   :  { %5197 = vmatprep.subr.bf16.mxu1 %v5750_v2 }
0x14ed   :  { %v3387_v48 = vpop.f32.mrf.mxu1 }
0x14ee   :  { %v3388_v31 = vadd.f32 %v3387_v48, %v3337_v47  ;;  %v5536_v47 = vld [vmem:[%s6759_s9 + $0x10] sm:$0xff]   ;;  %v5537_v48 = vld [vmem:[%s6759_s9 + $0x8] sm:$0xff]  }
0x14ef   :  { %v5195_v50 = vpop.f32.mrf.mxu1 }
0x14f0   :  { %v3394_v51 = vadd.f32 %v3393_v49, %v3388_v31  ;;  %v5538_v49 = vld [vmem:[%s6759_s9] sm:$0xff]  }
0x14f1   :  { %v3390_v52 = vpop.f32.mrf.mxu1  ;;  %v3582_v50 = vld [vmem:[%s6758_s8] sm:$0x1] }
0x14f2   :  { %5625 = vtanh.f32 %v3394_v51 }
0x14f3   :  { %v5196_v53 = vpop.f32.mrf.mxu1 }
0x14ff   :  { %v5626_v54 = vpop.eup %5625 }
0x1500   :  { %v3396_v55 = vpack.c.bf16 %v5626_v54, %v5626_v54 }
0x1502   :  { %3538 = vmatmul.mubr.bf16.vlgmr.msra.gmra.mxu1 %v3396_v55 }
0x1503   :  { %5213 = vmatprep.mubr.msk.bf16.mxu1 %vm5751_vm0, %v5750_v2  ;;  %5198 = vmatpush3.bf16.msra.mxu1 %v5531_v21 }
0x1504   :  { %5199 = vmatprep.subr.bf16.mxu1 %v5750_v2 }
0x1507   :  { %5200 = vmatpush3.bf16.msra.mxu1 %v5532_v17 }
0x1508   :  { %5201 = vmatprep.subr.bf16.mxu1 %v5750_v2 }
0x150b   :  { %5202 = vmatpush3.bf16.msra.mxu1 %v5533_v46 }
0x150c   :  { %5203 = vmatprep.subr.bf16.mxu1 %v5750_v2 }
0x150f   :  { %5204 = vmatpush3.bf16.msra.mxu1 %v5534_v14 }
0x1510   :  { %5205 = vmatprep.subr.bf16.mxu1 %v5750_v2 }
0x1513   :  { %5206 = vmatpush3.bf16.msra.mxu1 %v5535_v38 }
0x1514   :  { %5207 = vmatprep.subr.bf16.mxu1 %v5750_v2 }
0x1517   :  { %5208 = vmatpush3.bf16.msra.mxu1 %v5536_v47 }
0x1518   :  { %5209 = vmatprep.subr.bf16.mxu1 %v5750_v2 }
0x151b   :  { %5210 = vmatpush3.bf16.msra.mxu1 %v5537_v48 }
0x151c   :  { %5211 = vmatprep.subr.bf16.mxu1 %v5750_v2 }
0x151f   :  { %5212 = vmatpush3.bf16.msra.mxu1 %v5538_v49 }
0x15c2   :  { %v3539_v29 = vpop.f32.mrf.mxu1 }
0x15c3   :  { %v3540_v30 = vadd.f32 %v3539_v29, %v3498_v1 }
0x15c4   :  { %v3541_v62 = vpop.f32.mrf.mxu1 }
0x15c5   :  { %v3542_v63 = vadd.f32 %v3541_v62, %v3502_v19  ;;  %5627 = vtanh.f32 %v3540_v30  ;;  %v2784_v62 = vpop.permute.xlu1 %2783 }
0x15c6   :  { %v3543_v5 = vpop.f32.mrf.mxu1 }
0x15c7   :  { %5629 = vtanh.f32 %v3542_v63  ;;  %v3871_v5 = vrot.slane %v6070_v23, %v5925_v37 }
0x15c8   :  { %v3544_v9 = vpop.f32.mrf.mxu1 }
0x15c9   :  { %v3862_v9 = vld [vmem:[%s6753_s3] sm:$0x1] }
0x15d2   :  { %v5628_v10 = vpop.eup %5627 }
0x15d3   :  { %v3548_v13 = vpack.c.bf16 %v5628_v10, %v5628_v10  ;;  %v3872_v10 = vmul.f32 %v3871_v5, %v3862_v9 }
0x15d4   :  { %v5630_v11 = vpop.eup %5629 }
0x15d5   :  { %v3549_v12 = vpack.c.bf16 %v5630_v11, %v5630_v11 }
0x15d7   :  { %3711 = vmatprep.mubr.bf16.mxu0 %v3549_v12  ;;  %v3928_v12 = vld [vmem:[%s6754_s4] sm:$0x1] }
0x15d8   :  { %3712 = vmatmul.mubr.bf16.vlgmr.msra.gmra.mxu0 %v3548_v13 }
0x15d9   :  { %5221 = vmatprep.mubr.msk.bf16.mxu0 %vm5751_vm0, %v5750_v2  ;;  %5218 = vmatpush3.bf16.msra.mxu0 %v5539_v57  ;;  %v5556_v57 = vld [vmem:[#allocation8] sm:$0xff]  }
0x15da   :  { %5219 = vmatprep.subr.bf16.mxu0 %v5750_v2 }
0x15dd   :  { %5220 = vmatpush3.bf16.msra.mxu0 %v5540_v6  ;;  %v5557_v6 = vld [vmem:[%s6759_s9 + $0x38] sm:$0xff]  }
0x15de   :  { %4040 = vmatprep.subr.bf16.mxu0 %v6456_v36 }
0x1698   :  { %v4972_v31 = vpop.f32.mrf.mxu0 }
0x169a   :  { %v4973_v51 = vpop.f32.mrf.mxu0 }
0x169b   :  { %v4974_v52 = vadd.f32 %v4973_v51, %v4972_v31  ;;  %v5547_v31 = vld [vmem:[#allocation8 + $0x60] sm:$0xff]   ;;  %v5549_v51 = vld [vmem:[#allocation8 + $0x58] sm:$0xff]  }
0x169c   :  { %v4975_v53 = vpop.f32.mrf.mxu0 }
0x169d   :  { %v3714_v54 = vadd.f32 %v4974_v52, %v3582_v50  ;;  %v5548_v50 = vld [vmem:[#allocation8 + $0x20] sm:$0xff]   ;;  %v5550_v52 = vld [vmem:[#allocation8 + $0x18] sm:$0xff]   ;;  %v5551_v53 = vld [vmem:[#allocation8 + $0x50] sm:$0xff]  }
0x169e   :  { %v4976_v55 = vpop.f32.mrf.mxu0 }
0x169f   :  { %5631 = vtanh.f32 %v3714_v54  ;;  %v5552_v54 = vld [vmem:[#allocation8 + $0x10] sm:$0xff]   ;;  %v5553_v55 = vld [vmem:[#allocation8 + $0x48] sm:$0xff]  }
0x16ac   :  { %v5632_v22 = vpop.eup %5631 }
0x16ad   :  { %v3720_v56 = vpack.c.bf16 %v5632_v22, %v5632_v22  ;;  %v5554_v22 = vld [vmem:[#allocation8 + $0x8] sm:$0xff]  }
0x16af   :  { %5214 = vmatmul.mubr.bf16.vlgmr.msra.gmra.mxu1 %v3720_v56  ;;  %v5555_v56 = vld [vmem:[#allocation8 + $0x40] sm:$0xff]  }
0x176f   :  { %v3820_v59 = vpop.f32.mrf.mxu1 }
0x1770   :  { %v3821_v60 = vadd.f32 %v3820_v59, %v3737_v58  ;;  %v5558_v58 = vld [vmem:[%s6759_s9 + $0x30] sm:$0xff]   ;;  %v3948_v59 = vld [vmem:[%s6756_s6] sm:$0x3] }
0x1771   :  { %v5215_v33 = vpop.f32.mrf.mxu1 }
0x1772   :  { %5633 = vtanh.f32 %v3821_v60  ;;  %v4033_v60 = vrot.slane %v3948_v59, %v5925_v37  ;;  %v4037_v33 = vrot.slane %v3948_v59, %v5948_v0  ;;  %v5560_v0 = vld [vmem:[%s6759_s9 + $0x20] sm:$0xff]  }
0x1773   :  { %v3823_v15 = vpop.f32.mrf.mxu1 }
0x1775   :  { %v5216_v16 = vpop.f32.mrf.mxu1 }
0x177f   :  { %v5634_v21 = vpop.eup %5633 }
0x1780   :  { %v3827_v17 = vpack.c.bf16 %v5634_v21, %v5634_v21 }
0x1782   :  { %5222 = vmatmul.mubr.msk.bf16.vlgmr.msra.gmra.mxu0 %vm139_vm4, %v3827_v17  ;;  %v3829_v1 = vunpack.c.l.bf16 %v3827_v17 }
0x1783   :  { %4041 = vmatpush1.bf16.msra.mxu0 %v6454_v35  ;;  %4072 = vmatprep.mubr.bf16.mxu0 %v5752_v3  ;;  %v5655_v3 = vld [vmem:[%s6750_s0] sm:$0x1] }
0x1784   :  { %v3831_v36 = vmul.f32 %v3830_v18, %v3829_v1  ;;  %4042 = vmatprep.subr.bf16.mxu0 %v6458_v39  ;;  %v3840_v35 = vmul.f32 %v5655_v3, %v6089_v32 }
0x1786   :  { %v3832_v19 = vsel %vm90_vm1, %v3831_v36, 0.0  ;;  %v3845_v39 = vrot.slane %v3840_v35, %v5925_v37  ;;  %v5559_v37 = vld [vmem:[%s6759_s9 + $0x28] sm:$0xff]  }
0x1787   :  { %3833 = vadd.xlane.f32.xlu0 %v3832_v19  ;;  %4043 = vmatpush1.bf16.msra.mxu0 %v6462_v61  ;;  %v2244_v61 = vadd.f32 %v6093_v34, %v6503_v7  ;;  %v5541_v34 = vld [vmem:[#allocation8 + $0x78] sm:$0xff]  }
0x1788   :  { %4044 = vmatprep.subr.bf16.mxu0 %v6465_v40  ;;  %v3299_v40 = vpop.xlane.xlu0 %3298  ;;  %4990 = vmatprep.subr.bf16.mxu1 %v5541_v34 }
0x178b   :  { %4045 = vmatpush1.bf16.msra.mxu0 %v6468_v42  ;;  %v2245_v42 = vld [vmem:[#allocation4] sm:$0x1] }
0x178c   :  { %4046 = vmatprep.subr.bf16.mxu0 %v6472_v43  ;;  %v3314_v43 = vadd.f32 %v6505_v8, %v3299_v40  ;;  %v2246_v32 = vadd.f32 %v2245_v42, %v2244_v61  ;;  %v5562_v61 = vld [vmem:[%s6759_s9 + $0x10] sm:$0xff]   ;;  %v5563_v40 = vld [vmem:[%s6759_s9 + $0x8] sm:$0xff]   ;;  %v5564_v42 = vld [vmem:[%s6759_s9] sm:$0xff]  }
0x178f   :  { %4047 = vmatpush1.bf16.msra.mxu0 %v6474_v44  ;;  %v3315_v44 = vld [vmem:[#allocation4] sm:$0x1] }
0x1790   :  { %4048 = vmatprep.subr.bf16.mxu0 %v6478_v20  ;;  %v3316_v20 = vadd.f32 %v3315_v44, %v3314_v43 }
0x1793   :  { %4049 = vmatpush1.bf16.msra.mxu0 %v6480_v45  ;;  %v5542_v45 = vld [vmem:[#allocation8 + $0x38] sm:$0xff]  }
0x1794   :  { %4050 = vmatprep.subr.bf16.mxu0 %v6484_v24  ;;  %v5543_v24 = vld [vmem:[#allocation8 + $0x70] sm:$0xff]   ;;  %4991 = vmatpush3.bf16.msra.mxu1 %v5542_v45 }
0x1795   :  { %4992 = vmatprep.subr.bf16.mxu1 %v5543_v24 }
0x1797   :  { %4051 = vmatpush1.bf16.msra.mxu0 %v6486_v25  ;;  %v5544_v25 = vld [vmem:[#allocation8 + $0x30] sm:$0xff]  }
0x1798   :  { %4052 = vmatprep.subr.bf16.mxu0 %v6490_v41  ;;  %v5545_v41 = vld [vmem:[#allocation8 + $0x68] sm:$0xff]   ;;  %4993 = vmatpush3.bf16.msra.mxu1 %v5544_v25 }
0x1799   :  { %4994 = vmatprep.subr.bf16.mxu1 %v5545_v41 }
0x179b   :  { %4053 = vmatpush1.bf16.msra.mxu0 %v6492_v26 }
0x179c   :  { %4054 = vmatprep.subr.bf16.mxu0 %v6496_v27  ;;  %v5546_v27 = vld [vmem:[#allocation8 + $0x28] sm:$0xff]  }
0x179d   :  { %3846 = vrot.lane.b32.xlu0 %v3845_v39, %s5772_s12  ;;  %4995 = vmatpush3.bf16.msra.mxu1 %v5546_v27  ;;  %v5561_v39 = vld [vmem:[%s6759_s9 + $0x18] sm:$0xff]   ;;  %s4381_s12 = sshll.u32 %s5773_s11, 4  ;;  %s4382_s12 = int_to_ptr.vmem [resolvable:$true] %s4381_s12 }
0x179e   :  { %4996 = vmatprep.subr.bf16.mxu1 %v5547_v31  ;;  %s5696_s0 = scalar_lea.vmem %s4382_s12, 16  ;;  %s5700_s9 = scalar_lea.vmem %s4382_s12, 32 }
0x179f   :  { %4055 = vmatpush1.bf16.msra.mxu0 %v6498_v28  ;;  %v3850_v28 = vld [vmem:[#allocation4] sm:$0x1]  ;;  %p5697_p10 = scmp.ne.s32.totalorder %s4382_s12, %s5696_s0  ;;  %p5701_p11 = scmp.lt.s32.totalorder %s4382_s12, %s4382_s12 }
0x17a0   :  { %5225 = vmatprep.subr.bf16.mxu0 %v5750_v2  ;;  %p5702_p12 = scmp.lt.s32.totalorder %s5700_s9, %s5696_s0 }
0x17a1   :  { %2248 = vrot.lane.b32.xlu0 %v2246_v32, %s5749_s16  ;;  %4997 = vmatpush3.bf16.msra.mxu1 %v5548_v50  ;;  %v4117_v32 = vld [vmem:[%s6758_s8] sm:$0x1] }
0x17a2   :  { %4998 = vmatprep.subr.bf16.mxu1 %v5549_v51  ;;  %p5703_p13 = por %p5702_p12, %p5701_p11 }
0x17a4   :  { %p5704_p0 = pnand %p5703_p13, %p5697_p10 }
0x17a5   :  { %3318 = vrot.lane.b32.xlu0 %v3316_v20, %s5766_s20  ;;  %4999 = vmatpush3.bf16.msra.mxu1 %v5550_v52 }
0x17a6   :  { %5000 = vmatprep.subr.bf16.mxu1 %v5551_v53 }
0x17a9   :  { %5001 = vmatpush3.bf16.msra.mxu1 %v5552_v54 }
0x17aa   :  { %5002 = vmatprep.subr.bf16.mxu1 %v5553_v55 }
0x17ad   :  { %5003 = vmatpush3.bf16.msra.mxu1 %v5554_v22 }
0x17ae   :  { %5004 = vmatprep.subr.bf16.mxu1 %v5555_v56 }
0x17b1   :  { %5005 = vmatpush3.bf16.msra.mxu1 %v5556_v57 }
0x1810   :  { %v3834_v26 = vpop.xlane.xlu0 %3833 }
0x1814   :  { %v3847_v7 = vpop.permute.xlu0 %3846 }
0x1815   :  { %v3849_v8 = vadd.f32 %v3847_v7, %v3834_v26 }
0x1817   :  { %v3851_v29 = vadd.f32 %v3850_v28, %v3849_v8 }
0x1818   :  { %v2249_v30 = vpop.permute.xlu0 %2248 }
0x1819   :  { %2252 = vst.msk [vmem:[#allocation10] sm:$0x1] %vm2251_vm9, %v2249_v30  ;;  %3853 = vrot.lane.b32.xlu1 %v3851_v29, %s5767_s21 }
0x181a   :  { %2787 = vst.msk [vmem:[#allocation10] sm:$0x1] %vm2786_vm10, %v2784_v62 }
0x181c   :  { %v3319_v63 = vpop.permute.xlu0 %3318 }
0x181d   :  { %3322 = vst.msk [vmem:[#allocation10] sm:$0x1] %vm3321_vm11, %v3319_v63 }
0x1842   :  { %v3922_v11 = vpop.f32.mrf.mxu0 }
0x1843   :  { %v3923_v13 = vadd.f32 %v3922_v11, %v3872_v10 }
0x1844   :  { %v5223_v46 = vpop.f32.mrf.mxu0 }
0x1845   :  { %v3929_v14 = vadd.f32 %v3928_v12, %v3923_v13 }
0x1846   :  { %v3925_v38 = vpop.f32.mrf.mxu0 }
0x1847   :  { %5635 = vtanh.f32 %v3929_v14 }
0x1848   :  { %v5224_v47 = vpop.f32.mrf.mxu0 }
0x1854   :  { %v5636_v48 = vpop.eup %5635 }
0x1855   :  { %v3931_v49 = vpack.c.bf16 %v5636_v48, %v5636_v48 }
0x1857   :  { %4073 = vmatmul.mubr.bf16.vlgmr.msra.gmra.mxu0 %v3931_v49 }
0x1858   :  { %5241 = vmatprep.mubr.msk.bf16.mxu0 %vm5751_vm0, %v5750_v2  ;;  %5226 = vmatpush3.bf16.msra.mxu0 %v5557_v6 }
0x1859   :  { %5227 = vmatprep.subr.bf16.mxu0 %v5750_v2 }
0x185c   :  { %5228 = vmatpush3.bf16.msra.mxu0 %v5558_v58 }
0x185d   :  { %5229 = vmatprep.subr.bf16.mxu0 %v5750_v2 }
0x1860   :  { %5230 = vmatpush3.bf16.msra.mxu0 %v5559_v37 }
0x1861   :  { %5231 = vmatprep.subr.bf16.mxu0 %v5750_v2 }
0x1864   :  { %5232 = vmatpush3.bf16.msra.mxu0 %v5560_v0 }
0x1865   :  { %5233 = vmatprep.subr.bf16.mxu0 %v5750_v2 }
0x1868   :  { %5234 = vmatpush3.bf16.msra.mxu0 %v5561_v39 }
0x1869   :  { %5235 = vmatprep.subr.bf16.mxu0 %v5750_v2 }
0x186c   :  { %5236 = vmatpush3.bf16.msra.mxu0 %v5562_v61 }
0x186d   :  { %5237 = vmatprep.subr.bf16.mxu0 %v5750_v2 }
0x1870   :  { %5238 = vmatpush3.bf16.msra.mxu0 %v5563_v40 }
0x1871   :  { %5239 = vmatprep.subr.bf16.mxu0 %v5750_v2 }
0x1874   :  { %5240 = vmatpush3.bf16.msra.mxu0 %v5564_v42 }
0x188b   :  { %v3854_v23 = vpop.permute.xlu1 %3853 }
0x188c   :  { %3857 = vst.msk [vmem:[#allocation10] sm:$0x1] %vm3856_vm12, %v3854_v23 }
0x1917   :  { %v4074_v15 = vpop.f32.mrf.mxu0 }
0x1918   :  { %v4075_v16 = vadd.f32 %v4074_v15, %v4033_v60 }
0x1919   :  { %v4076_v21 = vpop.f32.mrf.mxu0 }
0x191a   :  { %v4077_v17 = vadd.f32 %v4076_v21, %v4037_v33  ;;  %5637 = vtanh.f32 %v4075_v16 }
0x191b   :  { %v4078_v18 = vpop.f32.mrf.mxu0 }
0x191c   :  { %5639 = vtanh.f32 %v4077_v17 }
0x191d   :  { %v4079_v1 = vpop.f32.mrf.mxu0 }
0x1927   :  { %v5638_v36 = vpop.eup %5637 }
0x1928   :  { %v4083_v35 = vpack.c.bf16 %v5638_v36, %v5638_v36 }
0x1929   :  { %v5640_v19 = vpop.eup %5639 }
0x192a   :  { %v4084_v3 = vpack.c.bf16 %v5640_v19, %v5640_v19 }
0x192c   :  { %4246 = vmatprep.mubr.bf16.mxu1 %v4084_v3 }
0x192d   :  { %4247 = vmatmul.mubr.bf16.vlgmr.msra.gmra.mxu1 %v4083_v35 }
0x19ed   :  { %v5006_v43 = vpop.f32.mrf.mxu1 }
0x19ef   :  { %v5007_v44 = vpop.f32.mrf.mxu1 }
0x19f0   :  { %v5008_v20 = vadd.f32 %v5007_v44, %v5006_v43 }
0x19f1   :  { %v5009_v34 = vpop.f32.mrf.mxu1 }
0x19f2   :  { %v4249_v45 = vadd.f32 %v5008_v20, %v4117_v32 }
0x19f3   :  { %v5010_v24 = vpop.f32.mrf.mxu1 }
0x19f4   :  { %5641 = vtanh.f32 %v4249_v45 }
0x1a01   :  { %v5642_v25 = vpop.eup %5641 }
0x1a02   :  { %v4255_v41 = vpack.c.bf16 %v5642_v25, %v5642_v25 }
0x1a04   :  { %5242 = vmatmul.mubr.bf16.vlgmr.msra.gmra.mxu0 %v4255_v41 }
0x1a05   :  { %5707 = shalt.err (!%p5704_p0)
}
0x1a06   :  { %4384 = dma.vmem_to_hbm [thread:$0]  %s4382_s12, 16, %s6763_s14, [#allocation7]   ;;  %v4272_v2 = vld [vmem:[%s6760_s10] sm:$0x1] }
0x1a07   :  { %v4366_v30 = vld [vmem:[#allocation2] sm:$0x1]  ;;  %s5774_s3 = smov [#allocation11]  }
0x1a08   :  { %s4391_s4 = sshll.u32 %s5774_s3, 4  ;;  %s4392_s4 = int_to_ptr.vmem [resolvable:$true] %s4391_s4 }
0x1a09   :  { %s5716_s10 = scalar_lea.vmem %s4392_s4, 16  ;;  %s5720_s14 = scalar_lea.vmem %s4392_s4, 32 }
0x1a0a   :  { %p5717_p1 = scmp.ne.s32.totalorder %s4392_s4, %s5716_s10  ;;  %p5721_p2 = scmp.lt.s32.totalorder %s4392_s4, %s4392_s4 }
0x1a0b   :  { %p5722_p3 = scmp.lt.s32.totalorder %s5720_s14, %s5716_s10 }
0x1a0d   :  { %p5723_p4 = por %p5722_p3, %p5721_p2 }
0x1a0f   :  { %p5724_p5 = pnand %p5723_p4, %p5717_p1 }
0x1ac4   :  { %v4355_v26 = vpop.f32.mrf.mxu0 }
0x1ac5   :  { %v4356_v27 = vadd.f32 %v4355_v26, %v4272_v2 }
0x1ac6   :  { %v5243_v28 = vpop.f32.mrf.mxu0 }
0x1ac7   :  { %5643 = vtanh.f32 %v4356_v27 }
0x1ac8   :  { %v4358_v7 = vpop.f32.mrf.mxu0 }
0x1aca   :  { %v5244_v8 = vpop.f32.mrf.mxu0 }
0x1ad4   :  { %v5644_v29 = vpop.eup %5643 }
0x1ad5   :  { %v4362_v62 = vpack.c.bf16 %v5644_v29, %v5644_v29 }
0x1ad7   :  { %v4367_v63 = vsel %vm5873_vm3, %v4362_v62, %v4366_v30 }
0x1ad8   :  { %4368 = vst [vmem:[#allocation2] sm:$0x1] %v4367_v63 }
0x1adf   :  { %v4372_v5 = vld [vmem:[#allocation2] sm:$0x1] }
0x1ae0   :  { %v4373_v9 = vunpack.c.l.bf16 %v4372_v5 }
0x1ae2   :  { %4374 = vst.msk [vmem:[#allocation11] sm:$0x1] %vm90_vm1, %v4373_v9 }
0x1ae3   :  { %5727 = shalt.err (!%p5724_p5)
}
0x1ae4   :  { %4394 = dma.vmem_to_hbm [thread:$0]  %s4392_s4, 16, %s6764_s15, [#allocation12]  }
0x1ae5   :  { %5740 = dma.done.wait [#allocation7], 16  }
0x1ae6   :  { %5741 = vsyncadd [#allocation7], 4294967280 }
0x1ae7   :  { %5742 = dma.done.wait [#allocation12], 16  }
0x1ae8   :  { %5743 = vsyncadd [#allocation12], 4294967280 }
0x1ae9   :  { %4401 = vsyncpa [#allocation6], 1 }
0x1aea   :  { %4402 = vsyncpa [#allocation9], 1 }
0x1aeb   :  { %4403 = vsyncpa [#allocation7], 1 }
0x1aec   :  { %4404 = vsyncpa [#allocation12], 1 }

</bundles_post_ra>
